<compile_context>
chip_gen: v7x
topology: tpu7x:2x2x1
jax: 0.10.0
libtpu: 0.0.40
codegen_flags: <defaults>
</compile_context>

<pallas_src>
import functools

import jax
import jax.numpy as jnp
from jax.experimental import pallas as pl
from jax.experimental.pallas import tpu as pltpu


def _pick_tile(n, *, min_steps=4, min_tile=512, max_tile=2048):
    """Largest lane tile (multiple of 128 dividing n, <= max_tile) that still
    yields >= min_steps grid steps (DMA/compute overlap; keeps both v7x
    TensorCores busy), preferring tiles >= min_tile (>=85% of HBM roofline on
    the single-TC v5e/v6e)."""
    assert n % 128 == 0, f"flattened size {n} must be a multiple of 128"
    cands = [t for t in range(128, min(n, max_tile) + 1, 128) if n % t == 0]
    for pred in (lambda t: n // t >= min_steps and t >= min_tile,
                 lambda t: n // t >= min_steps):
        good = [t for t in cands if pred(t)]
        if good:
            return max(good)
    return max(cands)


# ---------------------------------------------------------------------------
# Kernel 1: fused 'normal' RS features + down0 MLP
#           (Linear(1+F, 32) -> ReLU -> Linear(32, 1)), both layers on the MXU.
#   inputs: lat / ixi / iu0 each [1, N] (N = B*T*X*Y on lanes), separate refs.
#   output: [1, N]
# ---------------------------------------------------------------------------
def _feat_down0_kernel(lat_ref, ixi_ref, iu0_ref, w1_ref, b1_ref, w2_ref,
                       b2_ref, o_ref, feats_ref):
    lat = lat_ref[...]
    ixi = ixi_ref[...]
    iu0 = iu0_ref[...]
    tile = lat.shape[1]
    # Stage the 5 'normal' features into an (8, tile) VMEM scratch so the MLP
    # accumulation runs on the (otherwise idle) MXU instead of carrying a
    # [32, tile] hidden across 5 unrolled VPU passes.
    feats_ref[0:1, :] = lat
    feats_ref[1:2, :] = ixi
    feats_ref[2:3, :] = ixi * ixi
    feats_ref[3:4, :] = iu0
    feats_ref[4:5, :] = ixi * iu0
    feats_ref[5:8, :] = jnp.zeros((3, tile), jnp.float32)   # keep pad rows clean
    h = jnp.dot(w1_ref[...], feats_ref[...],
                preferred_element_type=jnp.float32) + b1_ref[...]   # [32, tile]
    h = jnp.maximum(h, 0.0)
    out = jnp.dot(w2_ref[...], h,
                  preferred_element_type=jnp.float32) + b2_ref[...]  # [1, tile]
    o_ref[...] = out.astype(o_ref.dtype)


def feat_down0(lat, ixi, iu0, w1p, b1, w2r, b2, tile_n):
    n = lat.shape[1]
    hdim, kpad = w1p.shape
    fld = pl.BlockSpec((1, tile_n), lambda i: (0, i))
    return pl.pallas_call(
        _feat_down0_kernel,
        out_shape=jax.ShapeDtypeStruct((1, n), jnp.float32),
        grid=(n // tile_n,),
        in_specs=[
            fld, fld, fld,
            pl.BlockSpec((hdim, kpad), lambda i: (0, 0)),
            pl.BlockSpec((hdim, 1), lambda i: (0, 0)),
            pl.BlockSpec((1, hdim), lambda i: (0, 0)),
            pl.BlockSpec((1, 1), lambda i: (0, 0)),
        ],
        out_specs=pl.BlockSpec((1, tile_n), lambda i: (0, i)),
        scratch_shapes=[pltpu.VMEM((8, tile_n), jnp.float32)],
        compiler_params=pltpu.CompilerParams(dimension_semantics=("parallel",)),
    )(lat, ixi, iu0, w1p, b1, w2r, b2)


# ---------------------------------------------------------------------------
# Kernel 2: fused 'U0' features + O1 features + grid concat + fc0 linear.
#   inputs: iu0n / ixi / lat / iu0 each [B, 1, S]  (S = X*Y*T, lane-dense,
#           X,Y,T flatten order == FNO trunk order), grid_rows [3, S] constant.
#   output: [B, width, S]  == the FNO trunk layout directly.
# ---------------------------------------------------------------------------
def _feat_fc0_kernel(iu0n_ref, ixi_ref, lat_ref, iu0_ref, g_ref, w0_ref,
                     b0_ref, o_ref):
    iu0n = iu0n_ref[...]
    ixi = ixi_ref[...]
    lat = lat_ref[...]
    iu0 = iu0_ref[...]
    gt = g_ref[0:1, :]
    gx = g_ref[1:2, :]
    gy = g_ref[2:3, :]
    # channel order == torch.cat((R1_U0, O1, grid), dim=-1)
    chans = (iu0n, ixi * iu0n,                        # 'U0' features (FU0 = 2)
             lat, ixi, ixi * ixi, iu0, ixi * iu0,     # O1 'normal' features (1+F=5)
             gt, gx, gy)                              # grid (3)
    y = b0_ref[...]                                   # [width, 1]
    for k, c in enumerate(chans):                     # unrolled VPU FMAs
        y = y + w0_ref[:, k:k + 1] * c
    o_ref[...] = y.astype(o_ref.dtype)


def feat_fc0(iu0n, ixi, lat, iu0, grid_rows, w0, b0, tile_s):
    b, _, s = iu0n.shape
    width, kin = w0.shape
    fld = pl.BlockSpec((None, 1, tile_s), lambda bi, si: (bi, 0, si))
    return pl.pallas_call(
        _feat_fc0_kernel,
        out_shape=jax.ShapeDtypeStruct((b, width, s), jnp.float32),
        grid=(b, s // tile_s),
        in_specs=[
            fld, fld, fld, fld,
            pl.BlockSpec((3, tile_s), lambda bi, si: (0, si)),   # batch-invariant
            pl.BlockSpec((width, kin), lambda bi, si: (0, 0)),
            pl.BlockSpec((width, 1), lambda bi, si: (0, 0)),
        ],
        out_specs=pl.BlockSpec((None, width, tile_s), lambda bi, si: (bi, 0, si)),
        compiler_params=pltpu.CompilerParams(
            dimension_semantics=("parallel", "parallel")),
    )(iu0n, ixi, lat, iu0, grid_rows, w0, b0)


# ---------------------------------------------------------------------------
# Kernel 3: spectral mode complex multiply (all 4 corner blocks at once).
#   Plain 4-multiply complex form (wr, wi only -> 2 weight streams), the 4*M
#   mode axis tiled to keep the Ci-unrolled accumulation in vregs.  Grid is
#   (mode-chunk, batch) so the heavy weight blocks are re-used (not re-DMA'd)
#   across the inner batch steps.
# ---------------------------------------------------------------------------
def _spectral_cmul_kernel(xr_ref, xi_ref, wr_ref, wi_ref, or_ref, oi_ref, *,
                          ci_total):
    acc_r = jnp.zeros(or_ref.shape, jnp.float32)
    acc_i = jnp.zeros(oi_ref.shape, jnp.float32)
    for ci in range(ci_total):                        # unrolled, Ci = width = 8
        xr = xr_ref[ci:ci + 1, :]                     # [1, tile_m]
        xi = xi_ref[ci:ci + 1, :]
        wr = wr_ref[ci]                               # [Co, tile_m]
        wi = wi_ref[ci]
        acc_r = acc_r + (wr * xr - wi * xi)
        acc_i = acc_i + (wr * xi + wi * xr)
    or_ref[...] = acc_r
    oi_ref[...] = acc_i


def spectral_cmul(xr, xi, wr, wi, tile_m):
    b, ci, m4 = xr.shape
    co = wr.shape[1]
    kern = functools.partial(_spectral_cmul_kernel, ci_total=ci)
    x_spec = pl.BlockSpec((None, ci, tile_m), lambda mi, bi: (bi, 0, mi))
    w_spec = pl.BlockSpec((ci, co, tile_m), lambda mi, bi: (0, 0, mi))
    o_spec = pl.BlockSpec((None, co, tile_m), lambda mi, bi: (bi, 0, mi))
    return pl.pallas_call(
        kern,
        out_shape=(jax.ShapeDtypeStruct((b, co, m4), jnp.float32),
                   jax.ShapeDtypeStruct((b, co, m4), jnp.float32)),
        grid=(m4 // tile_m, b),
        in_specs=[x_spec, x_spec, w_spec, w_spec],
        out_specs=(o_spec, o_spec),
        compiler_params=pltpu.CompilerParams(
            dimension_semantics=("parallel", "parallel")),
    )(xr, xi, wr, wi)


# ---------------------------------------------------------------------------
# Kernel 4: FNO pointwise 1x1 conv + spectral-branch add + GELU (non-last).
#   Spatial chunk on lanes; width=8 channels on sublanes; grid over (B, S-chunk).
#   x rows are read inside the unrolled loop (no up-front [C, S] slab).
# ---------------------------------------------------------------------------
def _fno_pointwise_kernel(x_ref, spec_ref, w_ref, b_ref, o_ref, *, cin):
    y = spec_ref[...] + b_ref[...]                    # [C, tile] + [C, 1]
    for ci in range(cin):                             # unrolled, C = 8
        y = y + w_ref[:, ci:ci + 1] * x_ref[ci:ci + 1, :]
    # TODO(synk): torch F.gelu is exact-erf; tanh approximation used for TPU-safe lowering.
    y = jax.nn.gelu(y, approximate=True)
    o_ref[...] = y.astype(o_ref.dtype)


def fno_pointwise(x3, spec3, w, b, tile_s):
    bsz, c, s = x3.shape
    kern = functools.partial(_fno_pointwise_kernel, cin=c)
    xs = pl.BlockSpec((None, c, tile_s), lambda bi, si: (bi, 0, si))
    return pl.pallas_call(
        kern,
        out_shape=jax.ShapeDtypeStruct((bsz, c, s), jnp.float32),
        grid=(bsz, s // tile_s),
        in_specs=[xs, xs,
                  pl.BlockSpec((c, c), lambda bi, si: (0, 0)),
                  pl.BlockSpec((c, 1), lambda bi, si: (0, 0))],
        out_specs=pl.BlockSpec((None, c, tile_s), lambda bi, si: (bi, 0, si)),
        compiler_params=pltpu.CompilerParams(
            dimension_semantics=("parallel", "parallel")),
    )(x3, spec3, w, b)


# ---------------------------------------------------------------------------
# Kernel 5: LAST FNO layer (no GELU) fused with the decoder MLP
#           (Linear(width,128) -> ReLU -> Linear(128,1)) — one kernel, no HBM
#           round-trip of the [B, C, S] trunk.  Decoder matmuls feed the MXU
#           with bf16 operands (f32 accumulation).
# ---------------------------------------------------------------------------
def _fno_last_decoder_kernel(x_ref, spec_ref, cw_ref, cb_ref, w1_ref, b1_ref,
                             w2_ref, b2_ref, o_ref, *, cin):
    y = spec_ref[...] + cb_ref[...]                   # conv-add (last: no GELU)
    for ci in range(cin):
        y = y + cw_ref[:, ci:ci + 1] * x_ref[ci:ci + 1, :]
    # TODO(synk): decoder matmul operands cast to bf16 (f32 accumulate) per perf
    # review; introduces tiny numerical drift vs torch f32.
    h = jnp.dot(w1_ref[...], y.astype(jnp.bfloat16),
                preferred_element_type=jnp.float32) + b1_ref[...]   # [128, tile]
    h = jnp.maximum(h, 0.0)
    out = jnp.dot(w2_ref[...], h.astype(jnp.bfloat16),
                  preferred_element_type=jnp.float32) + b2_ref[...]  # [1, tile]
    o_ref[...] = out.astype(o_ref.dtype)


def fno_last_decoder(x3, spec3, cw, cb, w1, b1, w2, b2, tile_s):
    bsz, c, s = x3.shape
    hdim = w1.shape[0]
    kern = functools.partial(_fno_last_decoder_kernel, cin=c)
    xs = pl.BlockSpec((None, c, tile_s), lambda bi, si: (bi, 0, si))
    return pl.pallas_call(
        kern,
        out_shape=jax.ShapeDtypeStruct((bsz, 1, s), jnp.float32),
        grid=(bsz, s // tile_s),
        in_specs=[xs, xs,
                  pl.BlockSpec((c, c), lambda bi, si: (0, 0)),
                  pl.BlockSpec((c, 1), lambda bi, si: (0, 0)),
                  pl.BlockSpec((hdim, c), lambda bi, si: (0, 0)),
                  pl.BlockSpec((hdim, 1), lambda bi, si: (0, 0)),
                  pl.BlockSpec((1, hdim), lambda bi, si: (0, 0)),
                  pl.BlockSpec((1, 1), lambda bi, si: (0, 0))],
        out_specs=pl.BlockSpec((None, 1, tile_s), lambda bi, si: (bi, 0, si)),
        compiler_params=pltpu.CompilerParams(
            dimension_semantics=("parallel", "parallel")),
    )(x3, spec3, cw, cb, w1, b1, w2, b2)


# ---------------------------------------------------------------------------
# RS layer stand-in (ParabolicIntegrate_2d source not provided)
# ---------------------------------------------------------------------------
class RSLayerStandIn:
    """Heat-semigroup stand-in for ParabolicIntegrate_2d with matching shapes.

    TODO(synk): exact ParabolicIntegrate_2d model-feature integration is not
    reproducible without its source; this stand-in supplies I_c (propagate the
    initial condition) and a one-step smoothing operator.
    """

    def __init__(self, T, X, Y, eps):
        self.T, self.X, self.Y = T, X, Y
        self.eps = float(eps)
        self.tgrid = jnp.linspace(0.0, 1.0, T)
        kx = jnp.fft.fftfreq(X) * X
        ky = jnp.fft.fftfreq(Y) * Y
        self.k2 = (2.0 * jnp.pi) ** 2 * (kx[:, None] ** 2 + ky[None, :] ** 2)
        self.dt = 1.0 / T

    def I_c(self, U0):
        # [B, X, Y] -> [B, T, X, Y] : u(t) = e^{t*eps*Lap} U0 (periodic)
        U0h = jnp.fft.fft2(U0)
        mult = jnp.exp(-self.eps * self.tgrid[:, None, None] * self.k2[None])
        return jnp.real(jnp.fft.ifft2(U0h[:, None] * mult[None])).astype(jnp.float32)

    def smooth(self, f):
        # one heat-semigroup step, applied slice-wise over [B, T, X, Y]
        mult = jnp.exp(-self.eps * self.dt * self.k2)
        return jnp.real(jnp.fft.ifft2(jnp.fft.fft2(f) * mult)).astype(jnp.float32)


# ---------------------------------------------------------------------------
# rsnet_2d (Pallas version)
# ---------------------------------------------------------------------------
class RSNet2DPallas:
    def __init__(self, graph, T, X, Y, nu, key):
        self.graph = graph
        self.vkeys = [k for k in graph.keys() if k.endswith(']')]
        self.F = len(self.vkeys)                                   # 4
        self.FU0 = len([k for k in self.vkeys if 'u_0' in k])      # 2
        # TODO(synk): the fused feature kernels hard-code the stand-in feature
        # set (F=4 'normal' features, FU0=2 'U0' features).
        assert self.F == 4 and self.FU0 == 2, (self.F, self.FU0)
        self.T, self.X, self.Y = len(T), len(X), len(Y)
        self.rs = RSLayerStandIn(self.T, self.X, self.Y, nu)
        self.L = 4
        self.padding = 6
        self.modes1 = self.modes2 = self.modes3 = 8
        self.width = 8
        assert self.X >= 2 * self.modes1 and self.Y >= 2 * self.modes2
        assert (self.T + self.padding) // 2 + 1 >= self.modes3

        def u(k, shape, scale=0.1):
            return (jax.random.uniform(k, shape, jnp.float32) - 0.5) * 2.0 * scale

        keys = iter(jax.random.split(key, 80))
        C = self.width

        # down0: Linear(1+F, 32) -> ReLU -> Linear(32, 1)
        # w1 padded to 8 input columns (zero cols) so the in-kernel MXU dot can
        # consume the (8, tile) feature scratch directly.
        self.d0_w1p = jnp.pad(u(next(keys), (32, 1 + self.F)), ((0, 0), (0, 3)))
        self.d0_b1 = u(next(keys), (32, 1))
        self.d0_w2r = u(next(keys), (1, 32))
        self.d0_b2 = u(next(keys), (1, 1))
        # fc0: Linear(1+F+FU0+3, width)   (torch weight layout [width, 10])
        self.fc0_w = u(next(keys), (C, 1 + self.F + self.FU0 + 3))
        self.fc0_b = u(next(keys), (C, 1))
        # decoder: Linear(width, 128) -> ReLU -> Linear(128, 1)
        self.dec_w1 = u(next(keys), (128, C)).astype(jnp.bfloat16)
        self.dec_b1 = u(next(keys), (128, 1))
        self.dec_w2 = u(next(keys), (1, 128)).astype(jnp.bfloat16)
        self.dec_b2 = u(next(keys), (1, 1))

        # FNO layers: spectral weights packed ONCE at init (stack the 4 corner
        # blocks, split real/imag).  Plain wr/wi (2 streams) — no Karatsuba
        # pre-sums — so weight DMA/VMEM per layer is 1/3 smaller.
        m1, m2, m3 = self.modes1, self.modes2, self.modes3
        M = m1 * m2 * m3
        self.m4 = 4 * M
        self.tile_m = _pick_tile(self.m4, max_tile=512)
        scale = 1.0 / (C * C)
        self.fno_params = []
        for _ in range(self.L):
            corners = []
            for _c in range(4):
                kr, ki = next(keys), next(keys)
                corners.append(
                    scale * jax.random.uniform(kr, (C, C, m1, m2, m3))
                    + 1j * scale * jax.random.uniform(ki, (C, C, m1, m2, m3)))
            w_all = jnp.stack(corners, axis=2).reshape(C, C, self.m4)
            self.fno_params.append({
                'wr': jnp.real(w_all).astype(jnp.float32),
                'wi': jnp.imag(w_all).astype(jnp.float32),
                # 1x1 conv: torch Conv3d weight [Cout, Cin, 1, 1, 1] -> [Cout, Cin]
                'cw': u(next(keys), (C, C)),
                'cb': u(next(keys), (C, 1)),
            })

        # grid channels (t, x, y), built ONCE at init as a batch-independent
        # [3, X*Y*T] constant in the trunk (X, Y, T) flatten order.
        T_, X_, Y_ = self.T, self.X, self.Y
        tlin = jnp.linspace(0.0, 1.0, T_)
        xlin = jnp.linspace(0.0, 1.0, X_)
        ylin = jnp.linspace(0.0, 1.0, Y_)
        gt = jnp.broadcast_to(tlin[None, None, :], (X_, Y_, T_)).reshape(-1)
        gx = jnp.broadcast_to(xlin[:, None, None], (X_, Y_, T_)).reshape(-1)
        gy = jnp.broadcast_to(ylin[None, :, None], (X_, Y_, T_)).reshape(-1)
        self.grid_rows = jnp.stack([gt, gx, gy], axis=0).astype(jnp.float32)

    # ------------------------------------------------------------------ FNO --
    def spectral_conv(self, x, p):
        # x: [B, C, X, Y, Tp] real f32
        B, C, X, Y, Tp = x.shape
        m1, m2, m3 = self.modes1, self.modes2, self.modes3
        Trf = Tp // 2 + 1
        x_ft = jnp.fft.rfftn(x, axes=(-3, -2, -1))               # [B,C,X,Y,Trf]
        corners = jnp.stack(
            [x_ft[:, :, :m1, :m2, :m3],
             x_ft[:, :, -m1:, :m2, :m3],
             x_ft[:, :, :m1, -m2:, :m3],
             x_ft[:, :, -m1:, -m2:, :m3]], axis=2)               # [B,C,4,m1,m2,m3]
        xs = corners.reshape(B, C, self.m4)
        out_r, out_i = spectral_cmul(
            jnp.real(xs).astype(jnp.float32), jnp.imag(xs).astype(jnp.float32),
            p['wr'], p['wi'], self.tile_m)                       # Pallas kernel 3
        out = (out_r + 1j * out_i).astype(jnp.complex64).reshape(B, C, 4, m1, m2, m3)
        # Re-assemble the rfft corner layout by concatenation (no zeros + scatter).
        zx = jnp.zeros((B, C, X - 2 * m1, m2, m3), jnp.complex64)
        y_lo = jnp.concatenate([out[:, :, 0], zx, out[:, :, 1]], axis=2)   # [B,C,X,m2,m3]
        y_hi = jnp.concatenate([out[:, :, 2], zx, out[:, :, 3]], axis=2)
        zy = jnp.zeros((B, C, X, Y - 2 * m2, m3), jnp.complex64)
        out_ft = jnp.concatenate([y_lo, zy, y_hi], axis=3)                 # [B,C,X,Y,m3]
        out_ft = jnp.pad(out_ft, ((0, 0),) * 4 + ((0, Trf - m3),))
        return jnp.fft.irfftn(out_ft, s=(X, Y, Tp), axes=(-3, -2, -1)).astype(jnp.float32)

    def fno_layer(self, x, p, tile_sp):
        B, C, X, Y, Tp = x.shape
        spec = self.spectral_conv(x, p)
        S = X * Y * Tp
        y = fno_pointwise(x.reshape(B, C, S), spec.reshape(B, C, S),
                          p['cw'], p['cb'], tile_sp)             # Pallas kernel 4
        return y.reshape(B, C, X, Y, Tp)

    def fno_last_plus_decoder(self, x, p, tile_sp):
        B, C, X, Y, Tp = x.shape
        spec = self.spectral_conv(x, p)
        S = X * Y * Tp
        return fno_last_decoder(x.reshape(B, C, S), spec.reshape(B, C, S),
                                p['cw'], p['cb'],
                                self.dec_w1, self.dec_b1,
                                self.dec_w2, self.dec_b2, tile_sp)  # kernel 5

    # -------------------------------------------------------------- forward --
    def __call__(self, U0, W, Feature_Xi=None):
        B = U0.shape[0]
        T, X, Y, C = self.T, self.X, self.Y, self.width
        N = B * T * X * Y
        tile_n = _pick_tile(N)
        S0 = X * Y * T
        tile_s0 = _pick_tile(S0)

        U0t = self.rs.I_c(U0)                                    # [B,T,X,Y]
        if Feature_Xi is None:
            Ixi = self.rs.smooth(W)
        else:
            # TODO(synk): stand-in only consumes the first precomputed Xi feature.
            Ixi = Feature_Xi[..., 0].astype(jnp.float32)
        Iu0 = self.rs.smooth(U0t)

        lat_f = U0t.reshape(1, N)
        ixi_f = Ixi.reshape(1, N)
        iu0_f = Iu0.reshape(1, N)

        # fused: 'normal' features -> down0 MLP (MXU)             (Pallas kernel 1)
        u0_new = feat_down0(lat_f, ixi_f, iu0_f, self.d0_w1p, self.d0_b1,
                            self.d0_w2r, self.d0_b2, tile_n)      # [1, N]
        Iu0n = self.rs.smooth(u0_new.reshape(B, T, X, Y))         # I[u0_new]

        # Permute the 4 field inputs to the trunk (X, Y, T) flatten order so
        # kernel 2 emits the FNO trunk layout directly (no 8N-float transpose).
        tox = lambda a: jnp.transpose(a, (0, 2, 3, 1)).reshape(B, 1, S0)

        # fused: 'U0' features + O1 features + grid concat + fc0  (Pallas kernel 2)
        R1 = feat_fc0(tox(Iu0n), tox(Ixi), tox(U0t), tox(Iu0),
                      self.grid_rows, self.fc0_w, self.fc0_b, tile_s0)  # [B, C, S0]
        R1 = R1.reshape(B, C, X, Y, T)
        R1 = jnp.pad(R1, ((0, 0),) * 4 + ((0, self.padding),))   # pad T -> Tp

        Tp = T + self.padding
        tile_sp = _pick_tile(X * Y * Tp)
        # FNO trunk stays [B, C, X, Y, Tp]; no per-layer transposes.
        for l in range(self.L - 1):
            R1 = self.fno_layer(R1, self.fno_params[l], tile_sp)
        # last FNO layer (no GELU) fused with the decoder MLP     (Pallas kernel 5)
        out = self.fno_last_plus_decoder(R1, self.fno_params[self.L - 1], tile_sp)
        out = out.reshape(B, X, Y, Tp)[..., :T]                   # crop the pad (tiny slab)
        return jnp.transpose(out, (0, 3, 1, 2))                   # [B, T, X, Y]


# ---------------------------------------------------------------------------
# main
# ---------------------------------------------------------------------------
if __name__ == "__main__":
    # graph with 4 "vkeys" (ending in ']'), 2 of which contain 'u_0'
    graph = {
        'xi': None, 'u_0': None,
        'I[xi]': None, 'I[xi]I[xi]': None, 'I[u_0]': None, 'I[xi]I[u_0]': None,
    }
    T = jnp.linspace(0.0, 1.0, 8)
    Xg = jnp.linspace(0.0, 1.0, 16)
    Yg = jnp.linspace(0.0, 1.0, 16)

    key = jax.random.PRNGKey(0)
    kparam, ku0, kw = jax.random.split(key, 3)

    model = RSNet2DPallas(graph, T, Xg, Yg, nu=0.1, key=kparam)

    U0 = jax.random.normal(ku0, (2, 16, 16), jnp.float32)        # [B, X, Y]
    W = jax.random.normal(kw, (2, 8, 16, 16), jnp.float32)       # [B, T, X, Y]

    forward = jax.jit(lambda u0, w: model(u0, w))
    out = jax.block_until_ready(forward(U0, W))
    assert out.shape == (2, 8, 16, 16), out.shape
    assert bool(jnp.all(jnp.isfinite(out)))
    print("KERNEL_OK")
</pallas_src>

<mosaic_0001>
module attributes {stable_mosaic.version = 11 : i64} {
  func.func @_feat_down0_kernel(%arg0: i32, %arg1: memref<1x1024xf32, #tpu.memory_space<vmem>>, %arg2: memref<1x1024xf32, #tpu.memory_space<vmem>>, %arg3: memref<1x1024xf32, #tpu.memory_space<vmem>>, %arg4: memref<32x8xf32, #tpu.memory_space<vmem>>, %arg5: memref<32x1xf32, #tpu.memory_space<vmem>>, %arg6: memref<1x32xf32, #tpu.memory_space<vmem>>, %arg7: memref<1x1xf32, #tpu.memory_space<vmem>>, %arg8: memref<1x1024xf32, #tpu.memory_space<vmem>>, %arg9: memref<8x1024xf32, #tpu.memory_space<vmem>>) attributes {dimension_semantics = [#tpu.dimension_semantics<parallel>], iteration_bounds = array<i64: 4>, scalar_prefetch = 0 : i64, scratch_operands = 1 : i64, tpu.core_type = #tpu.core_type<tc>, window_params = [{transform_indices = @transform_0, window_bounds = array<i64: 1, 1024>}, {transform_indices = @transform_1, window_bounds = array<i64: 1, 1024>}, {transform_indices = @transform_2, window_bounds = array<i64: 1, 1024>}, {pipeline_mode = #tpu.pipeline_mode<synchronous>, transform_indices = @transform_3, window_bounds = array<i64: 32, 8>}, {pipeline_mode = #tpu.pipeline_mode<synchronous>, transform_indices = @transform_4, window_bounds = array<i64: 32, 1>}, {pipeline_mode = #tpu.pipeline_mode<synchronous>, transform_indices = @transform_5, window_bounds = array<i64: 1, 32>}, {pipeline_mode = #tpu.pipeline_mode<synchronous>, transform_indices = @transform_6, window_bounds = array<i64: 1, 1>}, {transform_indices = @transform_7, window_bounds = array<i64: 1, 1024>}]} {
    %c0 = arith.constant 0 : index
    %c0_0 = arith.constant 0 : index
    %0 = vector.load %arg1[%c0, %c0_0] : memref<1x1024xf32, #tpu.memory_space<vmem>>, vector<1x1024xf32>
    %c0_1 = arith.constant 0 : index
    %c0_2 = arith.constant 0 : index
    %1 = vector.load %arg2[%c0_1, %c0_2] : memref<1x1024xf32, #tpu.memory_space<vmem>>, vector<1x1024xf32>
    %c0_3 = arith.constant 0 : index
    %c0_4 = arith.constant 0 : index
    %2 = vector.load %arg3[%c0_3, %c0_4] : memref<1x1024xf32, #tpu.memory_space<vmem>>, vector<1x1024xf32>
    %c0_5 = arith.constant 0 : index
    %c0_6 = arith.constant 0 : index
    %3 = vector.load %arg9[%c0_5, %c0_6] : memref<8x1024xf32, #tpu.memory_space<vmem>>, vector<1x1024xf32>
    tpu.vector_store %arg9[%c0_5, %c0_6], %0 {strides = array<i32>} : memref<8x1024xf32, #tpu.memory_space<vmem>>, vector<1x1024xf32>,
    %c1 = arith.constant 1 : index
    %c0_7 = arith.constant 0 : index
    %4 = vector.load %arg9[%c1, %c0_7] : memref<8x1024xf32, #tpu.memory_space<vmem>>, vector<1x1024xf32>
    tpu.vector_store %arg9[%c1, %c0_7], %1 {strides = array<i32>} : memref<8x1024xf32, #tpu.memory_space<vmem>>, vector<1x1024xf32>,
    %5 = arith.mulf %1, %1 : vector<1x1024xf32>
    %c2 = arith.constant 2 : index
    %c0_8 = arith.constant 0 : index
    %6 = vector.load %arg9[%c2, %c0_8] : memref<8x1024xf32, #tpu.memory_space<vmem>>, vector<1x1024xf32>
    tpu.vector_store %arg9[%c2, %c0_8], %5 {strides = array<i32>} : memref<8x1024xf32, #tpu.memory_space<vmem>>, vector<1x1024xf32>,
    %c3 = arith.constant 3 : index
    %c0_9 = arith.constant 0 : index
    %7 = vector.load %arg9[%c3, %c0_9] : memref<8x1024xf32, #tpu.memory_space<vmem>>, vector<1x1024xf32>
    tpu.vector_store %arg9[%c3, %c0_9], %2 {strides = array<i32>} : memref<8x1024xf32, #tpu.memory_space<vmem>>, vector<1x1024xf32>,
    %8 = arith.mulf %1, %2 : vector<1x1024xf32>
    %c4 = arith.constant 4 : index
    %c0_10 = arith.constant 0 : index
    %9 = vector.load %arg9[%c4, %c0_10] : memref<8x1024xf32, #tpu.memory_space<vmem>>, vector<1x1024xf32>
    tpu.vector_store %arg9[%c4, %c0_10], %8 {strides = array<i32>} : memref<8x1024xf32, #tpu.memory_space<vmem>>, vector<1x1024xf32>,
    %cst = arith.constant 0.000000e+00 : f32
    %10 = vector.broadcast %cst : f32 to vector<3x1024xf32>
    %c5 = arith.constant 5 : index
    %c0_11 = arith.constant 0 : index
    %11 = vector.load %arg9[%c5, %c0_11] : memref<8x1024xf32, #tpu.memory_space<vmem>>, vector<3x1024xf32>
    tpu.vector_store %arg9[%c5, %c0_11], %10 {strides = array<i32>} : memref<8x1024xf32, #tpu.memory_space<vmem>>, vector<3x1024xf32>,
    %c0_12 = arith.constant 0 : index
    %c0_13 = arith.constant 0 : index
    %12 = vector.load %arg4[%c0_12, %c0_13] : memref<32x8xf32, #tpu.memory_space<vmem>>, vector<32x8xf32>
    %c0_14 = arith.constant 0 : index
    %c0_15 = arith.constant 0 : index
    %13 = vector.load %arg9[%c0_14, %c0_15] : memref<8x1024xf32, #tpu.memory_space<vmem>>, vector<8x1024xf32>
    %cst_16 = arith.constant dense<0.000000e+00> : vector<32x1024xf32>
    %14 = tpu.matmul %12, %13, %cst_16 {dimension_numbers = #tpu.dot_dimension_numbers<[1], [0], [0], [1], [0, 0, 1, 1], [], []>} : vector<32x8xf32>, vector<8x1024xf32>, vector<32x1024xf32> -> vector<32x1024xf32>
    %c0_17 = arith.constant 0 : index
    %c0_18 = arith.constant 0 : index
    %15 = vector.load %arg5[%c0_17, %c0_18] : memref<32x1xf32, #tpu.memory_space<vmem>>, vector<32x1xf32>
    %16 = vector.broadcast %15 : vector<32x1xf32> to vector<32x1024xf32>
    %17 = arith.addf %14, %16 : vector<32x1024xf32>
    %cst_19 = arith.constant 0.000000e+00 : f32
    %18 = vector.broadcast %cst_19 : f32 to vector<32x1024xf32>
    %19 = arith.maximumf %17, %18 : vector<32x1024xf32>
    %c0_20 = arith.constant 0 : index
    %c0_21 = arith.constant 0 : index
    %20 = vector.load %arg6[%c0_20, %c0_21] : memref<1x32xf32, #tpu.memory_space<vmem>>, vector<1x32xf32>
    %cst_22 = arith.constant dense<0.000000e+00> : vector<1x1024xf32>
    %21 = tpu.matmul %20, %19, %cst_22 {dimension_numbers = #tpu.dot_dimension_numbers<[1], [0], [0], [1], [0, 0, 1, 1], [], []>} : vector<1x32xf32>, vector<32x1024xf32>, vector<1x1024xf32> -> vector<1x1024xf32>
    %c0_23 = arith.constant 0 : index
    %c0_24 = arith.constant 0 : index
    %22 = vector.load %arg7[%c0_23, %c0_24] : memref<1x1xf32, #tpu.memory_space<vmem>>, vector<1x1xf32>
    %23 = vector.broadcast %22 : vector<1x1xf32> to vector<1x1024xf32>
    %24 = arith.addf %21, %23 : vector<1x1024xf32>
    %c0_25 = arith.constant 0 : index
    %c0_26 = arith.constant 0 : index
    %25 = vector.load %arg8[%c0_25, %c0_26] : memref<1x1024xf32, #tpu.memory_space<vmem>>, vector<1x1024xf32>
    tpu.vector_store %arg8[%c0_25, %c0_26], %24 {strides = array<i32>} : memref<1x1024xf32, #tpu.memory_space<vmem>>, vector<1x1024xf32>,
    return
  }
  func.func @transform_0(%arg0: i32) -> (i32, i32) {
    %c0_i32 = arith.constant 0 : i32
    %c0_i32_0 = arith.constant 0 : i32
    return %c0_i32, %arg0 : i32, i32
  }
  func.func @transform_1(%arg0: i32) -> (i32, i32) {
    %c0_i32 = arith.constant 0 : i32
    %c0_i32_0 = arith.constant 0 : i32
    return %c0_i32, %arg0 : i32, i32
  }
  func.func @transform_2(%arg0: i32) -> (i32, i32) {
    %c0_i32 = arith.constant 0 : i32
    %c0_i32_0 = arith.constant 0 : i32
    return %c0_i32, %arg0 : i32, i32
  }
  func.func @transform_3(%arg0: i32) -> (i32, i32) {
    %c0_i32 = arith.constant 0 : i32
    %c0_i32_0 = arith.constant 0 : i32
    %c0_i32_1 = arith.constant 0 : i32
    return %c0_i32, %c0_i32_0 : i32, i32
  }
  func.func @transform_4(%arg0: i32) -> (i32, i32) {
    %c0_i32 = arith.constant 0 : i32
    %c0_i32_0 = arith.constant 0 : i32
    %c0_i32_1 = arith.constant 0 : i32
    return %c0_i32, %c0_i32_0 : i32, i32
  }
  func.func @transform_5(%arg0: i32) -> (i32, i32) {
    %c0_i32 = arith.constant 0 : i32
    %c0_i32_0 = arith.constant 0 : i32
    %c0_i32_1 = arith.constant 0 : i32
    return %c0_i32, %c0_i32_0 : i32, i32
  }
  func.func @transform_6(%arg0: i32) -> (i32, i32) {
    %c0_i32 = arith.constant 0 : i32
    %c0_i32_0 = arith.constant 0 : i32
    %c0_i32_1 = arith.constant 0 : i32
    return %c0_i32, %c0_i32_0 : i32, i32
  }
  func.func @transform_7(%arg0: i32) -> (i32, i32) {
    %c0_i32 = arith.constant 0 : i32
    %c0_i32_0 = arith.constant 0 : i32
    return %c0_i32, %arg0 : i32, i32
  }
}

module attributes {stable_mosaic.version = 11 : i64} {
  func.func @_feat_fc0_kernel(%arg0: i32, %arg1: i32, %arg2: memref<1x1x512xf32, #tpu.memory_space<vmem>>, %arg3: memref<1x1x512xf32, #tpu.memory_space<vmem>>, %arg4: memref<1x1x512xf32, #tpu.memory_space<vmem>>, %arg5: memref<1x1x512xf32, #tpu.memory_space<vmem>>, %arg6: memref<3x512xf32, #tpu.memory_space<vmem>>, %arg7: memref<8x10xf32, #tpu.memory_space<vmem>>, %arg8: memref<8x1xf32, #tpu.memory_space<vmem>>, %arg9: memref<1x8x512xf32, #tpu.memory_space<vmem>>) attributes {dimension_semantics = [#tpu.dimension_semantics<parallel>, #tpu.dimension_semantics<parallel>], iteration_bounds = array<i64: 2, 4>, scalar_prefetch = 0 : i64, scratch_operands = 0 : i64, tpu.core_type = #tpu.core_type<tc>, window_params = [{transform_indices = @transform_0, window_bounds = array<i64: 1, 1, 512>}, {transform_indices = @transform_1, window_bounds = array<i64: 1, 1, 512>}, {transform_indices = @transform_2, window_bounds = array<i64: 1, 1, 512>}, {transform_indices = @transform_3, window_bounds = array<i64: 1, 1, 512>}, {transform_indices = @transform_4, window_bounds = array<i64: 3, 512>}, {pipeline_mode = #tpu.pipeline_mode<synchronous>, transform_indices = @transform_5, window_bounds = array<i64: 8, 10>}, {pipeline_mode = #tpu.pipeline_mode<synchronous>, transform_indices = @transform_6, window_bounds = array<i64: 8, 1>}, {transform_indices = @transform_7, window_bounds = array<i64: 1, 8, 512>}]} {
    %c0 = arith.constant 0 : index
    %c0_0 = arith.constant 0 : index
    %c0_1 = arith.constant 0 : index
    %0 = vector.load %arg2[%c0, %c0_0, %c0_1] : memref<1x1x512xf32, #tpu.memory_space<vmem>>, vector<1x1x512xf32>
    %1 = vector.shape_cast %0 : vector<1x1x512xf32> to vector<1x512xf32>
    %c0_2 = arith.constant 0 : index
    %c0_3 = arith.constant 0 : index
    %c0_4 = arith.constant 0 : index
    %2 = vector.load %arg3[%c0_2, %c0_3, %c0_4] : memref<1x1x512xf32, #tpu.memory_space<vmem>>, vector<1x1x512xf32>
    %3 = vector.shape_cast %2 : vector<1x1x512xf32> to vector<1x512xf32>
    %c0_5 = arith.constant 0 : index
    %c0_6 = arith.constant 0 : index
    %c0_7 = arith.constant 0 : index
    %4 = vector.load %arg4[%c0_5, %c0_6, %c0_7] : memref<1x1x512xf32, #tpu.memory_space<vmem>>, vector<1x1x512xf32>
    %5 = vector.shape_cast %4 : vector<1x1x512xf32> to vector<1x512xf32>
    %c0_8 = arith.constant 0 : index
    %c0_9 = arith.constant 0 : index
    %c0_10 = arith.constant 0 : index
    %6 = vector.load %arg5[%c0_8, %c0_9, %c0_10] : memref<1x1x512xf32, #tpu.memory_space<vmem>>, vector<1x1x512xf32>
    %7 = vector.shape_cast %6 : vector<1x1x512xf32> to vector<1x512xf32>
    %c0_11 = arith.constant 0 : index
    %c0_12 = arith.constant 0 : index
    %8 = vector.load %arg6[%c0_11, %c0_12] : memref<3x512xf32, #tpu.memory_space<vmem>>, vector<1x512xf32>
    %c1 = arith.constant 1 : index
    %c0_13 = arith.constant 0 : index
    %9 = vector.load %arg6[%c1, %c0_13] : memref<3x512xf32, #tpu.memory_space<vmem>>, vector<1x512xf32>
    %c2 = arith.constant 2 : index
    %c0_14 = arith.constant 0 : index
    %10 = vector.load %arg6[%c2, %c0_14] : memref<3x512xf32, #tpu.memory_space<vmem>>, vector<1x512xf32>
    %11 = arith.mulf %3, %1 : vector<1x512xf32>
    %12 = arith.mulf %3, %3 : vector<1x512xf32>
    %13 = arith.mulf %3, %7 : vector<1x512xf32>
    %c0_15 = arith.constant 0 : index
    %c0_16 = arith.constant 0 : index
    %14 = vector.load %arg8[%c0_15, %c0_16] : memref<8x1xf32, #tpu.memory_space<vmem>>, vector<8x1xf32>
    %c0_17 = arith.constant 0 : index
    %c0_18 = arith.constant 0 : index
    %15 = vector.load %arg7[%c0_17, %c0_18] : memref<8x10xf32, #tpu.memory_space<vmem>>, vector<8x1xf32>
    %16 = vector.broadcast %15 : vector<8x1xf32> to vector<8x512xf32>
    %17 = vector.broadcast %1 : vector<1x512xf32> to vector<8x512xf32>
    %18 = arith.mulf %16, %17 : vector<8x512xf32>
    %19 = vector.broadcast %14 : vector<8x1xf32> to vector<8x512xf32>
    %20 = arith.addf %19, %18 : vector<8x512xf32>
    %c0_19 = arith.constant 0 : index
    %c1_20 = arith.constant 1 : index
    %21 = vector.load %arg7[%c0_19, %c1_20] : memref<8x10xf32, #tpu.memory_space<vmem>>, vector<8x1xf32>
    %22 = vector.broadcast %21 : vector<8x1xf32> to vector<8x512xf32>
    %23 = vector.broadcast %11 : vector<1x512xf32> to vector<8x512xf32>
    %24 = arith.mulf %22, %23 : vector<8x512xf32>
    %25 = arith.addf %20, %24 : vector<8x512xf32>
    %c0_21 = arith.constant 0 : index
    %c2_22 = arith.constant 2 : index
    %26 = vector.load %arg7[%c0_21, %c2_22] : memref<8x10xf32, #tpu.memory_space<vmem>>, vector<8x1xf32>
    %27 = vector.broadcast %26 : vector<8x1xf32> to vector<8x512xf32>
    %28 = vector.broadcast %5 : vector<1x512xf32> to vector<8x512xf32>
    %29 = arith.mulf %27, %28 : vector<8x512xf32>
    %30 = arith.addf %25, %29 : vector<8x512xf32>
    %c0_23 = arith.constant 0 : index
    %c3 = arith.constant 3 : index
    %31 = vector.load %arg7[%c0_23, %c3] : memref<8x10xf32, #tpu.memory_space<vmem>>, vector<8x1xf32>
    %32 = vector.broadcast %31 : vector<8x1xf32> to vector<8x512xf32>
    %33 = vector.broadcast %3 : vector<1x512xf32> to vector<8x512xf32>
    %34 = arith.mulf %32, %33 : vector<8x512xf32>
    %35 = arith.addf %30, %34 : vector<8x512xf32>
    %c0_24 = arith.constant 0 : index
    %c4 = arith.constant 4 : index
    %36 = vector.load %arg7[%c0_24, %c4] : memref<8x10xf32, #tpu.memory_space<vmem>>, vector<8x1xf32>
    %37 = vector.broadcast %36 : vector<8x1xf32> to vector<8x512xf32>
    %38 = vector.broadcast %12 : vector<1x512xf32> to vector<8x512xf32>
    %39 = arith.mulf %37, %38 : vector<8x512xf32>
    %40 = arith.addf %35, %39 : vector<8x512xf32>
    %c0_25 = arith.constant 0 : index
    %c5 = arith.constant 5 : index
    %41 = vector.load %arg7[%c0_25, %c5] : memref<8x10xf32, #tpu.memory_space<vmem>>, vector<8x1xf32>
    %42 = vector.broadcast %41 : vector<8x1xf32> to vector<8x512xf32>
    %43 = vector.broadcast %7 : vector<1x512xf32> to vector<8x512xf32>
    %44 = arith.mulf %42, %43 : vector<8x512xf32>
    %45 = arith.addf %40, %44 : vector<8x512xf32>
    %c0_26 = arith.constant 0 : index
    %c6 = arith.constant 6 : index
    %46 = vector.load %arg7[%c0_26, %c6] : memref<8x10xf32, #tpu.memory_space<vmem>>, vector<8x1xf32>
    %47 = vector.broadcast %46 : vector<8x1xf32> to vector<8x512xf32>
    %48 = vector.broadcast %13 : vector<1x512xf32> to vector<8x512xf32>
    %49 = arith.mulf %47, %48 : vector<8x512xf32>
    %50 = arith.addf %45, %49 : vector<8x512xf32>
    %c0_27 = arith.constant 0 : index
    %c7 = arith.constant 7 : index
    %51 = vector.load %arg7[%c0_27, %c7] : memref<8x10xf32, #tpu.memory_space<vmem>>, vector<8x1xf32>
    %52 = vector.broadcast %51 : vector<8x1xf32> to vector<8x512xf32>
    %53 = vector.broadcast %8 : vector<1x512xf32> to vector<8x512xf32>
    %54 = arith.mulf %52, %53 : vector<8x512xf32>
    %55 = arith.addf %50, %54 : vector<8x512xf32>
    %c0_28 = arith.constant 0 : index
    %c8 = arith.constant 8 : index
    %56 = vector.load %arg7[%c0_28, %c8] : memref<8x10xf32, #tpu.memory_space<vmem>>, vector<8x1xf32>
    %57 = vector.broadcast %56 : vector<8x1xf32> to vector<8x512xf32>
    %58 = vector.broadcast %9 : vector<1x512xf32> to vector<8x512xf32>
    %59 = arith.mulf %57, %58 : vector<8x512xf32>
    %60 = arith.addf %55, %59 : vector<8x512xf32>
    %c0_29 = arith.constant 0 : index
    %c9 = arith.constant 9 : index
    %61 = vector.load %arg7[%c0_29, %c9] : memref<8x10xf32, #tpu.memory_space<vmem>>, vector<8x1xf32>
    %62 = vector.broadcast %61 : vector<8x1xf32> to vector<8x512xf32>
    %63 = vector.broadcast %10 : vector<1x512xf32> to vector<8x512xf32>
    %64 = arith.mulf %62, %63 : vector<8x512xf32>
    %65 = arith.addf %60, %64 : vector<8x512xf32>
    %c0_30 = arith.constant 0 : index
    %c0_31 = arith.constant 0 : index
    %c0_32 = arith.constant 0 : index
    %66 = vector.load %arg9[%c0_30, %c0_31, %c0_32] : memref<1x8x512xf32, #tpu.memory_space<vmem>>, vector<1x8x512xf32>
    %67 = vector.shape_cast %66 : vector<1x8x512xf32> to vector<8x512xf32>
    %68 = vector.shape_cast %65 : vector<8x512xf32> to vector<1x8x512xf32>
    tpu.vector_store %arg9[%c0_30, %c0_31, %c0_32], %68 {strides = array<i32>} : memref<1x8x512xf32, #tpu.memory_space<vmem>>, vector<1x8x512xf32>,
    return
  }
  func.func @transform_0(%arg0: i32, %arg1: i32) -> (i32, i32, i32) {
    %c0_i32 = arith.constant 0 : i32
    %c0_i32_0 = arith.constant 0 : i32
    return %arg0, %c0_i32, %arg1 : i32, i32, i32
  }
  func.func @transform_1(%arg0: i32, %arg1: i32) -> (i32, i32, i32) {
    %c0_i32 = arith.constant 0 : i32
    %c0_i32_0 = arith.constant 0 : i32
    return %arg0, %c0_i32, %arg1 : i32, i32, i32
  }
  func.func @transform_2(%arg0: i32, %arg1: i32) -> (i32, i32, i32) {
    %c0_i32 = arith.constant 0 : i32
    %c0_i32_0 = arith.constant 0 : i32
    return %arg0, %c0_i32, %arg1 : i32, i32, i32
  }
  func.func @transform_3(%arg0: i32, %arg1: i32) -> (i32, i32, i32) {
    %c0_i32 = arith.constant 0 : i32
    %c0_i32_0 = arith.constant 0 : i32
    return %arg0, %c0_i32, %arg1 : i32, i32, i32
  }
  func.func @transform_4(%arg0: i32, %arg1: i32) -> (i32, i32) {
    %c0_i32 = arith.constant 0 : i32
    %c0_i32_0 = arith.constant 0 : i32
    return %c0_i32, %arg1 : i32, i32
  }
  func.func @transform_5(%arg0: i32, %arg1: i32) -> (i32, i32) {
    %c0_i32 = arith.constant 0 : i32
    %c0_i32_0 = arith.constant 0 : i32
    %c0_i32_1 = arith.constant 0 : i32
    return %c0_i32, %c0_i32_0 : i32, i32
  }
  func.func @transform_6(%arg0: i32, %arg1: i32) -> (i32, i32) {
    %c0_i32 = arith.constant 0 : i32
    %c0_i32_0 = arith.constant 0 : i32
    %c0_i32_1 = arith.constant 0 : i32
    return %c0_i32, %c0_i32_0 : i32, i32
  }
  func.func @transform_7(%arg0: i32, %arg1: i32) -> (i32, i32, i32) {
    %c0_i32 = arith.constant 0 : i32
    %c0_i32_0 = arith.constant 0 : i32
    return %arg0, %c0_i32, %arg1 : i32, i32, i32
  }
}

module attributes {stable_mosaic.version = 11 : i64} {
  func.func @_spectral_cmul_kernel(%arg0: i32, %arg1: i32, %arg2: memref<1x8x512xf32, #tpu.memory_space<vmem>>, %arg3: memref<1x8x512xf32, #tpu.memory_space<vmem>>, %arg4: memref<8x8x512xf32, #tpu.memory_space<vmem>>, %arg5: memref<8x8x512xf32, #tpu.memory_space<vmem>>, %arg6: memref<1x8x512xf32, #tpu.memory_space<vmem>>, %arg7: memref<1x8x512xf32, #tpu.memory_space<vmem>>) attributes {dimension_semantics = [#tpu.dimension_semantics<parallel>, #tpu.dimension_semantics<parallel>], iteration_bounds = array<i64: 4, 2>, scalar_prefetch = 0 : i64, scratch_operands = 0 : i64, tpu.core_type = #tpu.core_type<tc>, window_params = [{transform_indices = @transform_0, window_bounds = array<i64: 1, 8, 512>}, {transform_indices = @transform_1, window_bounds = array<i64: 1, 8, 512>}, {transform_indices = @transform_2, window_bounds = array<i64: 8, 8, 512>}, {transform_indices = @transform_3, window_bounds = array<i64: 8, 8, 512>}, {transform_indices = @transform_4, window_bounds = array<i64: 1, 8, 512>}, {transform_indices = @transform_5, window_bounds = array<i64: 1, 8, 512>}]} {
    %cst = arith.constant 0.000000e+00 : f32
    %0 = vector.broadcast %cst : f32 to vector<8x512xf32>
    %cst_0 = arith.constant 0.000000e+00 : f32
    %1 = vector.broadcast %cst_0 : f32 to vector<8x512xf32>
    %c0 = arith.constant 0 : index
    %c0_1 = arith.constant 0 : index
    %c0_2 = arith.constant 0 : index
    %2 = vector.load %arg2[%c0, %c0_1, %c0_2] : memref<1x8x512xf32, #tpu.memory_space<vmem>>, vector<1x1x512xf32>
    %3 = vector.shape_cast %2 : vector<1x1x512xf32> to vector<1x512xf32>
    %c0_3 = arith.constant 0 : index
    %c0_4 = arith.constant 0 : index
    %c0_5 = arith.constant 0 : index
    %4 = vector.load %arg3[%c0_3, %c0_4, %c0_5] : memref<1x8x512xf32, #tpu.memory_space<vmem>>, vector<1x1x512xf32>
    %5 = vector.shape_cast %4 : vector<1x1x512xf32> to vector<1x512xf32>
    %c0_6 = arith.constant 0 : index
    %c0_7 = arith.constant 0 : index
    %c0_8 = arith.constant 0 : index
    %6 = vector.load %arg4[%c0_6, %c0_7, %c0_8] : memref<8x8x512xf32, #tpu.memory_space<vmem>>, vector<1x8x512xf32>
    %7 = vector.shape_cast %6 : vector<1x8x512xf32> to vector<8x512xf32>
    %c0_9 = arith.constant 0 : index
    %c0_10 = arith.constant 0 : index
    %c0_11 = arith.constant 0 : index
    %8 = vector.load %arg5[%c0_9, %c0_10, %c0_11] : memref<8x8x512xf32, #tpu.memory_space<vmem>>, vector<1x8x512xf32>
    %9 = vector.shape_cast %8 : vector<1x8x512xf32> to vector<8x512xf32>
    %10 = vector.broadcast %3 : vector<1x512xf32> to vector<8x512xf32>
    %11 = arith.mulf %7, %10 : vector<8x512xf32>
    %12 = vector.broadcast %5 : vector<1x512xf32> to vector<8x512xf32>
    %13 = arith.mulf %9, %12 : vector<8x512xf32>
    %14 = arith.subf %11, %13 : vector<8x512xf32>
    %15 = arith.addf %0, %14 : vector<8x512xf32>
    %16 = vector.broadcast %5 : vector<1x512xf32> to vector<8x512xf32>
    %17 = arith.mulf %7, %16 : vector<8x512xf32>
    %18 = vector.broadcast %3 : vector<1x512xf32> to vector<8x512xf32>
    %19 = arith.mulf %9, %18 : vector<8x512xf32>
    %20 = arith.addf %17, %19 : vector<8x512xf32>
    %21 = arith.addf %1, %20 : vector<8x512xf32>
    %c0_12 = arith.constant 0 : index
    %c1 = arith.constant 1 : index
    %c0_13 = arith.constant 0 : index
    %22 = vector.load %arg2[%c0_12, %c1, %c0_13] : memref<1x8x512xf32, #tpu.memory_space<vmem>>, vector<1x1x512xf32>
    %23 = vector.shape_cast %22 : vector<1x1x512xf32> to vector<1x512xf32>
    %c0_14 = arith.constant 0 : index
    %c1_15 = arith.constant 1 : index
    %c0_16 = arith.constant 0 : index
    %24 = vector.load %arg3[%c0_14, %c1_15, %c0_16] : memref<1x8x512xf32, #tpu.memory_space<vmem>>, vector<1x1x512xf32>
    %25 = vector.shape_cast %24 : vector<1x1x512xf32> to vector<1x512xf32>
    %c1_17 = arith.constant 1 : index
    %c0_18 = arith.constant 0 : index
    %c0_19 = arith.constant 0 : index
    %26 = vector.load %arg4[%c1_17, %c0_18, %c0_19] : memref<8x8x512xf32, #tpu.memory_space<vmem>>, vector<1x8x512xf32>
    %27 = vector.shape_cast %26 : vector<1x8x512xf32> to vector<8x512xf32>
    %c1_20 = arith.constant 1 : index
    %c0_21 = arith.constant 0 : index
    %c0_22 = arith.constant 0 : index
    %28 = vector.load %arg5[%c1_20, %c0_21, %c0_22] : memref<8x8x512xf32, #tpu.memory_space<vmem>>, vector<1x8x512xf32>
    %29 = vector.shape_cast %28 : vector<1x8x512xf32> to vector<8x512xf32>
    %30 = vector.broadcast %23 : vector<1x512xf32> to vector<8x512xf32>
    %31 = arith.mulf %27, %30 : vector<8x512xf32>
    %32 = vector.broadcast %25 : vector<1x512xf32> to vector<8x512xf32>
    %33 = arith.mulf %29, %32 : vector<8x512xf32>
    %34 = arith.subf %31, %33 : vector<8x512xf32>
    %35 = arith.addf %15, %34 : vector<8x512xf32>
    %36 = vector.broadcast %25 : vector<1x512xf32> to vector<8x512xf32>
    %37 = arith.mulf %27, %36 : vector<8x512xf32>
    %38 = vector.broadcast %23 : vector<1x512xf32> to vector<8x512xf32>
    %39 = arith.mulf %29, %38 : vector<8x512xf32>
    %40 = arith.addf %37, %39 : vector<8x512xf32>
    %41 = arith.addf %21, %40 : vector<8x512xf32>
    %c0_23 = arith.constant 0 : index
    %c2 = arith.constant 2 : index
    %c0_24 = arith.constant 0 : index
    %42 = vector.load %arg2[%c0_23, %c2, %c0_24] : memref<1x8x512xf32, #tpu.memory_space<vmem>>, vector<1x1x512xf32>
    %43 = vector.shape_cast %42 : vector<1x1x512xf32> to vector<1x512xf32>
    %c0_25 = arith.constant 0 : index
    %c2_26 = arith.constant 2 : index
    %c0_27 = arith.constant 0 : index
    %44 = vector.load %arg3[%c0_25, %c2_26, %c0_27] : memref<1x8x512xf32, #tpu.memory_space<vmem>>, vector<1x1x512xf32>
    %45 = vector.shape_cast %44 : vector<1x1x512xf32> to vector<1x512xf32>
    %c2_28 = arith.constant 2 : index
    %c0_29 = arith.constant 0 : index
    %c0_30 = arith.constant 0 : index
    %46 = vector.load %arg4[%c2_28, %c0_29, %c0_30] : memref<8x8x512xf32, #tpu.memory_space<vmem>>, vector<1x8x512xf32>
    %47 = vector.shape_cast %46 : vector<1x8x512xf32> to vector<8x512xf32>
    %c2_31 = arith.constant 2 : index
    %c0_32 = arith.constant 0 : index
    %c0_33 = arith.constant 0 : index
    %48 = vector.load %arg5[%c2_31, %c0_32, %c0_33] : memref<8x8x512xf32, #tpu.memory_space<vmem>>, vector<1x8x512xf32>
    %49 = vector.shape_cast %48 : vector<1x8x512xf32> to vector<8x512xf32>
    %50 = vector.broadcast %43 : vector<1x512xf32> to vector<8x512xf32>
    %51 = arith.mulf %47, %50 : vector<8x512xf32>
    %52 = vector.broadcast %45 : vector<1x512xf32> to vector<8x512xf32>
    %53 = arith.mulf %49, %52 : vector<8x512xf32>
    %54 = arith.subf %51, %53 : vector<8x512xf32>
    %55 = arith.addf %35, %54 : vector<8x512xf32>
    %56 = vector.broadcast %45 : vector<1x512xf32> to vector<8x512xf32>
    %57 = arith.mulf %47, %56 : vector<8x512xf32>
    %58 = vector.broadcast %43 : vector<1x512xf32> to vector<8x512xf32>
    %59 = arith.mulf %49, %58 : vector<8x512xf32>
    %60 = arith.addf %57, %59 : vector<8x512xf32>
    %61 = arith.addf %41, %60 : vector<8x512xf32>
    %c0_34 = arith.constant 0 : index
    %c3 = arith.constant 3 : index
    %c0_35 = arith.constant 0 : index
    %62 = vector.load %arg2[%c0_34, %c3, %c0_35] : memref<1x8x512xf32, #tpu.memory_space<vmem>>, vector<1x1x512xf32>
    %63 = vector.shape_cast %62 : vector<1x1x512xf32> to vector<1x512xf32>
    %c0_36 = arith.constant 0 : index
    %c3_37 = arith.constant 3 : index
    %c0_38 = arith.constant 0 : index
    %64 = vector.load %arg3[%c0_36, %c3_37, %c0_38] : memref<1x8x512xf32, #tpu.memory_space<vmem>>, vector<1x1x512xf32>
    %65 = vector.shape_cast %64 : vector<1x1x512xf32> to vector<1x512xf32>
    %c3_39 = arith.constant 3 : index
    %c0_40 = arith.constant 0 : index
    %c0_41 = arith.constant 0 : index
    %66 = vector.load %arg4[%c3_39, %c0_40, %c0_41] : memref<8x8x512xf32, #tpu.memory_space<vmem>>, vector<1x8x512xf32>
    %67 = vector.shape_cast %66 : vector<1x8x512xf32> to vector<8x512xf32>
    %c3_42 = arith.constant 3 : index
    %c0_43 = arith.constant 0 : index
    %c0_44 = arith.constant 0 : index
    %68 = vector.load %arg5[%c3_42, %c0_43, %c0_44] : memref<8x8x512xf32, #tpu.memory_space<vmem>>, vector<1x8x512xf32>
    %69 = vector.shape_cast %68 : vector<1x8x512xf32> to vector<8x512xf32>
    %70 = vector.broadcast %63 : vector<1x512xf32> to vector<8x512xf32>
    %71 = arith.mulf %67, %70 : vector<8x512xf32>
    %72 = vector.broadcast %65 : vector<1x512xf32> to vector<8x512xf32>
    %73 = arith.mulf %69, %72 : vector<8x512xf32>
    %74 = arith.subf %71, %73 : vector<8x512xf32>
    %75 = arith.addf %55, %74 : vector<8x512xf32>
    %76 = vector.broadcast %65 : vector<1x512xf32> to vector<8x512xf32>
    %77 = arith.mulf %67, %76 : vector<8x512xf32>
    %78 = vector.broadcast %63 : vector<1x512xf32> to vector<8x512xf32>
    %79 = arith.mulf %69, %78 : vector<8x512xf32>
    %80 = arith.addf %77, %79 : vector<8x512xf32>
    %81 = arith.addf %61, %80 : vector<8x512xf32>
    %c0_45 = arith.constant 0 : index
    %c4 = arith.constant 4 : index
    %c0_46 = arith.constant 0 : index
    %82 = vector.load %arg2[%c0_45, %c4, %c0_46] : memref<1x8x512xf32, #tpu.memory_space<vmem>>, vector<1x1x512xf32>
    %83 = vector.shape_cast %82 : vector<1x1x512xf32> to vector<1x512xf32>
    %c0_47 = arith.constant 0 : index
    %c4_48 = arith.constant 4 : index
    %c0_49 = arith.constant 0 : index
    %84 = vector.load %arg3[%c0_47, %c4_48, %c0_49] : memref<1x8x512xf32, #tpu.memory_space<vmem>>, vector<1x1x512xf32>
    %85 = vector.shape_cast %84 : vector<1x1x512xf32> to vector<1x512xf32>
    %c4_50 = arith.constant 4 : index
    %c0_51 = arith.constant 0 : index
    %c0_52 = arith.constant 0 : index
    %86 = vector.load %arg4[%c4_50, %c0_51, %c0_52] : memref<8x8x512xf32, #tpu.memory_space<vmem>>, vector<1x8x512xf32>
    %87 = vector.shape_cast %86 : vector<1x8x512xf32> to vector<8x512xf32>
    %c4_53 = arith.constant 4 : index
    %c0_54 = arith.constant 0 : index
    %c0_55 = arith.constant 0 : index
    %88 = vector.load %arg5[%c4_53, %c0_54, %c0_55] : memref<8x8x512xf32, #tpu.memory_space<vmem>>, vector<1x8x512xf32>
    %89 = vector.shape_cast %88 : vector<1x8x512xf32> to vector<8x512xf32>
    %90 = vector.broadcast %83 : vector<1x512xf32> to vector<8x512xf32>
    %91 = arith.mulf %87, %90 : vector<8x512xf32>
    %92 = vector.broadcast %85 : vector<1x512xf32> to vector<8x512xf32>
    %93 = arith.mulf %89, %92 : vector<8x512xf32>
    %94 = arith.subf %91, %93 : vector<8x512xf32>
    %95 = arith.addf %75, %94 : vector<8x512xf32>
    %96 = vector.broadcast %85 : vector<1x512xf32> to vector<8x512xf32>
    %97 = arith.mulf %87, %96 : vector<8x512xf32>
    %98 = vector.broadcast %83 : vector<1x512xf32> to vector<8x512xf32>
    %99 = arith.mulf %89, %98 : vector<8x512xf32>
    %100 = arith.addf %97, %99 : vector<8x512xf32>
    %101 = arith.addf %81, %100 : vector<8x512xf32>
    %c0_56 = arith.constant 0 : index
    %c5 = arith.constant 5 : index
    %c0_57 = arith.constant 0 : index
    %102 = vector.load %arg2[%c0_56, %c5, %c0_57] : memref<1x8x512xf32, #tpu.memory_space<vmem>>, vector<1x1x512xf32>
    %103 = vector.shape_cast %102 : vector<1x1x512xf32> to vector<1x512xf32>
    %c0_58 = arith.constant 0 : index
    %c5_59 = arith.constant 5 : index
    %c0_60 = arith.constant 0 : index
    %104 = vector.load %arg3[%c0_58, %c5_59, %c0_60] : memref<1x8x512xf32, #tpu.memory_space<vmem>>, vector<1x1x512xf32>
    %105 = vector.shape_cast %104 : vector<1x1x512xf32> to vector<1x512xf32>
    %c5_61 = arith.constant 5 : index
    %c0_62 = arith.constant 0 : index
    %c0_63 = arith.constant 0 : index
    %106 = vector.load %arg4[%c5_61, %c0_62, %c0_63] : memref<8x8x512xf32, #tpu.memory_space<vmem>>, vector<1x8x512xf32>
    %107 = vector.shape_cast %106 : vector<1x8x512xf32> to vector<8x512xf32>
    %c5_64 = arith.constant 5 : index
    %c0_65 = arith.constant 0 : index
    %c0_66 = arith.constant 0 : index
    %108 = vector.load %arg5[%c5_64, %c0_65, %c0_66] : memref<8x8x512xf32, #tpu.memory_space<vmem>>, vector<1x8x512xf32>
    %109 = vector.shape_cast %108 : vector<1x8x512xf32> to vector<8x512xf32>
    %110 = vector.broadcast %103 : vector<1x512xf32> to vector<8x512xf32>
    %111 = arith.mulf %107, %110 : vector<8x512xf32>
    %112 = vector.broadcast %105 : vector<1x512xf32> to vector<8x512xf32>
    %113 = arith.mulf %109, %112 : vector<8x512xf32>
    %114 = arith.subf %111, %113 : vector<8x512xf32>
    %115 = arith.addf %95, %114 : vector<8x512xf32>
    %116 = vector.broadcast %105 : vector<1x512xf32> to vector<8x512xf32>
    %117 = arith.mulf %107, %116 : vector<8x512xf32>
    %118 = vector.broadcast %103 : vector<1x512xf32> to vector<8x512xf32>
    %119 = arith.mulf %109, %118 : vector<8x512xf32>
    %120 = arith.addf %117, %119 : vector<8x512xf32>
    %121 = arith.addf %101, %120 : vector<8x512xf32>
    %c0_67 = arith.constant 0 : index
    %c6 = arith.constant 6 : index
    %c0_68 = arith.constant 0 : index
    %122 = vector.load %arg2[%c0_67, %c6, %c0_68] : memref<1x8x512xf32, #tpu.memory_space<vmem>>, vector<1x1x512xf32>
    %123 = vector.shape_cast %122 : vector<1x1x512xf32> to vector<1x512xf32>
    %c0_69 = arith.constant 0 : index
    %c6_70 = arith.constant 6 : index
    %c0_71 = arith.constant 0 : index
    %124 = vector.load %arg3[%c0_69, %c6_70, %c0_71] : memref<1x8x512xf32, #tpu.memory_space<vmem>>, vector<1x1x512xf32>
    %125 = vector.shape_cast %124 : vector<1x1x512xf32> to vector<1x512xf32>
    %c6_72 = arith.constant 6 : index
    %c0_73 = arith.constant 0 : index
    %c0_74 = arith.constant 0 : index
    %126 = vector.load %arg4[%c6_72, %c0_73, %c0_74] : memref<8x8x512xf32, #tpu.memory_space<vmem>>, vector<1x8x512xf32>
    %127 = vector.shape_cast %126 : vector<1x8x512xf32> to vector<8x512xf32>
    %c6_75 = arith.constant 6 : index
    %c0_76 = arith.constant 0 : index
    %c0_77 = arith.constant 0 : index
    %128 = vector.load %arg5[%c6_75, %c0_76, %c0_77] : memref<8x8x512xf32, #tpu.memory_space<vmem>>, vector<1x8x512xf32>
    %129 = vector.shape_cast %128 : vector<1x8x512xf32> to vector<8x512xf32>
    %130 = vector.broadcast %123 : vector<1x512xf32> to vector<8x512xf32>
    %131 = arith.mulf %127, %130 : vector<8x512xf32>
    %132 = vector.broadcast %125 : vector<1x512xf32> to vector<8x512xf32>
    %133 = arith.mulf %129, %132 : vector<8x512xf32>
    %134 = arith.subf %131, %133 : vector<8x512xf32>
    %135 = arith.addf %115, %134 : vector<8x512xf32>
    %136 = vector.broadcast %125 : vector<1x512xf32> to vector<8x512xf32>
    %137 = arith.mulf %127, %136 : vector<8x512xf32>
    %138 = vector.broadcast %123 : vector<1x512xf32> to vector<8x512xf32>
    %139 = arith.mulf %129, %138 : vector<8x512xf32>
    %140 = arith.addf %137, %139 : vector<8x512xf32>
    %141 = arith.addf %121, %140 : vector<8x512xf32>
    %c0_78 = arith.constant 0 : index
    %c7 = arith.constant 7 : index
    %c0_79 = arith.constant 0 : index
    %142 = vector.load %arg2[%c0_78, %c7, %c0_79] : memref<1x8x512xf32, #tpu.memory_space<vmem>>, vector<1x1x512xf32>
    %143 = vector.shape_cast %142 : vector<1x1x512xf32> to vector<1x512xf32>
    %c0_80 = arith.constant 0 : index
    %c7_81 = arith.constant 7 : index
    %c0_82 = arith.constant 0 : index
    %144 = vector.load %arg3[%c0_80, %c7_81, %c0_82] : memref<1x8x512xf32, #tpu.memory_space<vmem>>, vector<1x1x512xf32>
    %145 = vector.shape_cast %144 : vector<1x1x512xf32> to vector<1x512xf32>
    %c7_83 = arith.constant 7 : index
    %c0_84 = arith.constant 0 : index
    %c0_85 = arith.constant 0 : index
    %146 = vector.load %arg4[%c7_83, %c0_84, %c0_85] : memref<8x8x512xf32, #tpu.memory_space<vmem>>, vector<1x8x512xf32>
    %147 = vector.shape_cast %146 : vector<1x8x512xf32> to vector<8x512xf32>
    %c7_86 = arith.constant 7 : index
    %c0_87 = arith.constant 0 : index
    %c0_88 = arith.constant 0 : index
    %148 = vector.load %arg5[%c7_86, %c0_87, %c0_88] : memref<8x8x512xf32, #tpu.memory_space<vmem>>, vector<1x8x512xf32>
    %149 = vector.shape_cast %148 : vector<1x8x512xf32> to vector<8x512xf32>
    %150 = vector.broadcast %143 : vector<1x512xf32> to vector<8x512xf32>
    %151 = arith.mulf %147, %150 : vector<8x512xf32>
    %152 = vector.broadcast %145 : vector<1x512xf32> to vector<8x512xf32>
    %153 = arith.mulf %149, %152 : vector<8x512xf32>
    %154 = arith.subf %151, %153 : vector<8x512xf32>
    %155 = arith.addf %135, %154 : vector<8x512xf32>
    %156 = vector.broadcast %145 : vector<1x512xf32> to vector<8x512xf32>
    %157 = arith.mulf %147, %156 : vector<8x512xf32>
    %158 = vector.broadcast %143 : vector<1x512xf32> to vector<8x512xf32>
    %159 = arith.mulf %149, %158 : vector<8x512xf32>
    %160 = arith.addf %157, %159 : vector<8x512xf32>
    %161 = arith.addf %141, %160 : vector<8x512xf32>
    %c0_89 = arith.constant 0 : index
    %c0_90 = arith.constant 0 : index
    %c0_91 = arith.constant 0 : index
    %162 = vector.load %arg6[%c0_89, %c0_90, %c0_91] : memref<1x8x512xf32, #tpu.memory_space<vmem>>, vector<1x8x512xf32>
    %163 = vector.shape_cast %162 : vector<1x8x512xf32> to vector<8x512xf32>
    %164 = vector.shape_cast %155 : vector<8x512xf32> to vector<1x8x512xf32>
    tpu.vector_store %arg6[%c0_89, %c0_90, %c0_91], %164 {strides = array<i32>} : memref<1x8x512xf32, #tpu.memory_space<vmem>>, vector<1x8x512xf32>,
    %c0_92 = arith.constant 0 : index
    %c0_93 = arith.constant 0 : index
    %c0_94 = arith.constant 0 : index
    %165 = vector.load %arg7[%c0_92, %c0_93, %c0_94] : memref<1x8x512xf32, #tpu.memory_space<vmem>>, vector<1x8x512xf32>
    %166 = vector.shape_cast %165 : vector<1x8x512xf32> to vector<8x512xf32>
    %167 = vector.shape_cast %161 : vector<8x512xf32> to vector<1x8x512xf32>
    tpu.vector_store %arg7[%c0_92, %c0_93, %c0_94], %167 {strides = array<i32>} : memref<1x8x512xf32, #tpu.memory_space<vmem>>, vector<1x8x512xf32>,
    return
  }
  func.func @transform_0(%arg0: i32, %arg1: i32) -> (i32, i32, i32) {
    %c0_i32 = arith.constant 0 : i32
    %c0_i32_0 = arith.constant 0 : i32
    return %arg1, %c0_i32, %arg0 : i32, i32, i32
  }
  func.func @transform_1(%arg0: i32, %arg1: i32) -> (i32, i32, i32) {
    %c0_i32 = arith.constant 0 : i32
    %c0_i32_0 = arith.constant 0 : i32
    return %arg1, %c0_i32, %arg0 : i32, i32, i32
  }
  func.func @transform_2(%arg0: i32, %arg1: i32) -> (i32, i32, i32) {
    %c0_i32 = arith.constant 0 : i32
    %c0_i32_0 = arith.constant 0 : i32
    %c0_i32_1 = arith.constant 0 : i32
    return %c0_i32, %c0_i32_0, %arg0 : i32, i32, i32
  }
  func.func @transform_3(%arg0: i32, %arg1: i32) -> (i32, i32, i32) {
    %c0_i32 = arith.constant 0 : i32
    %c0_i32_0 = arith.constant 0 : i32
    %c0_i32_1 = arith.constant 0 : i32
    return %c0_i32, %c0_i32_0, %arg0 : i32, i32, i32
  }
  func.func @transform_4(%arg0: i32, %arg1: i32) -> (i32, i32, i32) {
    %c0_i32 = arith.constant 0 : i32
    %c0_i32_0 = arith.constant 0 : i32
    return %arg1, %c0_i32, %arg0 : i32, i32, i32
  }
  func.func @transform_5(%arg0: i32, %arg1: i32) -> (i32, i32, i32) {
    %c0_i32 = arith.constant 0 : i32
    %c0_i32_0 = arith.constant 0 : i32
    return %arg1, %c0_i32, %arg0 : i32, i32, i32
  }
}

module attributes {stable_mosaic.version = 11 : i64} {
  func.func @_fno_pointwise_kernel(%arg0: i32, %arg1: i32, %arg2: memref<1x8x896xf32, #tpu.memory_space<vmem>>, %arg3: memref<1x8x896xf32, #tpu.memory_space<vmem>>, %arg4: memref<8x8xf32, #tpu.memory_space<vmem>>, %arg5: memref<8x1xf32, #tpu.memory_space<vmem>>, %arg6: memref<1x8x896xf32, #tpu.memory_space<vmem>>) attributes {dimension_semantics = [#tpu.dimension_semantics<parallel>, #tpu.dimension_semantics<parallel>], iteration_bounds = array<i64: 2, 4>, scalar_prefetch = 0 : i64, scratch_operands = 0 : i64, tpu.core_type = #tpu.core_type<tc>, window_params = [{transform_indices = @transform_0, window_bounds = array<i64: 1, 8, 896>}, {transform_indices = @transform_1, window_bounds = array<i64: 1, 8, 896>}, {pipeline_mode = #tpu.pipeline_mode<synchronous>, transform_indices = @transform_2, window_bounds = array<i64: 8, 8>}, {pipeline_mode = #tpu.pipeline_mode<synchronous>, transform_indices = @transform_3, window_bounds = array<i64: 8, 1>}, {transform_indices = @transform_4, window_bounds = array<i64: 1, 8, 896>}]} {
    %c0 = arith.constant 0 : index
    %c0_0 = arith.constant 0 : index
    %c0_1 = arith.constant 0 : index
    %0 = vector.load %arg3[%c0, %c0_0, %c0_1] : memref<1x8x896xf32, #tpu.memory_space<vmem>>, vector<1x8x896xf32>
    %1 = vector.shape_cast %0 : vector<1x8x896xf32> to vector<8x896xf32>
    %c0_2 = arith.constant 0 : index
    %c0_3 = arith.constant 0 : index
    %2 = vector.load %arg5[%c0_2, %c0_3] : memref<8x1xf32, #tpu.memory_space<vmem>>, vector<8x1xf32>
    %3 = vector.broadcast %2 : vector<8x1xf32> to vector<8x896xf32>
    %4 = arith.addf %1, %3 : vector<8x896xf32>
    %c0_4 = arith.constant 0 : index
    %c0_5 = arith.constant 0 : index
    %5 = vector.load %arg4[%c0_4, %c0_5] : memref<8x8xf32, #tpu.memory_space<vmem>>, vector<8x1xf32>
    %c0_6 = arith.constant 0 : index
    %c0_7 = arith.constant 0 : index
    %c0_8 = arith.constant 0 : index
    %6 = vector.load %arg2[%c0_6, %c0_7, %c0_8] : memref<1x8x896xf32, #tpu.memory_space<vmem>>, vector<1x1x896xf32>
    %7 = vector.shape_cast %6 : vector<1x1x896xf32> to vector<1x896xf32>
    %8 = vector.broadcast %5 : vector<8x1xf32> to vector<8x896xf32>
    %9 = vector.broadcast %7 : vector<1x896xf32> to vector<8x896xf32>
    %10 = arith.mulf %8, %9 : vector<8x896xf32>
    %11 = arith.addf %4, %10 : vector<8x896xf32>
    %c0_9 = arith.constant 0 : index
    %c1 = arith.constant 1 : index
    %12 = vector.load %arg4[%c0_9, %c1] : memref<8x8xf32, #tpu.memory_space<vmem>>, vector<8x1xf32>
    %c0_10 = arith.constant 0 : index
    %c1_11 = arith.constant 1 : index
    %c0_12 = arith.constant 0 : index
    %13 = vector.load %arg2[%c0_10, %c1_11, %c0_12] : memref<1x8x896xf32, #tpu.memory_space<vmem>>, vector<1x1x896xf32>
    %14 = vector.shape_cast %13 : vector<1x1x896xf32> to vector<1x896xf32>
    %15 = vector.broadcast %12 : vector<8x1xf32> to vector<8x896xf32>
    %16 = vector.broadcast %14 : vector<1x896xf32> to vector<8x896xf32>
    %17 = arith.mulf %15, %16 : vector<8x896xf32>
    %18 = arith.addf %11, %17 : vector<8x896xf32>
    %c0_13 = arith.constant 0 : index
    %c2 = arith.constant 2 : index
    %19 = vector.load %arg4[%c0_13, %c2] : memref<8x8xf32, #tpu.memory_space<vmem>>, vector<8x1xf32>
    %c0_14 = arith.constant 0 : index
    %c2_15 = arith.constant 2 : index
    %c0_16 = arith.constant 0 : index
    %20 = vector.load %arg2[%c0_14, %c2_15, %c0_16] : memref<1x8x896xf32, #tpu.memory_space<vmem>>, vector<1x1x896xf32>
    %21 = vector.shape_cast %20 : vector<1x1x896xf32> to vector<1x896xf32>
    %22 = vector.broadcast %19 : vector<8x1xf32> to vector<8x896xf32>
    %23 = vector.broadcast %21 : vector<1x896xf32> to vector<8x896xf32>
    %24 = arith.mulf %22, %23 : vector<8x896xf32>
    %25 = arith.addf %18, %24 : vector<8x896xf32>
    %c0_17 = arith.constant 0 : index
    %c3 = arith.constant 3 : index
    %26 = vector.load %arg4[%c0_17, %c3] : memref<8x8xf32, #tpu.memory_space<vmem>>, vector<8x1xf32>
    %c0_18 = arith.constant 0 : index
    %c3_19 = arith.constant 3 : index
    %c0_20 = arith.constant 0 : index
    %27 = vector.load %arg2[%c0_18, %c3_19, %c0_20] : memref<1x8x896xf32, #tpu.memory_space<vmem>>, vector<1x1x896xf32>
    %28 = vector.shape_cast %27 : vector<1x1x896xf32> to vector<1x896xf32>
    %29 = vector.broadcast %26 : vector<8x1xf32> to vector<8x896xf32>
    %30 = vector.broadcast %28 : vector<1x896xf32> to vector<8x896xf32>
    %31 = arith.mulf %29, %30 : vector<8x896xf32>
    %32 = arith.addf %25, %31 : vector<8x896xf32>
    %c0_21 = arith.constant 0 : index
    %c4 = arith.constant 4 : index
    %33 = vector.load %arg4[%c0_21, %c4] : memref<8x8xf32, #tpu.memory_space<vmem>>, vector<8x1xf32>
    %c0_22 = arith.constant 0 : index
    %c4_23 = arith.constant 4 : index
    %c0_24 = arith.constant 0 : index
    %34 = vector.load %arg2[%c0_22, %c4_23, %c0_24] : memref<1x8x896xf32, #tpu.memory_space<vmem>>, vector<1x1x896xf32>
    %35 = vector.shape_cast %34 : vector<1x1x896xf32> to vector<1x896xf32>
    %36 = vector.broadcast %33 : vector<8x1xf32> to vector<8x896xf32>
    %37 = vector.broadcast %35 : vector<1x896xf32> to vector<8x896xf32>
    %38 = arith.mulf %36, %37 : vector<8x896xf32>
    %39 = arith.addf %32, %38 : vector<8x896xf32>
    %c0_25 = arith.constant 0 : index
    %c5 = arith.constant 5 : index
    %40 = vector.load %arg4[%c0_25, %c5] : memref<8x8xf32, #tpu.memory_space<vmem>>, vector<8x1xf32>
    %c0_26 = arith.constant 0 : index
    %c5_27 = arith.constant 5 : index
    %c0_28 = arith.constant 0 : index
    %41 = vector.load %arg2[%c0_26, %c5_27, %c0_28] : memref<1x8x896xf32, #tpu.memory_space<vmem>>, vector<1x1x896xf32>
    %42 = vector.shape_cast %41 : vector<1x1x896xf32> to vector<1x896xf32>
    %43 = vector.broadcast %40 : vector<8x1xf32> to vector<8x896xf32>
    %44 = vector.broadcast %42 : vector<1x896xf32> to vector<8x896xf32>
    %45 = arith.mulf %43, %44 : vector<8x896xf32>
    %46 = arith.addf %39, %45 : vector<8x896xf32>
    %c0_29 = arith.constant 0 : index
    %c6 = arith.constant 6 : index
    %47 = vector.load %arg4[%c0_29, %c6] : memref<8x8xf32, #tpu.memory_space<vmem>>, vector<8x1xf32>
    %c0_30 = arith.constant 0 : index
    %c6_31 = arith.constant 6 : index
    %c0_32 = arith.constant 0 : index
    %48 = vector.load %arg2[%c0_30, %c6_31, %c0_32] : memref<1x8x896xf32, #tpu.memory_space<vmem>>, vector<1x1x896xf32>
    %49 = vector.shape_cast %48 : vector<1x1x896xf32> to vector<1x896xf32>
    %50 = vector.broadcast %47 : vector<8x1xf32> to vector<8x896xf32>
    %51 = vector.broadcast %49 : vector<1x896xf32> to vector<8x896xf32>
    %52 = arith.mulf %50, %51 : vector<8x896xf32>
    %53 = arith.addf %46, %52 : vector<8x896xf32>
    %c0_33 = arith.constant 0 : index
    %c7 = arith.constant 7 : index
    %54 = vector.load %arg4[%c0_33, %c7] : memref<8x8xf32, #tpu.memory_space<vmem>>, vector<8x1xf32>
    %c0_34 = arith.constant 0 : index
    %c7_35 = arith.constant 7 : index
    %c0_36 = arith.constant 0 : index
    %55 = vector.load %arg2[%c0_34, %c7_35, %c0_36] : memref<1x8x896xf32, #tpu.memory_space<vmem>>, vector<1x1x896xf32>
    %56 = vector.shape_cast %55 : vector<1x1x896xf32> to vector<1x896xf32>
    %57 = vector.broadcast %54 : vector<8x1xf32> to vector<8x896xf32>
    %58 = vector.broadcast %56 : vector<1x896xf32> to vector<8x896xf32>
    %59 = arith.mulf %57, %58 : vector<8x896xf32>
    %60 = arith.addf %53, %59 : vector<8x896xf32>
    %61 = arith.mulf %60, %60 : vector<8x896xf32>
    %62 = arith.mulf %60, %61 : vector<8x896xf32>
    %cst = arith.constant 4.471500e-02 : f32
    %63 = vector.broadcast %cst : f32 to vector<8x896xf32>
    %64 = arith.mulf %63, %62 : vector<8x896xf32>
    %65 = arith.addf %60, %64 : vector<8x896xf32>
    %cst_37 = arith.constant 0.797884583 : f32
    %66 = vector.broadcast %cst_37 : f32 to vector<8x896xf32>
    %67 = arith.mulf %66, %65 : vector<8x896xf32>
    %68 = math.tanh %67 : vector<8x896xf32>
    %cst_38 = arith.constant 1.000000e+00 : f32
    %69 = vector.broadcast %cst_38 : f32 to vector<8x896xf32>
    %70 = arith.addf %69, %68 : vector<8x896xf32>
    %cst_39 = arith.constant 5.000000e-01 : f32
    %71 = vector.broadcast %cst_39 : f32 to vector<8x896xf32>
    %72 = arith.mulf %71, %70 : vector<8x896xf32>
    %73 = arith.mulf %60, %72 : vector<8x896xf32>
    %c0_40 = arith.constant 0 : index
    %c0_41 = arith.constant 0 : index
    %c0_42 = arith.constant 0 : index
    %74 = vector.load %arg6[%c0_40, %c0_41, %c0_42] : memref<1x8x896xf32, #tpu.memory_space<vmem>>, vector<1x8x896xf32>
    %75 = vector.shape_cast %74 : vector<1x8x896xf32> to vector<8x896xf32>
    %76 = vector.shape_cast %73 : vector<8x896xf32> to vector<1x8x896xf32>
    tpu.vector_store %arg6[%c0_40, %c0_41, %c0_42], %76 {strides = array<i32>} : memref<1x8x896xf32, #tpu.memory_space<vmem>>, vector<1x8x896xf32>,
    return
  }
  func.func @transform_0(%arg0: i32, %arg1: i32) -> (i32, i32, i32) {
    %c0_i32 = arith.constant 0 : i32
    %c0_i32_0 = arith.constant 0 : i32
    return %arg0, %c0_i32, %arg1 : i32, i32, i32
  }
  func.func @transform_1(%arg0: i32, %arg1: i32) -> (i32, i32, i32) {
    %c0_i32 = arith.constant 0 : i32
    %c0_i32_0 = arith.constant 0 : i32
    return %arg0, %c0_i32, %arg1 : i32, i32, i32
  }
  func.func @transform_2(%arg0: i32, %arg1: i32) -> (i32, i32) {
    %c0_i32 = arith.constant 0 : i32
    %c0_i32_0 = arith.constant 0 : i32
    %c0_i32_1 = arith.constant 0 : i32
    return %c0_i32, %c0_i32_0 : i32, i32
  }
  func.func @transform_3(%arg0: i32, %arg1: i32) -> (i32, i32) {
    %c0_i32 = arith.constant 0 : i32
    %c0_i32_0 = arith.constant 0 : i32
    %c0_i32_1 = arith.constant 0 : i32
    return %c0_i32, %c0_i32_0 : i32, i32
  }
  func.func @transform_4(%arg0: i32, %arg1: i32) -> (i32, i32, i32) {
    %c0_i32 = arith.constant 0 : i32
    %c0_i32_0 = arith.constant 0 : i32
    return %arg0, %c0_i32, %arg1 : i32, i32, i32
  }
}

module attributes {stable_mosaic.version = 11 : i64} {
  func.func @_fno_last_decoder_kernel(%arg0: i32, %arg1: i32, %arg2: memref<1x8x896xf32, #tpu.memory_space<vmem>>, %arg3: memref<1x8x896xf32, #tpu.memory_space<vmem>>, %arg4: memref<8x8xf32, #tpu.memory_space<vmem>>, %arg5: memref<8x1xf32, #tpu.memory_space<vmem>>, %arg6: memref<128x8xbf16, #tpu.memory_space<vmem>>, %arg7: memref<128x1xf32, #tpu.memory_space<vmem>>, %arg8: memref<1x128xbf16, #tpu.memory_space<vmem>>, %arg9: memref<1x1xf32, #tpu.memory_space<vmem>>, %arg10: memref<1x1x896xf32, #tpu.memory_space<vmem>>) attributes {dimension_semantics = [#tpu.dimension_semantics<parallel>, #tpu.dimension_semantics<parallel>], iteration_bounds = array<i64: 2, 4>, scalar_prefetch = 0 : i64, scratch_operands = 0 : i64, tpu.core_type = #tpu.core_type<tc>, window_params = [{transform_indices = @transform_0, window_bounds = array<i64: 1, 8, 896>}, {transform_indices = @transform_1, window_bounds = array<i64: 1, 8, 896>}, {pipeline_mode = #tpu.pipeline_mode<synchronous>, transform_indices = @transform_2, window_bounds = array<i64: 8, 8>}, {pipeline_mode = #tpu.pipeline_mode<synchronous>, transform_indices = @transform_3, window_bounds = array<i64: 8, 1>}, {pipeline_mode = #tpu.pipeline_mode<synchronous>, transform_indices = @transform_4, window_bounds = array<i64: 128, 8>}, {pipeline_mode = #tpu.pipeline_mode<synchronous>, transform_indices = @transform_5, window_bounds = array<i64: 128, 1>}, {pipeline_mode = #tpu.pipeline_mode<synchronous>, transform_indices = @transform_6, window_bounds = array<i64: 1, 128>}, {pipeline_mode = #tpu.pipeline_mode<synchronous>, transform_indices = @transform_7, window_bounds = array<i64: 1, 1>}, {transform_indices = @transform_8, window_bounds = array<i64: 1, 1, 896>}]} {
    %c0 = arith.constant 0 : index
    %c0_0 = arith.constant 0 : index
    %c0_1 = arith.constant 0 : index
    %0 = vector.load %arg3[%c0, %c0_0, %c0_1] : memref<1x8x896xf32, #tpu.memory_space<vmem>>, vector<1x8x896xf32>
    %1 = vector.shape_cast %0 : vector<1x8x896xf32> to vector<8x896xf32>
    %c0_2 = arith.constant 0 : index
    %c0_3 = arith.constant 0 : index
    %2 = vector.load %arg5[%c0_2, %c0_3] : memref<8x1xf32, #tpu.memory_space<vmem>>, vector<8x1xf32>
    %3 = vector.broadcast %2 : vector<8x1xf32> to vector<8x896xf32>
    %4 = arith.addf %1, %3 : vector<8x896xf32>
    %c0_4 = arith.constant 0 : index
    %c0_5 = arith.constant 0 : index
    %5 = vector.load %arg4[%c0_4, %c0_5] : memref<8x8xf32, #tpu.memory_space<vmem>>, vector<8x1xf32>
    %c0_6 = arith.constant 0 : index
    %c0_7 = arith.constant 0 : index
    %c0_8 = arith.constant 0 : index
    %6 = vector.load %arg2[%c0_6, %c0_7, %c0_8] : memref<1x8x896xf32, #tpu.memory_space<vmem>>, vector<1x1x896xf32>
    %7 = vector.shape_cast %6 : vector<1x1x896xf32> to vector<1x896xf32>
    %8 = vector.broadcast %5 : vector<8x1xf32> to vector<8x896xf32>
    %9 = vector.broadcast %7 : vector<1x896xf32> to vector<8x896xf32>
    %10 = arith.mulf %8, %9 : vector<8x896xf32>
    %11 = arith.addf %4, %10 : vector<8x896xf32>
    %c0_9 = arith.constant 0 : index
    %c1 = arith.constant 1 : index
    %12 = vector.load %arg4[%c0_9, %c1] : memref<8x8xf32, #tpu.memory_space<vmem>>, vector<8x1xf32>
    %c0_10 = arith.constant 0 : index
    %c1_11 = arith.constant 1 : index
    %c0_12 = arith.constant 0 : index
    %13 = vector.load %arg2[%c0_10, %c1_11, %c0_12] : memref<1x8x896xf32, #tpu.memory_space<vmem>>, vector<1x1x896xf32>
    %14 = vector.shape_cast %13 : vector<1x1x896xf32> to vector<1x896xf32>
    %15 = vector.broadcast %12 : vector<8x1xf32> to vector<8x896xf32>
    %16 = vector.broadcast %14 : vector<1x896xf32> to vector<8x896xf32>
    %17 = arith.mulf %15, %16 : vector<8x896xf32>
    %18 = arith.addf %11, %17 : vector<8x896xf32>
    %c0_13 = arith.constant 0 : index
    %c2 = arith.constant 2 : index
    %19 = vector.load %arg4[%c0_13, %c2] : memref<8x8xf32, #tpu.memory_space<vmem>>, vector<8x1xf32>
    %c0_14 = arith.constant 0 : index
    %c2_15 = arith.constant 2 : index
    %c0_16 = arith.constant 0 : index
    %20 = vector.load %arg2[%c0_14, %c2_15, %c0_16] : memref<1x8x896xf32, #tpu.memory_space<vmem>>, vector<1x1x896xf32>
    %21 = vector.shape_cast %20 : vector<1x1x896xf32> to vector<1x896xf32>
    %22 = vector.broadcast %19 : vector<8x1xf32> to vector<8x896xf32>
    %23 = vector.broadcast %21 : vector<1x896xf32> to vector<8x896xf32>
    %24 = arith.mulf %22, %23 : vector<8x896xf32>
    %25 = arith.addf %18, %24 : vector<8x896xf32>
    %c0_17 = arith.constant 0 : index
    %c3 = arith.constant 3 : index
    %26 = vector.load %arg4[%c0_17, %c3] : memref<8x8xf32, #tpu.memory_space<vmem>>, vector<8x1xf32>
    %c0_18 = arith.constant 0 : index
    %c3_19 = arith.constant 3 : index
    %c0_20 = arith.constant 0 : index
    %27 = vector.load %arg2[%c0_18, %c3_19, %c0_20] : memref<1x8x896xf32, #tpu.memory_space<vmem>>, vector<1x1x896xf32>
    %28 = vector.shape_cast %27 : vector<1x1x896xf32> to vector<1x896xf32>
    %29 = vector.broadcast %26 : vector<8x1xf32> to vector<8x896xf32>
    %30 = vector.broadcast %28 : vector<1x896xf32> to vector<8x896xf32>
    %31 = arith.mulf %29, %30 : vector<8x896xf32>
    %32 = arith.addf %25, %31 : vector<8x896xf32>
    %c0_21 = arith.constant 0 : index
    %c4 = arith.constant 4 : index
    %33 = vector.load %arg4[%c0_21, %c4] : memref<8x8xf32, #tpu.memory_space<vmem>>, vector<8x1xf32>
    %c0_22 = arith.constant 0 : index
    %c4_23 = arith.constant 4 : index
    %c0_24 = arith.constant 0 : index
    %34 = vector.load %arg2[%c0_22, %c4_23, %c0_24] : memref<1x8x896xf32, #tpu.memory_space<vmem>>, vector<1x1x896xf32>
    %35 = vector.shape_cast %34 : vector<1x1x896xf32> to vector<1x896xf32>
    %36 = vector.broadcast %33 : vector<8x1xf32> to vector<8x896xf32>
    %37 = vector.broadcast %35 : vector<1x896xf32> to vector<8x896xf32>
    %38 = arith.mulf %36, %37 : vector<8x896xf32>
    %39 = arith.addf %32, %38 : vector<8x896xf32>
    %c0_25 = arith.constant 0 : index
    %c5 = arith.constant 5 : index
    %40 = vector.load %arg4[%c0_25, %c5] : memref<8x8xf32, #tpu.memory_space<vmem>>, vector<8x1xf32>
    %c0_26 = arith.constant 0 : index
    %c5_27 = arith.constant 5 : index
    %c0_28 = arith.constant 0 : index
    %41 = vector.load %arg2[%c0_26, %c5_27, %c0_28] : memref<1x8x896xf32, #tpu.memory_space<vmem>>, vector<1x1x896xf32>
    %42 = vector.shape_cast %41 : vector<1x1x896xf32> to vector<1x896xf32>
    %43 = vector.broadcast %40 : vector<8x1xf32> to vector<8x896xf32>
    %44 = vector.broadcast %42 : vector<1x896xf32> to vector<8x896xf32>
    %45 = arith.mulf %43, %44 : vector<8x896xf32>
    %46 = arith.addf %39, %45 : vector<8x896xf32>
    %c0_29 = arith.constant 0 : index
    %c6 = arith.constant 6 : index
    %47 = vector.load %arg4[%c0_29, %c6] : memref<8x8xf32, #tpu.memory_space<vmem>>, vector<8x1xf32>
    %c0_30 = arith.constant 0 : index
    %c6_31 = arith.constant 6 : index
    %c0_32 = arith.constant 0 : index
    %48 = vector.load %arg2[%c0_30, %c6_31, %c0_32] : memref<1x8x896xf32, #tpu.memory_space<vmem>>, vector<1x1x896xf32>
    %49 = vector.shape_cast %48 : vector<1x1x896xf32> to vector<1x896xf32>
    %50 = vector.broadcast %47 : vector<8x1xf32> to vector<8x896xf32>
    %51 = vector.broadcast %49 : vector<1x896xf32> to vector<8x896xf32>
    %52 = arith.mulf %50, %51 : vector<8x896xf32>
    %53 = arith.addf %46, %52 : vector<8x896xf32>
    %c0_33 = arith.constant 0 : index
    %c7 = arith.constant 7 : index
    %54 = vector.load %arg4[%c0_33, %c7] : memref<8x8xf32, #tpu.memory_space<vmem>>, vector<8x1xf32>
    %c0_34 = arith.constant 0 : index
    %c7_35 = arith.constant 7 : index
    %c0_36 = arith.constant 0 : index
    %55 = vector.load %arg2[%c0_34, %c7_35, %c0_36] : memref<1x8x896xf32, #tpu.memory_space<vmem>>, vector<1x1x896xf32>
    %56 = vector.shape_cast %55 : vector<1x1x896xf32> to vector<1x896xf32>
    %57 = vector.broadcast %54 : vector<8x1xf32> to vector<8x896xf32>
    %58 = vector.broadcast %56 : vector<1x896xf32> to vector<8x896xf32>
    %59 = arith.mulf %57, %58 : vector<8x896xf32>
    %60 = arith.addf %53, %59 : vector<8x896xf32>
    %c0_37 = arith.constant 0 : index
    %c0_38 = arith.constant 0 : index
    %61 = vector.load %arg6[%c0_37, %c0_38] : memref<128x8xbf16, #tpu.memory_space<vmem>>, vector<128x8xbf16>
    %62 = arith.truncf %60 : vector<8x896xf32> to vector<8x896xbf16>
    %cst = arith.constant dense<0.000000e+00> : vector<128x896xf32>
    %63 = tpu.matmul %61, %62, %cst {dimension_numbers = #tpu.dot_dimension_numbers<[1], [0], [0], [1], [0, 0, 1, 1], [], []>} : vector<128x8xbf16>, vector<8x896xbf16>, vector<128x896xf32> -> vector<128x896xf32>
    %c0_39 = arith.constant 0 : index
    %c0_40 = arith.constant 0 : index
    %64 = vector.load %arg7[%c0_39, %c0_40] : memref<128x1xf32, #tpu.memory_space<vmem>>, vector<128x1xf32>
    %65 = vector.broadcast %64 : vector<128x1xf32> to vector<128x896xf32>
    %66 = arith.addf %63, %65 : vector<128x896xf32>
    %cst_41 = arith.constant 0.000000e+00 : f32
    %67 = vector.broadcast %cst_41 : f32 to vector<128x896xf32>
    %68 = arith.maximumf %66, %67 : vector<128x896xf32>
    %c0_42 = arith.constant 0 : index
    %c0_43 = arith.constant 0 : index
    %69 = vector.load %arg8[%c0_42, %c0_43] : memref<1x128xbf16, #tpu.memory_space<vmem>>, vector<1x128xbf16>
    %70 = arith.truncf %68 : vector<128x896xf32> to vector<128x896xbf16>
    %cst_44 = arith.constant dense<0.000000e+00> : vector<1x896xf32>
    %71 = tpu.matmul %69, %70, %cst_44 {dimension_numbers = #tpu.dot_dimension_numbers<[1], [0], [0], [1], [0, 0, 1, 1], [], []>} : vector<1x128xbf16>, vector<128x896xbf16>, vector<1x896xf32> -> vector<1x896xf32>
    %c0_45 = arith.constant 0 : index
    %c0_46 = arith.constant 0 : index
    %72 = vector.load %arg9[%c0_45, %c0_46] : memref<1x1xf32, #tpu.memory_space<vmem>>, vector<1x1xf32>
    %73 = vector.broadcast %72 : vector<1x1xf32> to vector<1x896xf32>
    %74 = arith.addf %71, %73 : vector<1x896xf32>
    %c0_47 = arith.constant 0 : index
    %c0_48 = arith.constant 0 : index
    %c0_49 = arith.constant 0 : index
    %75 = vector.load %arg10[%c0_47, %c0_48, %c0_49] : memref<1x1x896xf32, #tpu.memory_space<vmem>>, vector<1x1x896xf32>
    %76 = vector.shape_cast %75 : vector<1x1x896xf32> to vector<1x896xf32>
    %77 = vector.shape_cast %74 : vector<1x896xf32> to vector<1x1x896xf32>
    tpu.vector_store %arg10[%c0_47, %c0_48, %c0_49], %77 {strides = array<i32>} : memref<1x1x896xf32, #tpu.memory_space<vmem>>, vector<1x1x896xf32>,
    return
  }
  func.func @transform_0(%arg0: i32, %arg1: i32) -> (i32, i32, i32) {
    %c0_i32 = arith.constant 0 : i32
    %c0_i32_0 = arith.constant 0 : i32
    return %arg0, %c0_i32, %arg1 : i32, i32, i32
  }
  func.func @transform_1(%arg0: i32, %arg1: i32) -> (i32, i32, i32) {
    %c0_i32 = arith.constant 0 : i32
    %c0_i32_0 = arith.constant 0 : i32
    return %arg0, %c0_i32, %arg1 : i32, i32, i32
  }
  func.func @transform_2(%arg0: i32, %arg1: i32) -> (i32, i32) {
    %c0_i32 = arith.constant 0 : i32
    %c0_i32_0 = arith.constant 0 : i32
    %c0_i32_1 = arith.constant 0 : i32
    return %c0_i32, %c0_i32_0 : i32, i32
  }
  func.func @transform_3(%arg0: i32, %arg1: i32) -> (i32, i32) {
    %c0_i32 = arith.constant 0 : i32
    %c0_i32_0 = arith.constant 0 : i32
    %c0_i32_1 = arith.constant 0 : i32
    return %c0_i32, %c0_i32_0 : i32, i32
  }
  func.func @transform_4(%arg0: i32, %arg1: i32) -> (i32, i32) {
    %c0_i32 = arith.constant 0 : i32
    %c0_i32_0 = arith.constant 0 : i32
    %c0_i32_1 = arith.constant 0 : i32
    return %c0_i32, %c0_i32_0 : i32, i32
  }
  func.func @transform_5(%arg0: i32, %arg1: i32) -> (i32, i32) {
    %c0_i32 = arith.constant 0 : i32
    %c0_i32_0 = arith.constant 0 : i32
    %c0_i32_1 = arith.constant 0 : i32
    return %c0_i32, %c0_i32_0 : i32, i32
  }
  func.func @transform_6(%arg0: i32, %arg1: i32) -> (i32, i32) {
    %c0_i32 = arith.constant 0 : i32
    %c0_i32_0 = arith.constant 0 : i32
    %c0_i32_1 = arith.constant 0 : i32
    return %c0_i32, %c0_i32_0 : i32, i32
  }
  func.func @transform_7(%arg0: i32, %arg1: i32) -> (i32, i32) {
    %c0_i32 = arith.constant 0 : i32
    %c0_i32_0 = arith.constant 0 : i32
    %c0_i32_1 = arith.constant 0 : i32
    return %c0_i32, %c0_i32_0 : i32, i32
  }
  func.func @transform_8(%arg0: i32, %arg1: i32) -> (i32, i32, i32) {
    %c0_i32 = arith.constant 0 : i32
    %c0_i32_0 = arith.constant 0 : i32
    return %arg0, %c0_i32, %arg1 : i32, i32, i32
  }
}

</mosaic_0001>

<bundles_post_ra>
// kernel: _lambda_.10
= control target key start
LH: loop header
LB: loop body
LE: loop exit
PB: predicated region body
PF: predicated region fallthrough
CT: control target
= control target key end

     0   :  { %s1334_s26 = smov 0   ;;  %s1479_s0 = inlined_call_operand.vmem [shape: f32[1,4096], index: 0, kind: input, shape index: {}]   ;;  %s1480_s1 = inlined_call_operand.vmem [shape: f32[1,4096], index: 1, kind: input, shape index: {}]   ;;  %s1481_s2 = inlined_call_operand.vmem [shape: f32[1,4096], index: 2, kind: input, shape index: {}]   ;;  %s1482_s3 = inlined_call_operand.vmem [shape: f32[32,8], index: 3, kind: input, shape index: {}]   ;;  %s1483_s4 = inlined_call_operand.vmem [shape: f32[32,1], index: 4, kind: input, shape index: {}]   ;;  %s1484_s5 = inlined_call_operand.vmem [shape: f32[1,32], index: 5, kind: input, shape index: {}]   ;;  %s1485_s6 = inlined_call_operand.<no memory space> [shape: f32[1,1], index: 6, kind: input, shape index: {}]   ;;  %s1486_s7 = inlined_call_operand.vmem [shape: f32[1,4096], index: 7, kind: output, shape index: {}]  }
   0x1   :  { %v12_v0 = vstv %s1485_s6 }
   0x2   :  { %13 = vst [vmem:[#allocation3] sm:$0x1] %v12_v0 }
   0x3 LB: > { %s1204_s27 = sadd.s32 4294967295, %s1286_s26   ;;  %p1208_p0 = scmp.ge.s32.totalorder %s1286_s26, 1  ;;  %s1286_s26 = sphi %s1334_s26, %s19_s26  }
   0x4   : > { %p259_p1 = scmp.lt.s32.totalorder %s1286_s26, 5 }
   0x6   : > { %p260_p2 = pnand %p1208_p0, %p259_p1 }
   0x7   : > { %s1209_s28 = sshll.u32 (!%p260_p2), %s1204_s27, 3  ;;  %v1288_v1 = vmov (!%p260_p2), 0.0   ;;  %v356_v2 = vld [vmem:[%s1483_s4] sm:$0xff] (!%p260_p2)  ;;  %v1289_v3 = vmov (!%p260_p2), 0   ;;  %v358_v4 = vld [vmem:[%s1483_s4 + $0x10] sm:$0xff] (!%p260_p2)  ;;  %v357_v5 = vld [vmem:[%s1483_s4 + $0x8] sm:$0xff] (!%p260_p2) }
   0x8   : > { %263 = sbr.rel (%p260_p2) target bundleno = 510 (0x1fe), region = 48  ;;  %p298_p3 = scmp.lt.s32.totalorder (!%p260_p2), %s1209_s28, 31  ;;  %337 = vst [vmem:[#allocation2 + $0x8] sm:$0xe0] (!%p260_p2), %v1288_v1  ;;  %336 = vst [vmem:[#allocation2] sm:$0xe0] (!%p260_p2), %v1288_v1  ;;  %457 = vmatprep.mubr.f32.mxu0 (!%p260_p2), %v1288_v1  ;;  %546 = vmatprep.mubr.f32.mxu1 (!%p260_p2), %v1288_v1 }
   0x9   : > { %338 = vst [vmem:[#allocation2 + $0x10] sm:$0xe0] (!%p260_p2), %v1288_v1  ;;  %339 = vst [vmem:[#allocation2 + $0x18] sm:$0xe0] (!%p260_p2), %v1288_v1  ;;  %1278 = vset.pattern.permute.xlu0 (!%p260_p2), %v1289_v3  ;;  %1279 = vset.pattern.permute.xlu1 (!%p260_p2), %v1289_v3  ;;  %v359_v6 = vld [vmem:[%s1483_s4 + $0x18] sm:$0xff] (!%p260_p2)  ;;  %v344_v13 = vld [vmem:[%s1482_s3] sm:$0xff] (!%p260_p2) }
   0xa   : > { %340 = vst [vmem:[#allocation2 + $0x20] sm:$0xe0] (!%p260_p2), %v1288_v1  ;;  %341 = vst [vmem:[#allocation2 + $0x28] sm:$0xe0] (!%p260_p2), %v1288_v1  ;;  %362 = vperm.xlu0 (!%p260_p2), %1278, %v356_v2   ;;  %372 = vperm.xlu1 (!%p260_p2), %1279, %v358_v4   ;;  %v782_v12 = vld [vmem:[#allocation3] sm:$0x1] (!%p260_p2) }
   0xb   : > { %342 = vst [vmem:[#allocation2 + $0x30] sm:$0xe0] (!%p260_p2), %v1288_v1  ;;  %343 = vst [vmem:[#allocation2 + $0x38] sm:$0xe0] (!%p260_p2), %v1288_v1  ;;  %vm380_vm0 = vcmask (!%p260_p2), 64512   ;;  %v345_v22 = vld [vmem:[%s1482_s3 + $0x8] sm:$0xff] (!%p260_p2) }
   0xc   : > { %v346_v23 = vld [vmem:[%s1482_s3 + $0x10] sm:$0xff] (!%p260_p2)  ;;  %v347_v24 = vld [vmem:[%s1482_s3 + $0x18] sm:$0xff] (!%p260_p2)  ;;  %vm792_vm1 = vcmask (!%p260_p2), 261120  }
   0xe   : > { %367 = vperm.xlu0 (!%p260_p2), %1278, %v357_v5   ;;  %377 = vperm.xlu1 (!%p260_p2), %1279, %v359_v6  }
   0xf   : > { %s1488_s28 = smov (!%p298_p3, %s1209_s28), 31 }
  0x10   : > { %s300_s15 = scalar_lea.vmem %s1479_s0, %s1488_s28  ;;  %s305_s18 = scalar_lea.vmem %s1480_s1, %s1488_s28 }
  0x11   : > { %s310_s21 = scalar_lea.vmem %s1481_s2, %s1488_s28  ;;  %v317_v7 = vld [vmem:[%s300_s15] sm:$0xff]  ;;  %s315_s12 = scalar_lea.vmem %s1486_s7, %s1488_s28 }
  0x12   : > { %v318_v8 = vld [vmem:[%s305_s18] sm:$0xff]  ;;  %320 = vst [vmem:[#allocation2] ss:$8 sm:$0xf] %v317_v7  ;;  %785 = vperm.xlu0 %1278, %v782_v12  }
  0x13   : > { %v319_v9 = vld [vmem:[%s310_s21] sm:$0xff]  ;;  %323 = vst [vmem:[#allocation2 + $0x1] ss:$8 sm:$0xf] %v318_v8  ;;  %v325_v10 = vmul.f32 %v318_v8, %v318_v8 }
  0x14   : > { %321 = vst [vmem:[#allocation2] ss:$8 sm:$0xf0] %v317_v7  ;;  %324 = vst [vmem:[#allocation2 + $0x1] ss:$8 sm:$0xf0] %v318_v8  ;;  %v332_v11 = vmul.f32 %v319_v9, %v318_v8 }
  0x15   : > { %330 = vst [vmem:[#allocation2 + $0x3] ss:$8 sm:$0xf] %v319_v9  ;;  %331 = vst [vmem:[#allocation2 + $0x3] ss:$8 sm:$0xf0] %v319_v9 }
  0x16   : > { %327 = vst [vmem:[#allocation2 + $0x2] ss:$8 sm:$0xf] %v325_v10  ;;  %328 = vst [vmem:[#allocation2 + $0x2] ss:$8 sm:$0xf0] %v325_v10 }
  0x17   : > { %334 = vst [vmem:[#allocation2 + $0x4] ss:$8 sm:$0xf] %v332_v11  ;;  %335 = vst [vmem:[#allocation2 + $0x4] ss:$8 sm:$0xf0] %v332_v11 }
  0x1e   : > { %v349_v14 = vld [vmem:[#allocation2 + $0x8] sm:$0xff]  ;;  %v351_v15 = vld [vmem:[#allocation2 + $0x18] sm:$0xff]  ;;  %v348_v16 = vld [vmem:[#allocation2] sm:$0xff] }
  0x1f   : > { %393 = vmatprep.subr.mxu0 %v349_v14  ;;  %482 = vmatprep.subr.mxu1 %v351_v15  ;;  %v350_v17 = vld [vmem:[#allocation2 + $0x10] sm:$0xff]  ;;  %v353_v18 = vld [vmem:[#allocation2 + $0x28] sm:$0xff]  ;;  %v355_v19 = vld [vmem:[#allocation2 + $0x38] sm:$0xff] }
  0x20   : > { %394 = vmatpush1.msra.mxu0 %v348_v16  ;;  %483 = vmatpush1.msra.mxu1 %v350_v17  ;;  %v352_v20 = vld [vmem:[#allocation2 + $0x20] sm:$0xff]  ;;  %v354_v21 = vld [vmem:[#allocation2 + $0x30] sm:$0xff] }
  0x21   : > { %1213 = vmatmul.mubr.msk.f32.vlgmr.msra.gmra.mrb[0].mxu0 %vm380_vm0, %v344_v13  ;;  %1217 = vmatmul.mubr.msk.f32.vlgmr.msra.gmra.mrb[0].mxu1 %vm380_vm0, %v344_v13 }
  0x22   : > { %571 = vmatprep.subr.mxu0 %v353_v18  ;;  %660 = vmatprep.subr.mxu1 %v355_v19 }
  0x23   : > { %572 = vmatpush1.msra.mxu0 %v352_v20  ;;  %661 = vmatpush1.msra.mxu1 %v354_v21 }
  0x24   : > { %463 = vmatprep.mubr.f32.mxu0 %v1288_v1  ;;  %552 = vmatprep.mubr.f32.mxu1 %v1288_v1 }
  0x25   : > { %1214 = vmatmul.mubr.msk.f32.gmra.mrb[2].mxu0 %vm380_vm0, %v345_v22  ;;  %1218 = vmatmul.mubr.msk.f32.gmra.mrb[2].mxu1 %vm380_vm0, %v345_v22 }
  0x26   : > { %469 = vmatprep.mubr.f32.mxu0 %v1288_v1  ;;  %558 = vmatprep.mubr.f32.mxu1 %v1288_v1 }
  0x29   : > { %1215 = vmatmul.mubr.msk.f32.gmra.mrb[4].mxu0 %vm380_vm0, %v346_v23  ;;  %1219 = vmatmul.mubr.msk.f32.gmra.mrb[4].mxu1 %vm380_vm0, %v346_v23 }
  0x2a   : > { %475 = vmatprep.mubr.f32.mxu0 %v1288_v1  ;;  %564 = vmatprep.mubr.f32.mxu1 %v1288_v1 }
  0x2d   : > { %1216 = vmatmul.mubr.msk.f32.gmra.mrb[6].mxu0 %vm380_vm0, %v347_v24  ;;  %1220 = vmatmul.mubr.msk.f32.gmra.mrb[6].mxu1 %vm380_vm0, %v347_v24 }
  0x2e   : > { %635 = vmatprep.mubr.f32.mxu0 %v1288_v1  ;;  %724 = vmatprep.mubr.f32.mxu1 %v1288_v1 }
  0x31   : > { %1221 = vmatmul.mubr.msk.f32.vlgmr.msra.gmra.mrb[8].mxu0 %vm380_vm0, %v344_v13  ;;  %1225 = vmatmul.mubr.msk.f32.vlgmr.msra.gmra.mrb[8].mxu1 %vm380_vm0, %v344_v13 }
  0x32   : > { %641 = vmatprep.mubr.f32.mxu0 %v1288_v1  ;;  %730 = vmatprep.mubr.f32.mxu1 %v1288_v1 }
  0x35   : > { %1222 = vmatmul.mubr.msk.f32.gmra.mrb[10].mxu0 %vm380_vm0, %v345_v22  ;;  %1226 = vmatmul.mubr.msk.f32.gmra.mrb[10].mxu1 %vm380_vm0, %v345_v22 }
  0x36   : > { %647 = vmatprep.mubr.f32.mxu0 %v1288_v1  ;;  %736 = vmatprep.mubr.f32.mxu1 %v1288_v1 }
  0x39   : > { %1223 = vmatmul.mubr.msk.f32.gmra.mrb[12].mxu0 %vm380_vm0, %v346_v23  ;;  %1227 = vmatmul.mubr.msk.f32.gmra.mrb[12].mxu1 %vm380_vm0, %v346_v23 }
  0x3a   : > { %653 = vmatprep.mubr.f32.mxu0 %v1288_v1  ;;  %742 = vmatprep.mubr.f32.mxu1 %v1288_v1 }
  0x3d   : > { %1224 = vmatmul.mubr.msk.f32.gmra.mrb[14].mxu0 %vm380_vm0, %v347_v24  ;;  %1228 = vmatmul.mubr.msk.f32.gmra.mrb[14].mxu1 %vm380_vm0, %v347_v24 }
  0x3e   : > { %860 = vmatprep.mubr.f32.mxu0 %v1288_v1  ;;  %931 = vmatprep.mubr.f32.mxu1 %v1288_v1 }
  0x89   : > { %v1423_v25 = vpop.permute.xlu0 %362  ;;  %v1429_v33 = vpop.permute.xlu1 %372 }
  0x8d   : > { %v1425_v30 = vpop.permute.xlu0 %367  ;;  %v1437_v60 = vpop.permute.xlu1 %377 }
  0xf4   : > { %v459_v26 = vpop.f32.mrb[0].mxu0  ;;  %v548_v27 = vpop.f32.mrb[0].mxu1 }
  0xf5   : > { %v461_v28 = vpop.f32.mrb[1].mxu0  ;;  %v550_v29 = vpop.f32.mrb[1].mxu1  ;;  %v460_v31 = vadd.f32 %v459_v26, %v1423_v25  ;;  %v549_v32 = vadd.f32 %v548_v27, %v1423_v25 }
  0xf6   : > { %v462_v34 = vadd.f32 %v461_v28, %v1423_v25  ;;  %v551_v35 = vadd.f32 %v550_v29, %v1423_v25 }
  0xf7   : > { %v749_v44 = vmax.f32 %v460_v31, 0.0  ;;  %v751_v45 = vmax.f32 %v549_v32, 0.0 }
  0xf8   : > { %v465_v36 = vpop.f32.mrb[2].mxu0  ;;  %v554_v37 = vpop.f32.mrb[2].mxu1  ;;  %v750_v48 = vmax.f32 %v462_v34, 0.0  ;;  %v752_v49 = vmax.f32 %v551_v35, 0.0 }
  0xf9   : > { %v466_v38 = vadd.f32 %v465_v36, %v1425_v30  ;;  %v555_v39 = vadd.f32 %v554_v37, %v1425_v30  ;;  %v467_v40 = vpop.f32.mrb[3].mxu0  ;;  %v556_v41 = vpop.f32.mrb[3].mxu1 }
  0xfa   : > { %v468_v42 = vadd.f32 %v467_v40, %v1425_v30  ;;  %v557_v43 = vadd.f32 %v556_v41, %v1425_v30 }
  0xfb   : > { %v757_v46 = vmax.f32 %v466_v38, 0.0  ;;  %v759_v47 = vmax.f32 %v555_v39, 0.0  ;;  %v781_v39 = vld [vmem:[%s1484_s5] sm:$0x1] }
  0xfc   : > { %v758_v50 = vmax.f32 %v468_v42, 0.0  ;;  %v760_v51 = vmax.f32 %v557_v43, 0.0  ;;  %v471_v52 = vpop.f32.mrb[4].mxu0  ;;  %v560_v53 = vpop.f32.mrb[4].mxu1 }
  0xfd   : > { %v1237_v54 = vpack.c.bf16 %v757_v46, %v749_v44  ;;  %v1245_v55 = vpack.c.bf16 %v759_v47, %v751_v45  ;;  %v473_v56 = vpop.f32.mrb[5].mxu0  ;;  %v562_v57 = vpop.f32.mrb[5].mxu1  ;;  %v472_v61 = vadd.f32 %v471_v52, %v1429_v33  ;;  %v561_v62 = vadd.f32 %v560_v53, %v1429_v33 }
  0xfe   : > { %v1235_v58 = vpack.c.bf16 %v758_v50, %v750_v48  ;;  %v1243_v59 = vpack.c.bf16 %v760_v51, %v752_v49  ;;  %v474_v63 = vadd.f32 %v473_v56, %v1429_v33  ;;  %v563_v0 = vadd.f32 %v562_v57, %v1429_v33 }
  0xff   : > { %v765_v10 = vmax.f32 %v472_v61, 0.0  ;;  %v767_v11 = vmax.f32 %v561_v62, 0.0 }
 0x100   : > { %v477_v2 = vpop.f32.mrb[6].mxu0  ;;  %v566_v3 = vpop.f32.mrb[6].mxu1  ;;  %1236 = vmatprep.subr.bf16.mxu0 %v1235_v58  ;;  %1244 = vmatprep.subr.bf16.mxu1 %v1243_v59  ;;  %v766_v14 = vmax.f32 %v474_v63, 0.0  ;;  %v768_v15 = vmax.f32 %v563_v0, 0.0 }
 0x101   : > { %v478_v4 = vadd.f32 %v477_v2, %v1437_v60  ;;  %v567_v5 = vadd.f32 %v566_v3, %v1437_v60  ;;  %v479_v6 = vpop.f32.mrb[7].mxu0  ;;  %v568_v7 = vpop.f32.mrb[7].mxu1  ;;  %1238 = vmatpush1.bf16.msra.mxu0 %v1237_v54  ;;  %1246 = vmatpush1.bf16.msra.mxu1 %v1245_v55 }
 0x102   : > { %v480_v8 = vadd.f32 %v479_v6, %v1437_v60  ;;  %v569_v9 = vadd.f32 %v568_v7, %v1437_v60 }
 0x103   : > { %v773_v12 = vmax.f32 %v478_v4, 0.0  ;;  %v775_v13 = vmax.f32 %v567_v5, 0.0 }
 0x104   : > { %v774_v16 = vmax.f32 %v480_v8, 0.0  ;;  %v776_v17 = vmax.f32 %v569_v9, 0.0  ;;  %v637_v18 = vpop.f32.mrb[8].mxu0  ;;  %v726_v19 = vpop.f32.mrb[8].mxu1 }
 0x105   : > { %v1241_v20 = vpack.c.bf16 %v773_v12, %v765_v10  ;;  %v1249_v21 = vpack.c.bf16 %v775_v13, %v767_v11  ;;  %v639_v22 = vpop.f32.mrb[9].mxu0  ;;  %v728_v23 = vpop.f32.mrb[9].mxu1  ;;  %v638_v27 = vadd.f32 %v637_v18, %v1423_v25  ;;  %v727_v28 = vadd.f32 %v726_v19, %v1423_v25 }
 0x106   : > { %v1239_v24 = vpack.c.bf16 %v774_v16, %v766_v14  ;;  %v1247_v26 = vpack.c.bf16 %v776_v17, %v768_v15  ;;  %v640_v29 = vadd.f32 %v639_v22, %v1423_v25  ;;  %v729_v31 = vadd.f32 %v728_v23, %v1423_v25 }
 0x107   : > { %v753_v41 = vmax.f32 %v638_v27, 0.0  ;;  %v755_v42 = vmax.f32 %v727_v28, 0.0  ;;  %v1290_v17 = vmov 1966171168  }
 0x108   : > { %v643_v32 = vpop.f32.mrb[10].mxu0  ;;  %v732_v34 = vpop.f32.mrb[10].mxu1  ;;  %1240 = vmatprep.subr.bf16.mxu0 %v1239_v24  ;;  %1248 = vmatprep.subr.bf16.mxu1 %v1247_v26  ;;  %v754_v45 = vmax.f32 %v640_v29, 0.0  ;;  %v756_v46 = vmax.f32 %v729_v31, 0.0  ;;  %v1093_v18 = vunpack.c.l.s4 %v1290_v17 }
 0x109   : > { %v644_v35 = vadd.f32 %v643_v32, %v1425_v30  ;;  %v733_v36 = vadd.f32 %v732_v34, %v1425_v30  ;;  %v645_v37 = vpop.f32.mrb[11].mxu0  ;;  %v734_v38 = vpop.f32.mrb[11].mxu1  ;;  %1242 = vmatpush1.bf16.msra.mxu0 %v1241_v20  ;;  %1250 = vmatpush1.bf16.msra.mxu1 %v1249_v21 }
 0x10a   : > { %v646_v40 = vadd.f32 %v645_v37, %v1425_v30  ;;  %v735_v25 = vadd.f32 %v734_v38, %v1425_v30  ;;  %v786_v20 = vpop.permute.xlu0 %785  ;;  %v1094_v21 = vunpack.c.0.s8 %v1093_v18 }
 0x10b   : > { %v761_v43 = vmax.f32 %v644_v35, 0.0  ;;  %v763_v44 = vmax.f32 %v733_v36, 0.0 }
 0x10c   : > { %v762_v47 = vmax.f32 %v646_v40, 0.0  ;;  %v764_v48 = vmax.f32 %v735_v25, 0.0  ;;  %v649_v49 = vpop.f32.mrb[12].mxu0  ;;  %v738_v50 = vpop.f32.mrb[12].mxu1  ;;  %1229 = vmatmul.mubr.msk.f32.vlgmr.msra.gmra.mrb[16].mxu0 %vm792_vm1, %v781_v39  ;;  %1230 = vmatmul.mubr.msk.f32.vlgmr.msra.gmra.mrb[16].mxu1 %vm792_vm1, %v781_v39 }
 0x10d   : > { %v1253_v51 = vpack.c.bf16 %v761_v43, %v753_v41  ;;  %v1261_v52 = vpack.c.bf16 %v763_v44, %v755_v42  ;;  %v651_v53 = vpop.f32.mrb[13].mxu0  ;;  %v740_v54 = vpop.f32.mrb[13].mxu1  ;;  %1002 = vmatprep.mubr.f32.mxu0 %v1288_v1  ;;  %1073 = vmatprep.mubr.f32.mxu1 %v1288_v1  ;;  %v650_v56 = vadd.f32 %v649_v49, %v1429_v33 }
 0x10e   : > { %v1251_v30 = vpack.c.bf16 %v762_v47, %v754_v45  ;;  %v1259_v55 = vpack.c.bf16 %v764_v48, %v756_v46  ;;  %v739_v57 = vadd.f32 %v738_v50, %v1429_v33  ;;  %v652_v58 = vadd.f32 %v651_v53, %v1429_v33 }
 0x10f   : > { %v741_v59 = vadd.f32 %v740_v54, %v1429_v33  ;;  %v769_v5 = vmax.f32 %v650_v56, 0.0 }
 0x110   : > { %v655_v61 = vpop.f32.mrb[14].mxu0  ;;  %v744_v62 = vpop.f32.mrb[14].mxu1  ;;  %1252 = vmatprep.subr.bf16.mxu0 %v1251_v30  ;;  %1260 = vmatprep.subr.bf16.mxu1 %v1259_v55  ;;  %v771_v6 = vmax.f32 %v739_v57, 0.0  ;;  %v770_v8 = vmax.f32 %v652_v58, 0.0 }
 0x111   : > { %v656_v63 = vadd.f32 %v655_v61, %v1437_v60  ;;  %v745_v0 = vadd.f32 %v744_v62, %v1437_v60  ;;  %v657_v2 = vpop.f32.mrb[15].mxu0  ;;  %v746_v3 = vpop.f32.mrb[15].mxu1  ;;  %1254 = vmatpush1.bf16.msra.mxu0 %v1253_v51  ;;  %1262 = vmatpush1.bf16.msra.mxu1 %v1261_v52  ;;  %v772_v9 = vmax.f32 %v741_v59, 0.0 }
 0x112   : > { %v658_v1 = vadd.f32 %v657_v2, %v1437_v60  ;;  %v747_v4 = vadd.f32 %v746_v3, %v1437_v60  ;;  %v788_v60 = vlaneseq }
 0x113   : > { %v777_v7 = vmax.f32 %v656_v63, 0.0  ;;  %v779_v33 = vmax.f32 %v745_v0, 0.0 }
 0x114   : > { %v778_v10 = vmax.f32 %v658_v1, 0.0  ;;  %v780_v11 = vmax.f32 %v747_v4, 0.0  ;;  %v789_v16 = vshrl.u32 %v788_v60, 7 }
 0x115   : > { %v1257_v12 = vpack.c.bf16 %v777_v7, %v769_v5  ;;  %v1265_v13 = vpack.c.bf16 %v779_v33, %v771_v6 }
 0x116   : > { %v1255_v14 = vpack.c.bf16 %v778_v10, %v770_v8  ;;  %v1263_v15 = vpack.c.bf16 %v780_v11, %v772_v9  ;;  %v790_v19 = vsub.s32 0, %v789_v16  ;;  %v1097_v31 = vsub.s32 %v1094_v21, %v789_v16 }
 0x118   : > { %1256 = vmatprep.subr.bf16.mxu0 %v1255_v14  ;;  %1264 = vmatprep.subr.bf16.mxu1 %v1263_v15  ;;  %v791_v22 = vrot.slane %v786_v20, %v790_v19 }
 0x119   : > { %1258 = vmatpush1.bf16.msra.mxu0 %v1257_v12  ;;  %1266 = vmatpush1.bf16.msra.mxu1 %v1265_v13 }
 0x11c   : > { %1231 = vmatmul.mubr.msk.f32.vlgmr.msra.gmra.mrb[18].mxu0 %vm792_vm1, %v781_v39  ;;  %1232 = vmatmul.mubr.msk.f32.vlgmr.msra.gmra.mrb[18].mxu1 %vm792_vm1, %v781_v39 }
 0x1df   : > { %v862_v23 = vpop.f32.mrb[16].mxu0  ;;  %v933_v24 = vpop.f32.mrb[16].mxu1 }
 0x1e0   : > { %v863_v26 = vadd.f32 %v862_v23, %v791_v22  ;;  %v934_v27 = vadd.f32 %v933_v24, %v791_v22  ;;  %v864_v28 = vpop.f32.mrb[17].mxu0  ;;  %v935_v29 = vpop.f32.mrb[17].mxu1 }
 0x1e1   : > { %v865_v32 = vadd.f32 %v864_v28, %v791_v22  ;;  %v936_v34 = vadd.f32 %v935_v29, %v791_v22 }
 0x1e3   : > { %v1088_v35 = vcombine.low %v863_v26, %v865_v32  ;;  %v1089_v36 = vcombine.low %v934_v27, %v936_v34 }
 0x1e5   : > { %v1098_v37 = vrot.slane %v1088_v35, %v1097_v31  ;;  %v1105_v38 = vrot.slane %v1089_v36, %v1097_v31 }
 0x1e7   : > { %v1120_v39 = vcombine.low %v1098_v37, %v1105_v38 }
 0x1e9   : > { %v1128_v52 = vrot.slane %v1120_v39, %v1097_v31 }
 0x1ef   : > { %v1004_v40 = vpop.f32.mrb[18].mxu0  ;;  %v1075_v25 = vpop.f32.mrb[18].mxu1 }
 0x1f0   : > { %v1005_v41 = vadd.f32 %v1004_v40, %v791_v22  ;;  %v1076_v42 = vadd.f32 %v1075_v25, %v791_v22  ;;  %v1006_v43 = vpop.f32.mrb[19].mxu0  ;;  %v1077_v44 = vpop.f32.mrb[19].mxu1 }
 0x1f1   : > { %v1007_v45 = vadd.f32 %v1006_v43, %v791_v22  ;;  %v1078_v46 = vadd.f32 %v1077_v44, %v791_v22 }
 0x1f3   : > { %v1090_v47 = vcombine.low %v1005_v41, %v1007_v45  ;;  %v1091_v48 = vcombine.low %v1076_v42, %v1078_v46 }
 0x1f5   : > { %v1112_v49 = vrot.slane %v1090_v47, %v1097_v31  ;;  %v1119_v50 = vrot.slane %v1091_v48, %v1097_v31 }
 0x1f7   : > { %v1121_v51 = vcombine.low %v1112_v49, %v1119_v50 }
 0x1f9   : > { %v1135_v53 = vrot.slane %v1121_v51, %v1097_v31 }
 0x1fb   : > { %v1136_v54 = vcombine.low %v1128_v52, %v1135_v53 }
 0x1fd   : > { %1138 = vst [vmem:[%s315_s12] sm:$0xff] %v1136_v54 }
 0x1fe PF: > { %s19_s26 = sadd.s32 1, %s1286_s26  }
 0x1ff   : > { %p16_p4 = scmp.ge.s32.totalorder %s19_s26, 6  }
 0x201   :  { %18 = sbr.rel (!%p16_p4) target bundleno = 3 (0x3), region = 88 }

// kernel: _lambda_.11
= control target key start
LH: loop header
LB: loop body
LE: loop exit
PB: predicated region body
PF: predicated region fallthrough
CT: control target
= control target key end

     0   :  { %s1106_s24 = smov 0   ;;  %s1108_s25 = smov 0   ;;  %s1264_s0 = inlined_call_operand.vmem [shape: f32[2,1,2048], index: 0, kind: input, shape index: {}]   ;;  %s1265_s1 = inlined_call_operand.vmem [shape: f32[2,1,2048], index: 1, kind: input, shape index: {}]   ;;  %s1266_s2 = inlined_call_operand.vmem [shape: f32[2,1,2048], index: 2, kind: input, shape index: {}]   ;;  %s1267_s3 = inlined_call_operand.vmem [shape: f32[2,1,2048], index: 3, kind: input, shape index: {}]   ;;  %s1268_s4 = inlined_call_operand.vmem [shape: f32[3,2048], index: 4, kind: input, shape index: {}]   ;;  %s1269_s5 = inlined_call_operand.vmem [shape: f32[8,10], index: 5, kind: input, shape index: {}]   ;;  %s1270_s6 = inlined_call_operand.vmem [shape: f32[8,1], index: 6, kind: input, shape index: {}]   ;;  %s1271_s7 = inlined_call_operand.vmem [shape: f32[2,8,2048], index: 7, kind: output, shape index: {}]  }
   0x1   :  { %s1110_s26 = smov 0   ;;  %s1112_s27 = smov 0  }
   0x2   :  { %s1114_s28 = smov 0  }
   0x3 LB: > { %s26_s29 = sadd.s32 1, %s1046_s26  ;;  %s29_s30 = sadd.s32 1, %s1050_s27  ;;  %s1054_s28 = sphi %s1114_s28, %s17_s28   ;;  %s1050_s27 = sphi %s1112_s27, %s1275_s27   ;;  %s1046_s26 = sphi %s1110_s26, %s1274_s26   ;;  %s1042_s25 = sphi %s1108_s25, %s1273_s25   ;;  %s1038_s24 = sphi %s1106_s24, %s1272_s24  }
   0x4   : > { %p27_p0 = scmp.ge.s32.totalorder %s26_s29, 4  ;;  %p938_p1 = scmp.ge.s32.totalorder %s1054_s28, 1 }
   0x5   : > { %p316_p2 = scmp.lt.s32.totalorder %s1054_s28, 9 }
   0x6   : > { %s1277_s29 = smov (%p27_p0, %s26_s29), 0  ;;  %s1279_s30 = smov (!%p27_p0, %s29_s30), %s1050_s27 }
   0x7   : > { %p317_p3 = pnand %p938_p1, %p316_p2  ;;  %p31_p4 = scmp.ge.s32.totalorder %s1279_s30, 2 }
   0x8   : > { %v449_v0 = vld [vmem:[%s1269_s5] sm:$0xff] (!%p317_p3)  ;;  %v1056_v1 = vmov (!%p317_p3), 1   ;;  %v1057_v2 = vmov (!%p317_p3), 0   ;;  %v1058_v4 = vmov (!%p317_p3), 2   ;;  %v1059_v5 = vmov (!%p317_p3), 3   ;;  %s939_s12 = sshll.u32 (!%p317_p3), %s1038_s24, 2 }
   0x9   : > { %s1281_s30 = smov (%p31_p4, %s1279_s30), 0  ;;  %320 = sbr.rel (%p317_p3) target bundleno = 172 (0xac), region = 48 }
   0xa   : > { %1007 = vset.pattern.permute.xlu1 (!%p317_p3), %v1056_v1  ;;  %1006 = vset.pattern.permute.xlu0 (!%p317_p3), %v1057_v2  ;;  %v448_v3 = vld [vmem:[%s1270_s6] sm:$0xff] (!%p317_p3)  ;;  %v1060_v6 = vmov (!%p317_p3), 4   ;;  %v1061_v7 = vmov (!%p317_p3), 6   ;;  %v1062_v8 = vmov (!%p317_p3), 5   ;;  %v1063_v9 = vmov (!%p317_p3), 9   ;;  %p385_p5 = scmp.lt.s32.totalorder (!%p317_p3), %s1042_s25, 1 }
   0xb   : > { %490 = vperm.xlu1 (!%p317_p3), %1007, %v449_v0   ;;  %452 = vperm.xlu0 (!%p317_p3), %1006, %v449_v0   ;;  %v1064_v10 = vmov (!%p317_p3), 7   ;;  %v1065_v11 = vmov (!%p317_p3), 8   ;;  %p387_p6 = scmp.lt.s32.totalorder (!%p317_p3), %s939_s12, 15  ;;  %v456_v12 = vlaneseq (!%p317_p3) }
   0xd   : > { %v457_v13 = vshrl.u32 (!%p317_p3), %v456_v12, 7 }
   0xf   : > { %1008 = vset.pattern.permute.xlu1 (!%p317_p3), %v1058_v4  ;;  %482 = vperm.xlu0 (!%p317_p3), %1006, %v448_v3   ;;  %v1168_v16 = vsub.s32 (!%p317_p3), 0, %v457_v13  ;;  %v1170_v17 = vsub.s32 (!%p317_p3), 1, %v457_v13  ;;  %v1173_v20 = vsub.s32 (!%p317_p3), 2, %v457_v13  ;;  %v1175_v21 = vsub.s32 (!%p317_p3), 3, %v457_v13 }
  0x10   : > { %523 = vperm.xlu1 %1008, %v449_v0   ;;  %s1283_s25 = smov (!%p385_p5, %s1042_s25), 1  ;;  %s1285_s12 = smov (!%p387_p6, %s939_s12), 15 }
  0x11   : > { %s940_s13 = sshll.u32 %s1283_s25, 4  ;;  %s948_s9 = sshll.u32 %s1285_s12, 2 }
  0x12   : > { %s1152_s14 = sadd.s32 %s940_s13, %s1285_s12  ;;  %s424_s13 = scalar_lea.vmem %s1268_s4, %s948_s9 }
  0x13   : > { %1009 = vset.pattern.permute.xlu0 %v1059_v5  ;;  %s391_s17 = scalar_lea.vmem %s1264_s0, %s1152_s14  ;;  %s400_s20 = scalar_lea.vmem %s1265_s1, %s1152_s14 }
  0x14   : > { %1010 = vset.pattern.permute.xlu1 %v1060_v6  ;;  %556 = vperm.xlu0 %1009, %v449_v0   ;;  %v436_v14 = vld [vmem:[%s391_s17] sm:$0xf]  ;;  %s409_s23 = scalar_lea.vmem %s1266_s2, %s1152_s14  ;;  %s418_s8 = scalar_lea.vmem %s1267_s3, %s1152_s14 }
  0x15   : > { %589 = vperm.xlu1 %1010, %v449_v0   ;;  %v1162_v15 = vld [vmem:[%s400_s20] sm:$0xf]  ;;  %v459_v22 = vrot.slane %v436_v14, %v1168_v16  ;;  %v463_v24 = vrot.slane %v436_v14, %v1170_v17  ;;  %v467_v25 = vrot.slane %v436_v14, %v1173_v20  ;;  %v471_v26 = vrot.slane %v436_v14, %v1175_v21  ;;  %s951_s12 = sshll.u32 %s1152_s14, 3 }
  0x16   : > { %v445_v18 = vmul.f32 %v1162_v15, %v436_v14  ;;  %v438_v19 = vld [vmem:[%s409_s23] sm:$0xf]  ;;  %v1184_v23 = vmul.f32 %v1162_v15, %v1162_v15  ;;  %v563_v36 = vrot.slane %v1162_v15, %v1168_v16  ;;  %v567_v39 = vrot.slane %v1162_v15, %v1170_v17  ;;  %s434_s17 = scalar_lea.vmem %s1271_s7, %s951_s12 }
  0x17   : > { %v530_v27 = vrot.slane %v438_v19, %v1168_v16  ;;  %v534_v30 = vrot.slane %v438_v19, %v1170_v17  ;;  %v538_v31 = vrot.slane %v438_v19, %v1173_v20  ;;  %v1194_v32 = vld [vmem:[%s418_s8] sm:$0xf]  ;;  %v542_v35 = vrot.slane %v438_v19, %v1175_v21 }
  0x18   : > { %1012 = vset.pattern.permute.xlu0 %v1061_v7  ;;  %v497_v28 = vrot.slane %v445_v18, %v1168_v16  ;;  %v501_v29 = vrot.slane %v445_v18, %v1170_v17  ;;  %v505_v33 = vrot.slane %v445_v18, %v1173_v20  ;;  %v509_v34 = vrot.slane %v445_v18, %v1175_v21 }
  0x19   : > { %1011 = vset.pattern.permute.xlu1 %v1062_v8  ;;  %655 = vperm.xlu0 %1012, %v449_v0   ;;  %v571_v40 = vrot.slane %v1162_v15, %v1173_v20  ;;  %v575_v41 = vrot.slane %v1162_v15, %v1175_v21  ;;  %v596_v42 = vrot.slane %v1184_v23, %v1168_v16 }
  0x1a   : > { %622 = vperm.xlu1 %1011, %v449_v0   ;;  %v600_v43 = vrot.slane %v1184_v23, %v1170_v17  ;;  %v604_v44 = vrot.slane %v1184_v23, %v1173_v20  ;;  %v608_v45 = vrot.slane %v1184_v23, %v1175_v21  ;;  %v629_v46 = vrot.slane %v1194_v32, %v1168_v16 }
  0x1b   : > { %v633_v51 = vrot.slane %v1194_v32, %v1170_v17  ;;  %v637_v52 = vrot.slane %v1194_v32, %v1173_v20  ;;  %v641_v53 = vrot.slane %v1194_v32, %v1175_v21  ;;  %v447_v54 = vmul.f32 %v1194_v32, %v1162_v15 }
  0x1d   : > { %1015 = vset.pattern.permute.xlu0 %v1063_v9  ;;  %v662_v9 = vrot.slane %v447_v54, %v1168_v16  ;;  %v674_v12 = vrot.slane %v447_v54, %v1175_v21 }
  0x1e   : > { %1013 = vset.pattern.permute.xlu1 %v1064_v10  ;;  %754 = vperm.xlu0 %1015, %v449_v0   ;;  %v666_v10 = vrot.slane %v447_v54, %v1170_v17 }
  0x1f   : > { %688 = vperm.xlu1 %1013, %v449_v0  }
  0x23   : > { %1014 = vset.pattern.permute.xlu1 %v1065_v11  ;;  %v670_v11 = vrot.slane %v447_v54, %v1173_v20  ;;  %v953_v54 = vld [vmem:[%s424_s13 + $0x2] ss:$4 sm:$0xf] }
  0x24   : > { %721 = vperm.xlu1 %1014, %v449_v0  }
  0x8a   : > { %v491_v37 = vpop.permute.xlu1 %490  ;;  %v453_v38 = vpop.permute.xlu0 %452 }
  0x8b   : > { %v476_v47 = vmul.f32 %v459_v22, %v453_v38  ;;  %v477_v48 = vmul.f32 %v463_v24, %v453_v38  ;;  %v478_v49 = vmul.f32 %v467_v25, %v453_v38  ;;  %v479_v50 = vmul.f32 %v471_v26, %v453_v38 }
  0x8c   : > { %v514_v55 = vmul.f32 %v497_v28, %v491_v37  ;;  %v515_v56 = vmul.f32 %v501_v29, %v491_v37  ;;  %v516_v57 = vmul.f32 %v505_v33, %v491_v37  ;;  %v517_v58 = vmul.f32 %v509_v34, %v491_v37 }
  0x8e   : > { %v483_v59 = vpop.permute.xlu0 %482 }
  0x8f   : > { %v485_v60 = vadd.f32 %v483_v59, %v476_v47  ;;  %v486_v61 = vadd.f32 %v483_v59, %v477_v48  ;;  %v487_v62 = vadd.f32 %v483_v59, %v478_v49  ;;  %v488_v63 = vadd.f32 %v483_v59, %v479_v50  ;;  %v524_v0 = vpop.permute.xlu1 %523 }
  0x90   : > { %v547_v1 = vmul.f32 %v530_v27, %v524_v0  ;;  %v548_v2 = vmul.f32 %v534_v30, %v524_v0  ;;  %v549_v3 = vmul.f32 %v538_v31, %v524_v0  ;;  %v550_v4 = vmul.f32 %v542_v35, %v524_v0 }
  0x91   : > { %v518_v5 = vadd.f32 %v514_v55, %v485_v60  ;;  %v519_v6 = vadd.f32 %v515_v56, %v486_v61  ;;  %v520_v7 = vadd.f32 %v516_v57, %v487_v62  ;;  %v521_v8 = vadd.f32 %v517_v58, %v488_v63  ;;  %v952_v63 = vld [vmem:[%s424_s13 + $0x1] ss:$4 sm:$0xf] }
  0x92   : > { %v761_v0 = vrot.slane %v953_v54, %v1168_v16 }
  0x93   : > { %v551_v13 = vadd.f32 %v547_v1, %v518_v5  ;;  %v552_v14 = vadd.f32 %v548_v2, %v519_v6  ;;  %v553_v15 = vadd.f32 %v549_v3, %v520_v7  ;;  %v554_v18 = vadd.f32 %v550_v4, %v521_v8  ;;  %v557_v19 = vpop.permute.xlu0 %556 }
  0x94   : > { %v580_v22 = vmul.f32 %v563_v36, %v557_v19  ;;  %v581_v23 = vmul.f32 %v567_v39, %v557_v19  ;;  %v582_v24 = vmul.f32 %v571_v40, %v557_v19  ;;  %v583_v25 = vmul.f32 %v575_v41, %v557_v19  ;;  %v590_v26 = vpop.permute.xlu1 %589  ;;  %v440_v40 = vld [vmem:[%s424_s13] ss:$4 sm:$0xf] }
  0x95   : > { %v613_v27 = vmul.f32 %v596_v42, %v590_v26  ;;  %v614_v28 = vmul.f32 %v600_v43, %v590_v26  ;;  %v615_v29 = vmul.f32 %v604_v44, %v590_v26  ;;  %v616_v30 = vmul.f32 %v608_v45, %v590_v26 }
  0x96   : > { %v584_v31 = vadd.f32 %v580_v22, %v551_v13  ;;  %v585_v32 = vadd.f32 %v581_v23, %v552_v14  ;;  %v586_v33 = vadd.f32 %v582_v24, %v553_v15  ;;  %v587_v34 = vadd.f32 %v583_v25, %v554_v18 }
  0x97   : > { %v695_v55 = vrot.slane %v440_v40, %v1168_v16  ;;  %v699_v56 = vrot.slane %v440_v40, %v1170_v17  ;;  %v703_v57 = vrot.slane %v440_v40, %v1173_v20  ;;  %v707_v58 = vrot.slane %v440_v40, %v1175_v21 }
  0x98   : > { %v617_v35 = vadd.f32 %v613_v27, %v584_v31  ;;  %v618_v37 = vadd.f32 %v614_v28, %v585_v32  ;;  %v619_v38 = vadd.f32 %v615_v29, %v586_v33  ;;  %v620_v36 = vadd.f32 %v616_v30, %v587_v34  ;;  %v656_v39 = vpop.permute.xlu0 %655 }
  0x99   : > { %v623_v41 = vpop.permute.xlu1 %622  ;;  %v679_v47 = vmul.f32 %v662_v9, %v656_v39  ;;  %v680_v42 = vmul.f32 %v666_v10, %v656_v39  ;;  %v681_v43 = vmul.f32 %v670_v11, %v656_v39  ;;  %v682_v44 = vmul.f32 %v674_v12, %v656_v39 }
  0x9a   : > { %v646_v45 = vmul.f32 %v629_v46, %v623_v41  ;;  %v647_v48 = vmul.f32 %v633_v51, %v623_v41  ;;  %v648_v49 = vmul.f32 %v637_v52, %v623_v41  ;;  %v649_v50 = vmul.f32 %v641_v53, %v623_v41 }
  0x9b   : > { %v765_v46 = vrot.slane %v953_v54, %v1170_v17  ;;  %v769_v51 = vrot.slane %v953_v54, %v1173_v20  ;;  %v773_v52 = vrot.slane %v953_v54, %v1175_v21  ;;  %v728_v10 = vrot.slane %v952_v63, %v1168_v16 }
  0x9c   : > { %v650_v59 = vadd.f32 %v646_v45, %v617_v35  ;;  %v651_v60 = vadd.f32 %v647_v48, %v618_v37  ;;  %v652_v61 = vadd.f32 %v648_v49, %v619_v38  ;;  %v653_v62 = vadd.f32 %v649_v50, %v620_v36 }
  0x9d   : > { %v755_v9 = vpop.permute.xlu0 %754  ;;  %v732_v11 = vrot.slane %v952_v63, %v1170_v17  ;;  %v736_v12 = vrot.slane %v952_v63, %v1173_v20  ;;  %v740_v13 = vrot.slane %v952_v63, %v1175_v21 }
  0x9e   : > { %v683_v53 = vadd.f32 %v679_v47, %v650_v59  ;;  %v684_v1 = vadd.f32 %v680_v42, %v651_v60  ;;  %v685_v2 = vadd.f32 %v681_v43, %v652_v61  ;;  %v686_v3 = vadd.f32 %v682_v44, %v653_v62  ;;  %v689_v4 = vpop.permute.xlu1 %688 }
  0x9f   : > { %v712_v5 = vmul.f32 %v695_v55, %v689_v4  ;;  %v713_v6 = vmul.f32 %v699_v56, %v689_v4  ;;  %v714_v7 = vmul.f32 %v703_v57, %v689_v4  ;;  %v715_v8 = vmul.f32 %v707_v58, %v689_v4 }
  0xa0   : > { %v778_v14 = vmul.f32 %v761_v0, %v755_v9  ;;  %v779_v15 = vmul.f32 %v765_v46, %v755_v9  ;;  %v780_v18 = vmul.f32 %v769_v51, %v755_v9  ;;  %v781_v19 = vmul.f32 %v773_v52, %v755_v9 }
  0xa1   : > { %v716_v23 = vadd.f32 %v712_v5, %v683_v53  ;;  %v717_v24 = vadd.f32 %v713_v6, %v684_v1  ;;  %v718_v25 = vadd.f32 %v714_v7, %v685_v2  ;;  %v719_v26 = vadd.f32 %v715_v8, %v686_v3 }
  0xa3   : > { %v722_v22 = vpop.permute.xlu1 %721 }
  0xa4   : > { %v745_v27 = vmul.f32 %v728_v10, %v722_v22  ;;  %v746_v28 = vmul.f32 %v732_v11, %v722_v22  ;;  %v747_v29 = vmul.f32 %v736_v12, %v722_v22  ;;  %v748_v16 = vmul.f32 %v740_v13, %v722_v22 }
  0xa6   : > { %v749_v17 = vadd.f32 %v745_v27, %v716_v23  ;;  %v750_v30 = vadd.f32 %v746_v28, %v717_v24  ;;  %v751_v31 = vadd.f32 %v747_v29, %v718_v25  ;;  %v752_v20 = vadd.f32 %v748_v16, %v719_v26 }
  0xa8   : > { %v782_v21 = vadd.f32 %v778_v14, %v749_v17  ;;  %v783_v32 = vadd.f32 %v779_v15, %v750_v30  ;;  %v784_v33 = vadd.f32 %v780_v18, %v751_v31  ;;  %v785_v34 = vadd.f32 %v781_v19, %v752_v20 }
  0xaa   : > { %786 = vst [vmem:[%s434_s17] sm:$0xff] %v782_v21  ;;  %787 = vst [vmem:[%s434_s17 + $0x8] sm:$0xff] %v783_v32 }
  0xab   : > { %788 = vst [vmem:[%s434_s17 + $0x10] sm:$0xff] %v784_v33  ;;  %789 = vst [vmem:[%s434_s17 + $0x18] sm:$0xff] %v785_v34 }
  0xac PF: > { %s17_s28 = sadd.s32 1, %s1054_s28   ;;  %s1272_s24 = smov %s1046_s26 }
  0xad   : > { %p14_p7 = scmp.ge.s32.totalorder %s17_s28, 10   ;;  %s1273_s25 = smov %s1050_s27 }
  0xae   : > { %s1274_s26 = smov %s1277_s29  ;;  %s1275_s27 = smov %s1281_s30 }
  0xaf   :  { %16 = sbr.rel (!%p14_p7) target bundleno = 3 (0x3), region = 92 }

// kernel: _lambda_.12
= control target key start
LH: loop header
LB: loop body
LE: loop exit
PB: predicated region body
PF: predicated region fallthrough
CT: control target
= control target key end

     0   :  { %s1673_s18 = smov 0   ;;  %s1675_s19 = smov 0   ;;  %s2704_s0 = inlined_call_operand.vmem [shape: f32[2,8,2048], index: 0, kind: input, shape index: {}]   ;;  %s2705_s1 = inlined_call_operand.vmem [shape: f32[2,8,2048], index: 1, kind: input, shape index: {}]   ;;  %s2706_s2 = inlined_call_operand.vmem [shape: f32[8,8,2048], index: 2, kind: input, shape index: {}]   ;;  %s2707_s3 = inlined_call_operand.vmem [shape: f32[8,8,2048], index: 3, kind: input, shape index: {}]   ;;  %s2708_s4 = inlined_call_operand.vmem [shape: f32[2,8,2048], index: 4, kind: output, shape index: {0}]   ;;  %s2709_s5 = inlined_call_operand.vmem [shape: f32[2,8,2048], index: 5, kind: output, shape index: {1}]  }
   0x1   :  { %s1677_s20 = smov 0   ;;  %s1679_s21 = smov 0  }
   0x2   :  { %s1681_s22 = smov 0   ;;  %s1683_s23 = smov 0  }
   0x3   :  { %s1685_s24 = smov 0  }
   0x4 LB: > { %s25_s25 = sadd.s32 1, %s1633_s22  ;;  %s28_s26 = sadd.s32 1, %s1637_s23  ;;  %s1641_s24 = sphi %s1685_s24, %s16_s24   ;;  %s1637_s23 = sphi %s1683_s23, %s2959_s23   ;;  %s1633_s22 = sphi %s1681_s22, %s2958_s22   ;;  %s1629_s21 = sphi %s1679_s21, %s2957_s21   ;;  %s1625_s20 = sphi %s1677_s20, %s2956_s20   ;;  %s1621_s19 = sphi %s1675_s19, %s2955_s19   ;;  %s1617_s18 = sphi %s1673_s18, %s2954_s18  }
   0x5   : > { %p26_p0 = scmp.ge.s32.totalorder %s25_s25, 2  ;;  %p98_p1 = scmp.ne.s32.totalorder %s1621_s19, %s1617_s18 }
   0x6   : > { %p99_p2 = scmp.eq.s32.totalorder %s1641_s24, 0  ;;  %s91_s29 = sadd.s32 1, %s1621_s19 }
   0x7   : > { %s2961_s25 = smov (%p26_p0, %s25_s25), 0  ;;  %s2963_s26 = smov (!%p26_p0, %s28_s26), %s1637_s23 }
   0x8   : > { %p1716_p3 = por %p99_p2, %p98_p1  ;;  %p30_p4 = scmp.ge.s32.totalorder %s2963_s26, 4 }
   0x9   : > { %p1435_p6 = scmp.ge.s32.totalorder %s1641_s24, 8 }
   0xa   : > { %s2965_s26 = smov (%p30_p4, %s2963_s26), 0 }
   0xb   : > { %s88_s28 = ssub.s32 %s1637_s23, %s2965_s26  ;;  %206 = sbr.rel (%p1435_p6) target bundleno = 58 (0x3a), region = 16 }
   0xc   : > { %p89_p5 = scmp.eq.s32.totalorder %s88_s28, 0 }
   0xe   : > { %s1726_s30 = scalar_select %p89_p5, %s1621_s19, %s91_s29  }
  0x12   : > { %235 = sbr.rel (!%p1716_p3) target bundleno = 38 (0x26), region = 28  ;;  %s237_s6 = sand.u32 (%p1716_p3), 1, %s1621_s19  }
  0x13   : > { %s1529_s7 = sshll.u32 (%p1716_p3), %s1637_s23, 5  ;;  %s1436_s8 = sshll.u32 (%p1716_p3), %s237_s6, 8 }
  0x14   : > { %s1736_s11 = scalar_lea.vmem (%p1716_p3), %s2706_s2, %s1529_s7  ;;  %s1741_s12 = scalar_lea.vmem (%p1716_p3), [#allocation2], %s1436_s8 }
  0x15   : > { %v255_v0 = vld [vmem:[%s1736_s11] sm:$0xff] (%p1716_p3)  ;;  %v257_v1 = vld [vmem:[%s1736_s11 + $0x8] sm:$0xff] (%p1716_p3)  ;;  %v259_v2 = vld [vmem:[%s1736_s11 + $0x10] sm:$0xff] (%p1716_p3) }
  0x16   : > { %256 = vst [vmem:[%s1741_s12] sm:$0xff] (%p1716_p3), %v255_v0  ;;  %258 = vst [vmem:[%s1741_s12 + $0x8] sm:$0xff] (%p1716_p3), %v257_v1  ;;  %v261_v3 = vld [vmem:[%s1736_s11 + $0x18] sm:$0xff] (%p1716_p3)  ;;  %v263_v4 = vld [vmem:[%s1736_s11 + $0x80] sm:$0xff] (%p1716_p3) }
  0x17   : > { %260 = vst [vmem:[%s1741_s12 + $0x10] sm:$0xff] (%p1716_p3), %v259_v2  ;;  %v265_v5 = vld [vmem:[%s1736_s11 + $0x88] sm:$0xff] (%p1716_p3)  ;;  %262 = vst [vmem:[%s1741_s12 + $0x18] sm:$0xff] (%p1716_p3), %v261_v3  ;;  %v267_v6 = vld [vmem:[%s1736_s11 + $0x90] sm:$0xff] (%p1716_p3) }
  0x18   : > { %264 = vst [vmem:[%s1741_s12 + $0x20] sm:$0xff] (%p1716_p3), %v263_v4  ;;  %266 = vst [vmem:[%s1741_s12 + $0x28] sm:$0xff] (%p1716_p3), %v265_v5  ;;  %v269_v7 = vld [vmem:[%s1736_s11 + $0x98] sm:$0xff] (%p1716_p3)  ;;  %v271_v8 = vld [vmem:[%s1736_s11 + $0x100] sm:$0xff] (%p1716_p3) }
  0x19   : > { %268 = vst [vmem:[%s1741_s12 + $0x30] sm:$0xff] %v267_v6  ;;  %270 = vst [vmem:[%s1741_s12 + $0x38] sm:$0xff] %v269_v7  ;;  %v273_v9 = vld [vmem:[%s1736_s11 + $0x108] sm:$0xff]  ;;  %v275_v10 = vld [vmem:[%s1736_s11 + $0x110] sm:$0xff] }
  0x1a   : > { %272 = vst [vmem:[%s1741_s12 + $0x40] sm:$0xff] %v271_v8  ;;  %v277_v11 = vld [vmem:[%s1736_s11 + $0x118] sm:$0xff]  ;;  %274 = vst [vmem:[%s1741_s12 + $0x48] sm:$0xff] %v273_v9  ;;  %v279_v12 = vld [vmem:[%s1736_s11 + $0x180] sm:$0xff] }
  0x1b   : > { %276 = vst [vmem:[%s1741_s12 + $0x50] sm:$0xff] %v275_v10  ;;  %278 = vst [vmem:[%s1741_s12 + $0x58] sm:$0xff] %v277_v11  ;;  %v281_v13 = vld [vmem:[%s1736_s11 + $0x188] sm:$0xff]  ;;  %v283_v14 = vld [vmem:[%s1736_s11 + $0x190] sm:$0xff] }
  0x1c   : > { %280 = vst [vmem:[%s1741_s12 + $0x60] sm:$0xff] %v279_v12  ;;  %282 = vst [vmem:[%s1741_s12 + $0x68] sm:$0xff] %v281_v13  ;;  %v285_v15 = vld [vmem:[%s1736_s11 + $0x198] sm:$0xff]  ;;  %v287_v16 = vld [vmem:[%s1736_s11 + $0x200] sm:$0xff] }
  0x1d   : > { %284 = vst [vmem:[%s1741_s12 + $0x70] sm:$0xff] %v283_v14  ;;  %v289_v17 = vld [vmem:[%s1736_s11 + $0x208] sm:$0xff]  ;;  %286 = vst [vmem:[%s1741_s12 + $0x78] sm:$0xff] %v285_v15  ;;  %v291_v18 = vld [vmem:[%s1736_s11 + $0x210] sm:$0xff] }
  0x1e   : > { %288 = vst [vmem:[%s1741_s12 + $0x80] sm:$0xff] %v287_v16  ;;  %290 = vst [vmem:[%s1741_s12 + $0x88] sm:$0xff] %v289_v17  ;;  %v293_v19 = vld [vmem:[%s1736_s11 + $0x218] sm:$0xff]  ;;  %v295_v20 = vld [vmem:[%s1736_s11 + $0x280] sm:$0xff] }
  0x1f   : > { %292 = vst [vmem:[%s1741_s12 + $0x90] sm:$0xff] %v291_v18  ;;  %294 = vst [vmem:[%s1741_s12 + $0x98] sm:$0xff] %v293_v19  ;;  %v297_v21 = vld [vmem:[%s1736_s11 + $0x288] sm:$0xff]  ;;  %v299_v22 = vld [vmem:[%s1736_s11 + $0x290] sm:$0xff] }
  0x20   : > { %296 = vst [vmem:[%s1741_s12 + $0xa0] sm:$0xff] %v295_v20  ;;  %v301_v23 = vld [vmem:[%s1736_s11 + $0x298] sm:$0xff]  ;;  %298 = vst [vmem:[%s1741_s12 + $0xa8] sm:$0xff] %v297_v21  ;;  %v303_v24 = vld [vmem:[%s1736_s11 + $0x300] sm:$0xff] }
  0x21   : > { %300 = vst [vmem:[%s1741_s12 + $0xb0] sm:$0xff] %v299_v22  ;;  %302 = vst [vmem:[%s1741_s12 + $0xb8] sm:$0xff] %v301_v23  ;;  %v305_v25 = vld [vmem:[%s1736_s11 + $0x308] sm:$0xff]  ;;  %v307_v26 = vld [vmem:[%s1736_s11 + $0x310] sm:$0xff] }
  0x22   : > { %304 = vst [vmem:[%s1741_s12 + $0xc0] sm:$0xff] %v303_v24  ;;  %306 = vst [vmem:[%s1741_s12 + $0xc8] sm:$0xff] %v305_v25  ;;  %v309_v27 = vld [vmem:[%s1736_s11 + $0x318] sm:$0xff]  ;;  %v311_v28 = vld [vmem:[%s1736_s11 + $0x380] sm:$0xff] }
  0x23   : > { %308 = vst [vmem:[%s1741_s12 + $0xd0] sm:$0xff] %v307_v26  ;;  %v313_v29 = vld [vmem:[%s1736_s11 + $0x388] sm:$0xff]  ;;  %310 = vst [vmem:[%s1741_s12 + $0xd8] sm:$0xff] %v309_v27  ;;  %v315_v30 = vld [vmem:[%s1736_s11 + $0x390] sm:$0xff] }
  0x24   : > { %312 = vst [vmem:[%s1741_s12 + $0xe0] sm:$0xff] %v311_v28  ;;  %314 = vst [vmem:[%s1741_s12 + $0xe8] sm:$0xff] %v313_v29  ;;  %v317_v31 = vld [vmem:[%s1736_s11 + $0x398] sm:$0xff] }
  0x25   : > { %316 = vst [vmem:[%s1741_s12 + $0xf0] sm:$0xff] %v315_v30  ;;  %318 = vst [vmem:[%s1741_s12 + $0xf8] sm:$0xff] %v317_v31 }
  0x26 PF: > { %324 = sbr.rel (!%p1716_p3) target bundleno = 58 (0x3a), region = 51  ;;  %s326_s13 = sand.u32 (%p1716_p3), 1, %s1621_s19  }
  0x27   : > { %s1530_s14 = sshll.u32 (%p1716_p3), %s1637_s23, 5  ;;  %s1439_s15 = sshll.u32 (%p1716_p3), %s326_s13, 8 }
  0x28   : > { %s1811_s28 = scalar_lea.vmem (%p1716_p3), %s2707_s3, %s1530_s14  ;;  %s1816_s27 = scalar_lea.vmem (%p1716_p3), [#allocation3], %s1439_s15 }
  0x29   : > { %v344_v32 = vld [vmem:[%s1811_s28] sm:$0xff] (%p1716_p3)  ;;  %v346_v33 = vld [vmem:[%s1811_s28 + $0x8] sm:$0xff] (%p1716_p3)  ;;  %v348_v34 = vld [vmem:[%s1811_s28 + $0x10] sm:$0xff] (%p1716_p3) }
  0x2a   : > { %345 = vst [vmem:[%s1816_s27] sm:$0xff] (%p1716_p3), %v344_v32  ;;  %347 = vst [vmem:[%s1816_s27 + $0x8] sm:$0xff] (%p1716_p3), %v346_v33  ;;  %v350_v35 = vld [vmem:[%s1811_s28 + $0x18] sm:$0xff] (%p1716_p3)  ;;  %v352_v36 = vld [vmem:[%s1811_s28 + $0x80] sm:$0xff] (%p1716_p3) }
  0x2b   : > { %349 = vst [vmem:[%s1816_s27 + $0x10] sm:$0xff] (%p1716_p3), %v348_v34  ;;  %v354_v37 = vld [vmem:[%s1811_s28 + $0x88] sm:$0xff] (%p1716_p3)  ;;  %351 = vst [vmem:[%s1816_s27 + $0x18] sm:$0xff] (%p1716_p3), %v350_v35  ;;  %v356_v38 = vld [vmem:[%s1811_s28 + $0x90] sm:$0xff] (%p1716_p3) }
  0x2c   : > { %353 = vst [vmem:[%s1816_s27 + $0x20] sm:$0xff] (%p1716_p3), %v352_v36  ;;  %355 = vst [vmem:[%s1816_s27 + $0x28] sm:$0xff] (%p1716_p3), %v354_v37  ;;  %v358_v39 = vld [vmem:[%s1811_s28 + $0x98] sm:$0xff] (%p1716_p3)  ;;  %v360_v40 = vld [vmem:[%s1811_s28 + $0x100] sm:$0xff] (%p1716_p3) }
  0x2d   : > { %357 = vst [vmem:[%s1816_s27 + $0x30] sm:$0xff] %v356_v38  ;;  %359 = vst [vmem:[%s1816_s27 + $0x38] sm:$0xff] %v358_v39  ;;  %v362_v41 = vld [vmem:[%s1811_s28 + $0x108] sm:$0xff]  ;;  %v364_v42 = vld [vmem:[%s1811_s28 + $0x110] sm:$0xff] }
  0x2e   : > { %361 = vst [vmem:[%s1816_s27 + $0x40] sm:$0xff] %v360_v40  ;;  %v366_v43 = vld [vmem:[%s1811_s28 + $0x118] sm:$0xff]  ;;  %363 = vst [vmem:[%s1816_s27 + $0x48] sm:$0xff] %v362_v41  ;;  %v368_v44 = vld [vmem:[%s1811_s28 + $0x180] sm:$0xff] }
  0x2f   : > { %365 = vst [vmem:[%s1816_s27 + $0x50] sm:$0xff] %v364_v42  ;;  %367 = vst [vmem:[%s1816_s27 + $0x58] sm:$0xff] %v366_v43  ;;  %v370_v45 = vld [vmem:[%s1811_s28 + $0x188] sm:$0xff]  ;;  %v372_v46 = vld [vmem:[%s1811_s28 + $0x190] sm:$0xff] }
  0x30   : > { %369 = vst [vmem:[%s1816_s27 + $0x60] sm:$0xff] %v368_v44  ;;  %371 = vst [vmem:[%s1816_s27 + $0x68] sm:$0xff] %v370_v45  ;;  %v374_v47 = vld [vmem:[%s1811_s28 + $0x198] sm:$0xff]  ;;  %v376_v48 = vld [vmem:[%s1811_s28 + $0x200] sm:$0xff] }
  0x31   : > { %373 = vst [vmem:[%s1816_s27 + $0x70] sm:$0xff] %v372_v46  ;;  %v378_v49 = vld [vmem:[%s1811_s28 + $0x208] sm:$0xff]  ;;  %375 = vst [vmem:[%s1816_s27 + $0x78] sm:$0xff] %v374_v47  ;;  %v380_v50 = vld [vmem:[%s1811_s28 + $0x210] sm:$0xff] }
  0x32   : > { %377 = vst [vmem:[%s1816_s27 + $0x80] sm:$0xff] %v376_v48  ;;  %379 = vst [vmem:[%s1816_s27 + $0x88] sm:$0xff] %v378_v49  ;;  %v382_v51 = vld [vmem:[%s1811_s28 + $0x218] sm:$0xff]  ;;  %v384_v52 = vld [vmem:[%s1811_s28 + $0x280] sm:$0xff] }
  0x33   : > { %381 = vst [vmem:[%s1816_s27 + $0x90] sm:$0xff] %v380_v50  ;;  %383 = vst [vmem:[%s1816_s27 + $0x98] sm:$0xff] %v382_v51  ;;  %v386_v53 = vld [vmem:[%s1811_s28 + $0x288] sm:$0xff]  ;;  %v388_v54 = vld [vmem:[%s1811_s28 + $0x290] sm:$0xff] }
  0x34   : > { %385 = vst [vmem:[%s1816_s27 + $0xa0] sm:$0xff] %v384_v52  ;;  %v390_v55 = vld [vmem:[%s1811_s28 + $0x298] sm:$0xff]  ;;  %387 = vst [vmem:[%s1816_s27 + $0xa8] sm:$0xff] %v386_v53  ;;  %v392_v56 = vld [vmem:[%s1811_s28 + $0x300] sm:$0xff] }
  0x35   : > { %389 = vst [vmem:[%s1816_s27 + $0xb0] sm:$0xff] %v388_v54  ;;  %391 = vst [vmem:[%s1816_s27 + $0xb8] sm:$0xff] %v390_v55  ;;  %v394_v57 = vld [vmem:[%s1811_s28 + $0x308] sm:$0xff]  ;;  %v396_v58 = vld [vmem:[%s1811_s28 + $0x310] sm:$0xff] }
  0x36   : > { %393 = vst [vmem:[%s1816_s27 + $0xc0] sm:$0xff] %v392_v56  ;;  %395 = vst [vmem:[%s1816_s27 + $0xc8] sm:$0xff] %v394_v57  ;;  %v398_v59 = vld [vmem:[%s1811_s28 + $0x318] sm:$0xff]  ;;  %v400_v60 = vld [vmem:[%s1811_s28 + $0x380] sm:$0xff] }
  0x37   : > { %397 = vst [vmem:[%s1816_s27 + $0xd0] sm:$0xff] %v396_v58  ;;  %v402_v61 = vld [vmem:[%s1811_s28 + $0x388] sm:$0xff]  ;;  %399 = vst [vmem:[%s1816_s27 + $0xd8] sm:$0xff] %v398_v59  ;;  %v404_v62 = vld [vmem:[%s1811_s28 + $0x390] sm:$0xff] }
  0x38   : > { %401 = vst [vmem:[%s1816_s27 + $0xe0] sm:$0xff] %v400_v60  ;;  %403 = vst [vmem:[%s1816_s27 + $0xe8] sm:$0xff] %v402_v61  ;;  %v406_v63 = vld [vmem:[%s1811_s28 + $0x398] sm:$0xff] }
  0x39   : > { %405 = vst [vmem:[%s1816_s27 + $0xf0] sm:$0xff] %v404_v62  ;;  %407 = vst [vmem:[%s1816_s27 + $0xf8] sm:$0xff] %v406_v63 }
  0x3a PF: > { %p1442_p7 = scmp.ge.s32.totalorder %s1641_s24, 1  ;;  %p412_p8 = scmp.lt.s32.totalorder %s1641_s24, 9 }
  0x3c   : > { %p413_p9 = pnand %p1442_p7, %p412_p8 }
  0x3e   : > { %416 = sbr.rel (%p413_p9) target bundleno = 181 (0xb5), region = 74 }
  0x45   : > { %s419_s29 = sand.u32 1, %s1617_s18   ;;  %v541_v0 = vlaneseq  ;;  %s1445_s6 = sshll.u32 %s1629_s21, 2 }
  0x46   : > { %p489_p10 = scmp.lt.s32.totalorder %s1625_s20, 1  ;;  %s1443_s7 = sshll.u32 %s419_s29, 8 }
  0x47   : > { %p491_p11 = scmp.lt.s32.totalorder %s1445_s6, 15  ;;  %v542_v1 = vshrl.u32 %v541_v0, 7  ;;  %s1891_s11 = scalar_lea.vmem [#allocation2], %s1443_s7 }
  0x48   : > { %s2967_s20 = smov (!%p489_p10, %s1625_s20), 1  ;;  %v1894_v4 = vld [vmem:[%s1891_s11] sm:$0xff]  ;;  %s1908_s15 = scalar_lea.vmem [#allocation3], %s1443_s7 }
  0x49   : > { %s1446_s8 = sshll.u32 %s2967_s20, 4  ;;  %s2969_s6 = smov (!%p491_p11, %s1445_s6), 15  ;;  %v1885_v2 = vsub.s32 0, %v542_v1  ;;  %v1887_v3 = vsub.s32 1, %v542_v1  ;;  %v1911_v5 = vld [vmem:[%s1908_s15] sm:$0xff]  ;;  %v1919_v8 = vsub.s32 2, %v542_v1 }
  0x4a   : > { %s494_s9 = sadd.s32 %s1446_s8, %s2969_s6  ;;  %v1914_v6 = vld [vmem:[%s1891_s11 + $0x20] sm:$0xff]  ;;  %v1921_v9 = vsub.s32 3, %v542_v1 }
  0x4b   : > { %s1889_s10 = sshll.u32 %s494_s9, 3  ;;  %v1917_v7 = vld [vmem:[%s1908_s15 + $0x20] sm:$0xff] }
  0x4c   : > { %s1900_s20 = scalar_lea.vmem %s2704_s0, %s1889_s10  ;;  %s1906_s14 = scalar_lea.vmem %s2705_s1, %s1889_s10  ;;  %v1930_v12 = vld [vmem:[%s1891_s11 + $0x40] sm:$0xff] }
  0x4d   : > { %v1924_v10 = vld [vmem:[%s1900_s20] ss:$8 sm:$0xf]  ;;  %v1944_v16 = vld [vmem:[%s1900_s20 + $0x1] ss:$8 sm:$0xf]  ;;  %s2214_s28 = scalar_lea.vmem %s2708_s4, %s1889_s10  ;;  %s2617_s6 = scalar_lea.vmem %s2709_s5, %s1889_s10 }
  0x4e   : > { %v1927_v11 = vld [vmem:[%s1906_s14] ss:$8 sm:$0xf]  ;;  %v1937_v14 = vrot.slane %v1924_v10, %v1885_v2  ;;  %v1947_v17 = vld [vmem:[%s1906_s14 + $0x1] ss:$8 sm:$0xf]  ;;  %v1957_v20 = vrot.slane %v1924_v10, %v1887_v3  ;;  %v1965_v22 = vrot.slane %v1944_v16, %v1885_v2  ;;  %v1982_v27 = vrot.slane %v1944_v16, %v1887_v3 }
  0x4f   : > { %v1933_v13 = vld [vmem:[%s1908_s15 + $0x40] sm:$0xff]  ;;  %v1941_v15 = vrot.slane %v1927_v11, %v1885_v2  ;;  %v1961_v21 = vrot.slane %v1927_v11, %v1887_v3  ;;  %v1969_v23 = vrot.slane %v1947_v17, %v1885_v2  ;;  %v1986_v28 = vrot.slane %v1947_v17, %v1887_v3 }
  0x50   : > { %v1950_v18 = vld [vmem:[%s1891_s11 + $0x60] sm:$0xff]  ;;  %2793 = vst [vmem:[#allocation5_spill] sm:$0xff] %v1957_v20  ;;  %2796 = vst [vmem:[#allocation8_spill] sm:$0xff] %v1982_v27  ;;  %v561_v29 = vmul.f32 %v1937_v14, %v1894_v4  ;;  %v649_v36 = vmul.f32 %v1914_v6, %v1965_v22 }
  0x51   : > { %v1953_v19 = vld [vmem:[%s1908_s15 + $0x60] sm:$0xff]  ;;  %2794 = vst [vmem:[#allocation6_spill] sm:$0xff] %v1961_v21  ;;  %2797 = vst [vmem:[#allocation9_spill] sm:$0xff] %v1986_v28  ;;  %v586_v30 = vmul.f32 %v1941_v15, %v1911_v5  ;;  %v674_v37 = vmul.f32 %v1917_v7, %v1969_v23 }
  0x52   : > { %2792 = vst [vmem:[#allocation4_spill] sm:$0xff] %v1953_v19  ;;  %v1972_v24 = vld [vmem:[%s1900_s20 + $0x2] ss:$8 sm:$0xf] }
  0x53   : > { %v1975_v25 = vld [vmem:[%s1906_s14 + $0x2] ss:$8 sm:$0xf]  ;;  %v1994_v31 = vrot.slane %v1972_v24, %v1885_v2  ;;  %v2001_v33 = vld [vmem:[%s1900_s20 + $0x3] ss:$8 sm:$0xf]  ;;  %v590_v44 = vsub.f32 %v561_v29, %v586_v30  ;;  %v678_v51 = vsub.f32 %v649_v36, %v674_v37 }
  0x54   : > { %v1978_v26 = vld [vmem:[%s1891_s11 + $0x80] sm:$0xff]  ;;  %v1998_v32 = vrot.slane %v1975_v25, %v1885_v2  ;;  %v2015_v38 = vrot.slane %v2001_v33, %v1885_v2  ;;  %v2093_v37 = vld [vmem:[%s1891_s11 + $0x8] sm:$0xff] }
  0x55   : > { %2795 = vst [vmem:[#allocation7_spill] sm:$0xff] %v1978_v26  ;;  %v2004_v34 = vld [vmem:[%s1906_s14 + $0x3] ss:$8 sm:$0xf]  ;;  %v737_v45 = vmul.f32 %v1930_v12, %v1994_v31  ;;  %v682_v63 = vadd.f32 %v678_v51, %v590_v44  ;;  %2805 = vst [vmem:[#allocation17_spill] sm:$0xff] %v2093_v37 }
  0x56   : > { %v2007_v35 = vld [vmem:[%s1908_s15 + $0x80] sm:$0xff]  ;;  %v2019_v39 = vrot.slane %v2004_v34, %v1885_v2  ;;  %v762_v46 = vmul.f32 %v1933_v13, %v1998_v32  ;;  %v825_v52 = vmul.f32 %v1950_v18, %v2015_v38 }
  0x57   : > { %2798 = vst [vmem:[#allocation10_spill] sm:$0xff] %v2007_v35  ;;  %v2022_v40 = vld [vmem:[%s1900_s20 + $0x4] ss:$8 sm:$0xf] }
  0x58   : > { %v2025_v41 = vld [vmem:[%s1906_s14 + $0x4] ss:$8 sm:$0xf]  ;;  %v2039_v47 = vrot.slane %v2022_v40, %v1885_v2  ;;  %v2042_v48 = vld [vmem:[%s1900_s20 + $0x5] ss:$8 sm:$0xf]  ;;  %v850_v53 = vmul.f32 %v1953_v19, %v2019_v39  ;;  %v766_v57 = vsub.f32 %v737_v45, %v762_v46 }
  0x59   : > { %v2028_v42 = vld [vmem:[%s1891_s11 + $0xa0] sm:$0xff]  ;;  %v2056_v54 = vrot.slane %v2025_v41, %v1885_v2  ;;  %v2068_v59 = vrot.slane %v2042_v48, %v1885_v2 }
  0x5a   : > { %2799 = vst [vmem:[#allocation11_spill] sm:$0xff] %v2028_v42  ;;  %v2031_v43 = vld [vmem:[%s1908_s15 + $0xa0] sm:$0xff]  ;;  %2801 = vst [vmem:[#allocation13_spill] sm:$0xff] %v2039_v47  ;;  %v913_v58 = vmul.f32 %v1978_v26, %v2039_v47  ;;  %v854_v0 = vsub.f32 %v825_v52, %v850_v53  ;;  %v2111_v53 = vld [vmem:[%s1908_s15 + $0x8] sm:$0xff] }
  0x5b   : > { %2800 = vst [vmem:[#allocation12_spill] sm:$0xff] %v2031_v43  ;;  %v2045_v49 = vld [vmem:[%s1906_s14 + $0x5] ss:$8 sm:$0xf]  ;;  %2802 = vst [vmem:[#allocation14_spill] sm:$0xff] %v2056_v54  ;;  %v938_v1 = vmul.f32 %v2007_v35, %v2056_v54  ;;  %v1001_v45 = vmul.f32 %v2028_v42, %v2068_v59 }
  0x5c   : > { %v2048_v50 = vld [vmem:[%s1891_s11 + $0xc0] sm:$0xff]  ;;  %2803 = vst [vmem:[#allocation15_spill] sm:$0xff] %v2068_v59  ;;  %v2072_v60 = vrot.slane %v2045_v49, %v1885_v2  ;;  %2808 = vst [vmem:[#allocation20_spill] sm:$0xff] %v2111_v53  ;;  %v2114_v35 = vld [vmem:[%s1891_s11 + $0x28] sm:$0xff]  ;;  %v770_v59 = vadd.f32 %v766_v57, %v682_v63  ;;  %v562_v57 = vmul.f32 %v1957_v20, %v2093_v37 }
  0x5d   : > { %v2059_v55 = vld [vmem:[%s1900_s20 + $0x6] ss:$8 sm:$0xf]  ;;  %v2075_v61 = vld [vmem:[%s1900_s20 + $0x7] ss:$8 sm:$0xf]  ;;  %v942_v42 = vsub.f32 %v913_v58, %v938_v1  ;;  %v650_v1 = vmul.f32 %v2114_v35, %v1982_v27 }
  0x5e   : > { %v2062_v56 = vld [vmem:[%s1906_s14 + $0x6] ss:$8 sm:$0xf]  ;;  %2804 = vst [vmem:[#allocation16_spill] sm:$0xff] %v2072_v60  ;;  %v2087_v30 = vrot.slane %v2059_v55, %v1885_v2  ;;  %v1026_v44 = vmul.f32 %v2031_v43, %v2072_v60  ;;  %v2108_v52 = vrot.slane %v2075_v61, %v1885_v2  ;;  %2809 = vst [vmem:[#allocation21_spill] sm:$0xff] %v2114_v35 }
  0x5f   : > { %v2078_v62 = vld [vmem:[%s1906_s14 + $0x7] ss:$8 sm:$0xf]  ;;  %v2101_v46 = vrot.slane %v2062_v56, %v1885_v2  ;;  %v858_v58 = vadd.f32 %v854_v0, %v770_v59  ;;  %v2147_v59 = vrot.slane %v1972_v24, %v1887_v3  ;;  %v2151_v0 = vrot.slane %v1975_v25, %v1887_v3 }
  0x60   : > { %v2083_v29 = vld [vmem:[%s1908_s15 + $0xc0] sm:$0xff]  ;;  %2807 = vst [vmem:[#allocation19_spill] sm:$0xff] %v2108_v52  ;;  %v1089_v43 = vmul.f32 %v2048_v50, %v2087_v30  ;;  %v2120_v60 = vrot.slane %v2078_v62, %v1885_v2  ;;  %v2123_v47 = vld [vmem:[%s1908_s15 + $0x28] sm:$0xff]  ;;  %v1030_v26 = vsub.f32 %v1001_v45, %v1026_v44  ;;  %v587_v2 = vmul.f32 %v1961_v21, %v2111_v53 }
  0x61   : > { %v2090_v36 = vld [vmem:[%s1891_s11 + $0xe0] sm:$0xff]  ;;  %2810 = vst [vmem:[#allocation22_spill] sm:$0xff] %v2123_v47  ;;  %v1114_v54 = vmul.f32 %v2083_v29, %v2101_v46  ;;  %v2138_v45 = vld [vmem:[%s1891_s11 + $0x48] sm:$0xff]  ;;  %v675_v20 = vmul.f32 %v2123_v47, %v1986_v28  ;;  %2813 = vst [vmem:[#allocation25_spill] sm:$0xff] %v2147_v59  ;;  %v946_v27 = vadd.f32 %v942_v42, %v858_v58 }
  0x62   : > { %v2104_v51 = vld [vmem:[%s1908_s15 + $0xe0] sm:$0xff]  ;;  %v1177_v19 = vmul.f32 %v2090_v36, %v2108_v52  ;;  %2811 = vst [vmem:[#allocation23_spill] sm:$0xff] %v2138_v45  ;;  %v2141_v44 = vld [vmem:[%s1908_s15 + $0x48] sm:$0xff]  ;;  %v591_v21 = vsub.f32 %v562_v57, %v587_v2  ;;  %v738_v47 = vmul.f32 %v2138_v45, %v2147_v59  ;;  %v2181_v58 = vrot.slane %v2022_v40, %v1887_v3 }
  0x63   : > { %2806 = vst [vmem:[#allocation18_spill] sm:$0xff] %v2104_v51  ;;  %v1202_v63 = vmul.f32 %v2104_v51, %v2120_v60  ;;  %2812 = vst [vmem:[#allocation24_spill] sm:$0xff] %v2141_v44  ;;  %v1118_v52 = vsub.f32 %v1089_v43, %v1114_v54  ;;  %v2154_v53 = vld [vmem:[%s1891_s11 + $0x68] sm:$0xff]  ;;  %v2161_v43 = vrot.slane %v2001_v33, %v1887_v3 }
  0x64   : > { %2814 = vst [vmem:[#allocation26_spill] sm:$0xff] %v2154_v53  ;;  %v2157_v37 = vld [vmem:[%s1908_s15 + $0x68] sm:$0xff]  ;;  %v679_v54 = vsub.f32 %v650_v1, %v675_v20  ;;  %v763_v28 = vmul.f32 %v2141_v44, %v2151_v0  ;;  %v2169_v51 = vrot.slane %v2004_v34, %v1887_v3  ;;  %v1034_v57 = vadd.f32 %v1030_v26, %v946_v27 }
  0x65   : > { %v1206_v35 = vsub.f32 %v1177_v19, %v1202_v63  ;;  %2815 = vst [vmem:[#allocation27_spill] sm:$0xff] %v2161_v43  ;;  %v2172_v19 = vld [vmem:[%s1891_s11 + $0x88] sm:$0xff]  ;;  %v826_v20 = vmul.f32 %v2154_v53, %v2161_v43  ;;  %2818 = vst [vmem:[#allocation30_spill] sm:$0xff] %v2181_v58  ;;  %v2185_v63 = vrot.slane %v2025_v41, %v1887_v3 }
  0x66   : > { %2816 = vst [vmem:[#allocation28_spill] sm:$0xff] %v2172_v19  ;;  %v2175_v42 = vld [vmem:[%s1908_s15 + $0x88] sm:$0xff]  ;;  %v683_v1 = vadd.f32 %v679_v54, %v591_v21  ;;  %v767_v44 = vsub.f32 %v738_v47, %v763_v28  ;;  %v851_v59 = vmul.f32 %v2157_v37, %v2169_v51  ;;  %v2197_v27 = vrot.slane %v2042_v48, %v1887_v3 }
  0x67   : > { %2817 = vst [vmem:[#allocation29_spill] sm:$0xff] %v2175_v42  ;;  %2819 = vst [vmem:[#allocation31_spill] sm:$0xff] %v2185_v63  ;;  %v2188_v2 = vld [vmem:[%s1891_s11 + $0xa8] sm:$0xff]  ;;  %v1122_v43 = vadd.f32 %v1118_v52, %v1034_v57  ;;  %v914_v53 = vmul.f32 %v2172_v19, %v2181_v58  ;;  %v939_v45 = vmul.f32 %v2175_v42, %v2185_v63 }
  0x68   : > { %2820 = vst [vmem:[#allocation32_spill] sm:$0xff] %v2188_v2  ;;  %v2193_v26 = vld [vmem:[%s1908_s15 + $0xa8] sm:$0xff]  ;;  %2822 = vst [vmem:[#allocation34_spill] sm:$0xff] %v2197_v27  ;;  %v2205_v21 = vrot.slane %v2045_v49, %v1887_v3  ;;  %v771_v47 = vadd.f32 %v767_v44, %v683_v1  ;;  %v855_v52 = vsub.f32 %v826_v20, %v851_v59 }
  0x69   : > { %2821 = vst [vmem:[#allocation33_spill] sm:$0xff] %v2193_v26  ;;  %v2208_v28 = vld [vmem:[%s1891_s11 + $0xc8] sm:$0xff]  ;;  %v1002_v54 = vmul.f32 %v2188_v2, %v2197_v27  ;;  %v2223_v42 = vrot.slane %v2059_v55, %v1887_v3  ;;  %v1210_v58 = vadd.f32 %v1206_v35, %v1122_v43  ;;  %v943_v19 = vsub.f32 %v914_v53, %v939_v45  ;;  %v2248_v45 = vld [vmem:[%s1891_s11 + $0x10] sm:$0xff] }
  0x6a   : > { %2823 = vst [vmem:[#allocation35_spill] sm:$0xff] %v2205_v21  ;;  %2824 = vst [vmem:[#allocation36_spill] sm:$0xff] %v2208_v28  ;;  %v2219_v57 = vld [vmem:[%s1908_s15 + $0xc8] sm:$0xff]  ;;  %v1027_v63 = vmul.f32 %v2193_v26, %v2205_v21  ;;  %v2229_v44 = vrot.slane %v2062_v56, %v1887_v3  ;;  %v859_v1 = vadd.f32 %v855_v52, %v771_v47  ;;  %v2251_v43 = vld [vmem:[%s1908_s15 + $0x10] sm:$0xff] }
  0x6b   : > { %2825 = vst [vmem:[#allocation37_spill] sm:$0xff] %v2219_v57  ;;  %2826 = vst [vmem:[#allocation38_spill] sm:$0xff] %v2223_v42  ;;  %v2232_v59 = vld [vmem:[%s1891_s11 + $0xe8] sm:$0xff]  ;;  %v1090_v27 = vmul.f32 %v2208_v28, %v2223_v42  ;;  %v2241_v35 = vrot.slane %v2075_v61, %v1887_v3  ;;  %v2245_v53 = vrot.slane %v2078_v62, %v1887_v3  ;;  %v2265_v3 = vld [vmem:[%s1891_s11 + $0x30] sm:$0xff] }
  0x6c   : > { %2827 = vst [vmem:[#allocation39_spill] sm:$0xff] %v2229_v44  ;;  %2828 = vst [vmem:[#allocation40_spill] sm:$0xff] %v2232_v59  ;;  %v2235_v20 = vld [vmem:[%s1908_s15 + $0xe8] sm:$0xff]  ;;  %v1031_v26 = vsub.f32 %v1002_v54, %v1027_v63  ;;  %v1115_v47 = vmul.f32 %v2219_v57, %v2229_v44  ;;  %v2258_v52 = vrot.slane %v1924_v10, %v1919_v8  ;;  %v2272_v54 = vld [vmem:[%s1908_s15 + $0x30] sm:$0xff] }
  0x6d   : > { %2829 = vst [vmem:[#allocation41_spill] sm:$0xff] %v2235_v20  ;;  %2830 = vst [vmem:[#allocation42_spill] sm:$0xff] %v2241_v35  ;;  %v2262_v42 = vrot.slane %v1927_v11, %v1919_v8  ;;  %v947_v28 = vadd.f32 %v943_v19, %v859_v1  ;;  %v1203_v63 = vmul.f32 %v2235_v20, %v2245_v53  ;;  %v2287_v20 = vld [vmem:[%s1891_s11 + $0x50] sm:$0xff] }
  0x6e   : > { %2831 = vst [vmem:[#allocation43_spill] sm:$0xff] %v2245_v53  ;;  %2832 = vst [vmem:[#allocation44_spill] sm:$0xff] %v2248_v45  ;;  %v2276_v57 = vrot.slane %v1944_v16, %v1919_v8  ;;  %v1119_v44 = vsub.f32 %v1090_v27, %v1115_v47  ;;  %v563_v2 = vmul.f32 %v2258_v52, %v2248_v45  ;;  %v2292_v27 = vld [vmem:[%s1908_s15 + $0x50] sm:$0xff] }
  0x6f   : > { %2833 = vst [vmem:[#allocation45_spill] sm:$0xff] %v2251_v43  ;;  %1230 = vst [vmem:[%s2214_s28] sm:$0xff] %v1210_v58  ;;  %v1178_v58 = vmul.f32 %v2232_v59, %v2241_v35  ;;  %v588_v19 = vmul.f32 %v2262_v42, %v2251_v43  ;;  %v2284_v1 = vrot.slane %v1947_v17, %v1919_v8 }
  0x70   : > { %2834 = vst [vmem:[#allocation46_spill] sm:$0xff] %v2258_v52  ;;  %2835 = vst [vmem:[#allocation47_spill] sm:$0xff] %v2262_v42  ;;  %v1035_v35 = vadd.f32 %v1031_v26, %v947_v28  ;;  %v651_v53 = vmul.f32 %v2265_v3, %v2276_v57  ;;  %v2296_v47 = vrot.slane %v1972_v24, %v1919_v8  ;;  %v2299_v52 = vld [vmem:[%s1891_s11 + $0x70] sm:$0xff] }
  0x71   : > { %2836 = vst [vmem:[#allocation48_spill] sm:$0xff] %v2265_v3  ;;  %2837 = vst [vmem:[#allocation49_spill] sm:$0xff] %v2272_v54  ;;  %v1207_v59 = vsub.f32 %v1178_v58, %v1203_v63  ;;  %v592_v43 = vsub.f32 %v563_v2, %v588_v19  ;;  %v676_v42 = vmul.f32 %v2272_v54, %v2284_v1  ;;  %v2308_v28 = vld [vmem:[%s1908_s15 + $0x70] sm:$0xff] }
  0x72   : > { %2838 = vst [vmem:[#allocation50_spill] sm:$0xff] %v2276_v57  ;;  %2839 = vst [vmem:[#allocation51_spill] sm:$0xff] %v2284_v1  ;;  %v2305_v26 = vrot.slane %v1975_v25, %v1919_v8  ;;  %v2312_v58 = vrot.slane %v2001_v33, %v1919_v8  ;;  %v2315_v63 = vld [vmem:[%s1891_s11 + $0x90] sm:$0xff]  ;;  %v1123_v57 = vadd.f32 %v1119_v44, %v1035_v35 }
  0x73   : > { %2840 = vst [vmem:[#allocation52_spill] sm:$0xff] %v2287_v20  ;;  %2841 = vst [vmem:[#allocation53_spill] sm:$0xff] %v2292_v27  ;;  %v739_v2 = vmul.f32 %v2287_v20, %v2296_v47  ;;  %v2321_v19 = vrot.slane %v2004_v34, %v1919_v8  ;;  %v2324_v54 = vld [vmem:[%s1908_s15 + $0x90] sm:$0xff]  ;;  %v2328_v3 = vrot.slane %v2022_v40, %v1919_v8 }
  0x74   : > { %2842 = vst [vmem:[#allocation54_spill] sm:$0xff] %v2296_v47  ;;  %2843 = vst [vmem:[#allocation55_spill] sm:$0xff] %v2299_v52  ;;  %v680_v1 = vsub.f32 %v651_v53, %v676_v42  ;;  %v764_v44 = vmul.f32 %v2292_v27, %v2305_v26  ;;  %v827_v35 = vmul.f32 %v2299_v52, %v2312_v58  ;;  %v2339_v20 = vld [vmem:[%s1891_s11 + $0xb0] sm:$0xff] }
  0x75   : > { %2844 = vst [vmem:[#allocation56_spill] sm:$0xff] %v2308_v28  ;;  %2845 = vst [vmem:[#allocation57_spill] sm:$0xff] %v2312_v58  ;;  %v2336_v47 = vrot.slane %v2025_v41, %v1919_v8  ;;  %v1211_v45 = vadd.f32 %v1207_v59, %v1123_v57  ;;  %v852_v21 = vmul.f32 %v2308_v28, %v2321_v19  ;;  %v2346_v53 = vld [vmem:[%s1908_s15 + $0xb0] sm:$0xff] }
  0x76   : > { %2846 = vst [vmem:[#allocation58_spill] sm:$0xff] %v2315_v63  ;;  %2847 = vst [vmem:[#allocation59_spill] sm:$0xff] %v2321_v19  ;;  %v915_v42 = vmul.f32 %v2315_v63, %v2328_v3  ;;  %v2350_v27 = vrot.slane %v2042_v48, %v1919_v8  ;;  %v684_v58 = vadd.f32 %v680_v1, %v592_v43  ;;  %v2359_v28 = vld [vmem:[%s1891_s11 + $0xd0] sm:$0xff] }
  0x77   : > { %2848 = vst [vmem:[#allocation60_spill] sm:$0xff] %v2324_v54  ;;  %2849 = vst [vmem:[#allocation61_spill] sm:$0xff] %v2328_v3  ;;  %v768_v52 = vsub.f32 %v739_v2, %v764_v44  ;;  %v940_v57 = vmul.f32 %v2324_v54, %v2336_v47  ;;  %v2356_v59 = vrot.slane %v2045_v49, %v1919_v8  ;;  %v2362_v3 = vld [vmem:[%s1908_s15 + $0xd0] sm:$0xff] }
  0x78   : > { %2850 = vst [vmem:[#allocation62_spill] sm:$0xff] %v2336_v47  ;;  %2851 = vst [vmem:[#allocation63_spill] sm:$0xff] %v2339_v20  ;;  %v856_v63 = vsub.f32 %v827_v35, %v852_v21  ;;  %v1003_v19 = vmul.f32 %v2339_v20, %v2350_v27  ;;  %v2369_v43 = vrot.slane %v2059_v55, %v1919_v8  ;;  %v2376_v2 = vld [vmem:[%s1891_s11 + $0xf0] sm:$0xff]  ;;  %v2419_v47 = vld [vmem:[%s1908_s15 + $0x38] sm:$0xff] }
  0x79   : > { %2852 = vst [vmem:[#allocation64_spill] sm:$0xff] %v2346_v53  ;;  %2853 = vst [vmem:[#allocation65_spill] sm:$0xff] %v2350_v27  ;;  %v2373_v1 = vrot.slane %v2062_v56, %v1919_v8  ;;  %v772_v44 = vadd.f32 %v768_v52, %v684_v58  ;;  %v944_v54 = vsub.f32 %v915_v42, %v940_v57  ;;  %v2381_v21 = vld [vmem:[%s1908_s15 + $0xf0] sm:$0xff]  ;;  %v2388_v27 = vld [vmem:[%s1891_s11 + $0x18] sm:$0xff] }
  0x7a   : > { %2854 = vst [vmem:[#allocation66_spill] sm:$0xff] %v2356_v59  ;;  %2855 = vst [vmem:[#allocation67_spill] sm:$0xff] %v2359_v28  ;;  %v2385_v35 = vrot.slane %v2075_v61, %v1919_v8  ;;  %v1091_v20 = vmul.f32 %v2359_v28, %v2369_v43  ;;  %v2396_v58 = vrot.slane %v2078_v62, %v1919_v8  ;;  %v2399_v42 = vld [vmem:[%s1908_s15 + $0x18] sm:$0xff] }
  0x7b   : > { %2856 = vst [vmem:[#allocation68_spill] sm:$0xff] %v2362_v3  ;;  %1231 = vst [vmem:[%s2214_s28 + $0x8] sm:$0xff] %v1211_v45  ;;  %v1028_v45 = vmul.f32 %v2346_v53, %v2356_v59  ;;  %v1116_v52 = vmul.f32 %v2362_v3, %v2373_v1  ;;  %v2403_v57 = vrot.slane %v1924_v10, %v1921_v9  ;;  %v2412_v28 = vld [vmem:[%s1891_s11 + $0x38] sm:$0xff] }
  0x7c   : > { %2857 = vst [vmem:[#allocation69_spill] sm:$0xff] %v2369_v43  ;;  %2858 = vst [vmem:[#allocation70_spill] sm:$0xff] %v2373_v1  ;;  %v860_v53 = vadd.f32 %v856_v63, %v772_v44  ;;  %v1179_v43 = vmul.f32 %v2376_v2, %v2385_v35  ;;  %v2409_v3 = vrot.slane %v1927_v11, %v1921_v9 }
  0x7d   : > { %2859 = vst [vmem:[#allocation71_spill] sm:$0xff] %v2399_v42  ;;  %2860 = vst [vmem:[#allocation72_spill] sm:$0xff] %v2403_v57  ;;  %v1032_v59 = vsub.f32 %v1003_v19, %v1028_v45  ;;  %v1120_v8 = vsub.f32 %v1091_v20, %v1116_v52  ;;  %v1204_v1 = vmul.f32 %v2381_v21, %v2396_v58  ;;  %v2426_v19 = vld [vmem:[%s1891_s11 + $0x58] sm:$0xff] }
  0x7e   : > { %2861 = vst [vmem:[#allocation73_spill] sm:$0xff] %v2409_v3  ;;  %v564_v10 = vmul.f32 %v2403_v57, %v2388_v27  ;;  %v2423_v63 = vrot.slane %v1944_v16, %v1921_v9  ;;  %2863 = vst [vmem:[#allocation75_spill] sm:$0xff] %v2426_v19  ;;  %v948_v11 = vadd.f32 %v944_v54, %v860_v53  ;;  %v2435_v45 = vld [vmem:[%s1908_s15 + $0x58] sm:$0xff] }
  0x7f   : > { %v589_v20 = vmul.f32 %v2409_v3, %v2399_v42  ;;  %v2432_v44 = vrot.slane %v1947_v17, %v1921_v9  ;;  %2864 = vst [vmem:[#allocation76_spill] sm:$0xff] %v2435_v45  ;;  %v2439_v52 = vrot.slane %v1972_v24, %v1921_v9  ;;  %v2442_v16 = vld [vmem:[%s1891_s11 + $0x78] sm:$0xff]  ;;  %v1208_v57 = vsub.f32 %v1179_v43, %v1204_v1 }
  0x80   : > { %2862 = vst [vmem:[#allocation74_spill] sm:$0xff] %v2423_v63  ;;  %2866 = vst [vmem:[#allocation78_spill] sm:$0xff] %v2442_v16  ;;  %v652_v54 = vmul.f32 %v2412_v28, %v2423_v63  ;;  %v2448_v53 = vrot.slane %v1975_v25, %v1921_v9  ;;  %v2452_v17 = vrot.slane %v2001_v33, %v1921_v9  ;;  %v2459_v1 = vld [vmem:[%s1908_s15 + $0x78] sm:$0xff] }
  0x81   : > { %2865 = vst [vmem:[#allocation77_spill] sm:$0xff] %v2439_v52  ;;  %v1036_v42 = vadd.f32 %v1032_v59, %v948_v11  ;;  %v593_v3 = vsub.f32 %v564_v10, %v589_v20  ;;  %v677_v24 = vmul.f32 %v2419_v47, %v2432_v44  ;;  %v740_v43 = vmul.f32 %v2426_v19, %v2439_v52  ;;  %v2462_v63 = vld [vmem:[%s1891_s11 + $0x98] sm:$0xff] }
  0x82   : > { %2867 = vst [vmem:[#allocation79_spill] sm:$0xff] %v2452_v17  ;;  %2868 = vst [vmem:[#allocation80_spill] sm:$0xff] %v2459_v1  ;;  %v765_v25 = vmul.f32 %v2435_v45, %v2448_v53  ;;  %v828_v33 = vmul.f32 %v2442_v16, %v2452_v17  ;;  %v2470_v59 = vrot.slane %v2004_v34, %v1921_v9  ;;  %v2473_v10 = vld [vmem:[%s1908_s15 + $0x98] sm:$0xff] }
  0x83   : > { %v2477_v11 = vrot.slane %v2022_v40, %v1921_v9  ;;  %v2480_v20 = vld [vmem:[%s1891_s11 + $0xb8] sm:$0xff]  ;;  %v1124_v52 = vadd.f32 %v1120_v8, %v1036_v42  ;;  %v681_v19 = vsub.f32 %v652_v54, %v677_v24  ;;  %v2484_v45 = vrot.slane %v2025_v41, %v1921_v9 }
  0x84   : > { %v2487_v17 = vld [vmem:[%s1908_s15 + $0xb8] sm:$0xff]  ;;  %v2491_v34 = vrot.slane %v2042_v48, %v1921_v9  ;;  %v769_v16 = vsub.f32 %v740_v43, %v765_v25  ;;  %v853_v40 = vmul.f32 %v2459_v1, %v2470_v59  ;;  %v2499_v41 = vrot.slane %v2045_v49, %v1921_v9 }
  0x85   : > { %2869 = vst [vmem:[#allocation81_spill] sm:$0xff] %v2477_v11  ;;  %2870 = vst [vmem:[#allocation82_spill] sm:$0xff] %v2487_v17  ;;  %v916_v42 = vmul.f32 %v2462_v63, %v2477_v11  ;;  %v1212_v8 = vadd.f32 %v1208_v57, %v1124_v52  ;;  %v685_v54 = vadd.f32 %v681_v19, %v593_v3  ;;  %v2506_v43 = vld [vmem:[%s1891_s11 + $0xd8] sm:$0xff] }
  0x86   : > { %2871 = vst [vmem:[#allocation83_spill] sm:$0xff] %v2491_v34  ;;  %v941_v24 = vmul.f32 %v2473_v10, %v2484_v45  ;;  %v1004_v48 = vmul.f32 %v2480_v20, %v2491_v34  ;;  %v2509_v25 = vld [vmem:[%s1908_s15 + $0xd8] sm:$0xff]  ;;  %v857_v1 = vsub.f32 %v828_v33, %v853_v40  ;;  %v1029_v11 = vmul.f32 %v2487_v17, %v2499_v41 }
  0x87   : > { %v2515_v49 = vrot.slane %v2059_v55, %v1921_v9  ;;  %v2519_v3 = vrot.slane %v2062_v56, %v1921_v9  ;;  %v2522_v57 = vld [vmem:[%s1891_s11 + $0xf8] sm:$0xff]  ;;  %1232 = vst [vmem:[%s2214_s28 + $0x10] sm:$0xff] %v1212_v8  ;;  %v773_v52 = vadd.f32 %v769_v16, %v685_v54  ;;  %v2530_v33 = vrot.slane %v2075_v61, %v1921_v9 }
  0x88   : > { %v2525_v19 = vld [vmem:[%s1908_s15 + $0xf8] sm:$0xff]  ;;  %v945_v34 = vsub.f32 %v916_v42, %v941_v24  ;;  %v2534_v40 = vrot.slane %v2078_v62, %v1921_v9  ;;  %v1033_v55 = vsub.f32 %v1004_v48, %v1029_v11  ;;  %v598_v8 = vmul.f32 %v1941_v15, %v1894_v4 }
  0x89   : > { %2872 = vst [vmem:[#allocation84_spill] sm:$0xff] %v2525_v19  ;;  %v1092_v56 = vmul.f32 %v2506_v43, %v2515_v49  ;;  %v1117_v17 = vmul.f32 %v2509_v25, %v2519_v3  ;;  %v861_v16 = vadd.f32 %v857_v1, %v773_v52  ;;  %v1180_v42 = vmul.f32 %v2522_v57, %v2530_v33 }
  0x8a   : > { %v1205_v61 = vmul.f32 %v2525_v19, %v2534_v40  ;;  %v602_v9 = vmul.f32 %v1937_v14, %v1911_v5  ;;  %v686_v11 = vmul.f32 %v1914_v6, %v1969_v23  ;;  %v690_v54 = vmul.f32 %v1917_v7, %v1965_v22  ;;  %v2873_v14 = vld [vmem:[#allocation4_spill] sm:$0xff]  ;;  %v2874_v6 = vld [vmem:[#allocation14_spill] sm:$0xff]  ;;  %v2875_v23 = vld [vmem:[#allocation7_spill] sm:$0xff] }
  0x8b   : > { %v1121_v62 = vsub.f32 %v1092_v56, %v1117_v17  ;;  %v774_v4 = vmul.f32 %v1930_v12, %v1998_v32  ;;  %v949_v15 = vadd.f32 %v945_v34, %v861_v16  ;;  %v778_v48 = vmul.f32 %v1933_v13, %v1994_v31  ;;  %v2876_v19 = vld [vmem:[#allocation13_spill] sm:$0xff]  ;;  %v2877_v12 = vld [vmem:[#allocation10_spill] sm:$0xff]  ;;  %v2878_v34 = vld [vmem:[#allocation16_spill] sm:$0xff] }
  0x8c   : > { %v1209_v1 = vsub.f32 %v1180_v42, %v1205_v61  ;;  %v606_v24 = vadd.f32 %v602_v9, %v598_v8  ;;  %v694_v52 = vadd.f32 %v690_v54, %v686_v11  ;;  %v862_v5 = vmul.f32 %v1950_v18, %v2019_v39  ;;  %v2879_v8 = vld [vmem:[#allocation11_spill] sm:$0xff]  ;;  %v2881_v61 = vld [vmem:[#allocation12_spill] sm:$0xff] }
  0x8d   : > { %v866_v17 = vmul.f32 %v2873_v14, %v2015_v38  ;;  %v950_v56 = vmul.f32 %v2875_v23, %v2874_v6  ;;  %v1037_v7 = vadd.f32 %v1033_v55, %v949_v15  ;;  %v782_v22 = vadd.f32 %v778_v48, %v774_v4  ;;  %v2880_v31 = vld [vmem:[#allocation15_spill] sm:$0xff]  ;;  %v2883_v15 = vld [vmem:[#allocation18_spill] sm:$0xff]  ;;  %v2884_v48 = vld [vmem:[#allocation17_spill] sm:$0xff] }
  0x8e   : > { %v954_v32 = vmul.f32 %v2877_v12, %v2876_v19  ;;  %v1038_v16 = vmul.f32 %v2879_v8, %v2878_v34  ;;  %v698_v42 = vadd.f32 %v694_v52, %v606_v24  ;;  %v1042_v9 = vmul.f32 %v2881_v61, %v2880_v31  ;;  %v2882_v4 = vld [vmem:[#allocation19_spill] sm:$0xff]  ;;  %v2885_v52 = vld [vmem:[#allocation6_spill] sm:$0xff]  ;;  %v2888_v6 = vld [vmem:[#allocation9_spill] sm:$0xff] }
  0x8f   : > { %v870_v13 = vadd.f32 %v866_v17, %v862_v5  ;;  %v1126_v18 = vmul.f32 %v2048_v50, %v2101_v46  ;;  %v1125_v38 = vadd.f32 %v1121_v62, %v1037_v7  ;;  %v1130_v55 = vmul.f32 %v2083_v29, %v2087_v30  ;;  %v2886_v50 = vld [vmem:[#allocation20_spill] sm:$0xff]  ;;  %v2887_v46 = vld [vmem:[#allocation5_spill] sm:$0xff]  ;;  %v2896_v31 = vld [vmem:[#allocation27_spill] sm:$0xff] }
  0x90   : > { %v958_v39 = vadd.f32 %v954_v32, %v950_v56  ;;  %v1214_v19 = vmul.f32 %v2090_v36, %v2120_v60  ;;  %v786_v11 = vadd.f32 %v782_v22, %v698_v42  ;;  %v1046_v54 = vadd.f32 %v1042_v9, %v1038_v16  ;;  %v2889_v23 = vld [vmem:[#allocation21_spill] sm:$0xff]  ;;  %v2890_v7 = vld [vmem:[#allocation8_spill] sm:$0xff]  ;;  %v2891_v60 = vld [vmem:[#allocation22_spill] sm:$0xff] }
  0x91   : > { %v1218_v24 = vmul.f32 %v2883_v15, %v2882_v4  ;;  %v599_v5 = vmul.f32 %v2885_v52, %v2884_v48  ;;  %v1213_v14 = vadd.f32 %v1209_v1, %v1125_v38  ;;  %v1134_v17 = vadd.f32 %v1130_v55, %v1126_v18  ;;  %v2892_v22 = vld [vmem:[#allocation23_spill] sm:$0xff]  ;;  %v2893_v34 = vld [vmem:[#allocation25_spill] sm:$0xff]  ;;  %v2894_v8 = vld [vmem:[#allocation24_spill] sm:$0xff] }
  0x92   : > { %v603_v62 = vmul.f32 %v2887_v46, %v2886_v50  ;;  %v687_v56 = vmul.f32 %v2889_v23, %v2888_v6  ;;  %v874_v29 = vadd.f32 %v870_v13, %v786_v11  ;;  %v691_v36 = vmul.f32 %v2891_v60, %v2890_v7  ;;  %v2895_v16 = vld [vmem:[#allocation26_spill] sm:$0xff]  ;;  %v2897_v18 = vld [vmem:[#allocation31_spill] sm:$0xff]  ;;  %v2898_v38 = vld [vmem:[#allocation28_spill] sm:$0xff] }
  0x93   : > { %v1222_v30 = vadd.f32 %v1218_v24, %v1214_v19  ;;  %v775_v12 = vmul.f32 %v2892_v22, %v2151_v0  ;;  %1233 = vst [vmem:[%s2214_s28 + $0x18] sm:$0xff] %v1213_v14  ;;  %v779_v1 = vmul.f32 %v2894_v8, %v2893_v34  ;;  %v863_v42 = vmul.f32 %v2895_v16, %v2169_v51  ;;  %v2899_v19 = vld [vmem:[#allocation30_spill] sm:$0xff]  ;;  %v2900_v11 = vld [vmem:[#allocation29_spill] sm:$0xff]  ;;  %v2901_v24 = vld [vmem:[#allocation35_spill] sm:$0xff] }
  0x94   : > { %v607_v32 = vadd.f32 %v603_v62, %v599_v5  ;;  %v867_v61 = vmul.f32 %v2157_v37, %v2896_v31  ;;  %v962_v9 = vadd.f32 %v958_v39, %v874_v29  ;;  %v695_v13 = vadd.f32 %v691_v36, %v687_v56  ;;  %v2902_v48 = vld [vmem:[#allocation32_spill] sm:$0xff]  ;;  %v2903_v5 = vld [vmem:[#allocation34_spill] sm:$0xff]  ;;  %v2904_v14 = vld [vmem:[#allocation33_spill] sm:$0xff] }
  0x95   : > { %v951_v55 = vmul.f32 %v2898_v38, %v2897_v18  ;;  %v955_v4 = vmul.f32 %v2900_v11, %v2899_v19  ;;  %v783_v0 = vadd.f32 %v779_v1, %v775_v12  ;;  %v1039_v52 = vmul.f32 %v2902_v48, %v2901_v24  ;;  %v2905_v39 = vld [vmem:[#allocation39_spill] sm:$0xff]  ;;  %v2906_v62 = vld [vmem:[#allocation36_spill] sm:$0xff]  ;;  %v2907_v56 = vld [vmem:[#allocation38_spill] sm:$0xff] }
  0x96   : > { %v871_v15 = vadd.f32 %v867_v61, %v863_v42  ;;  %v1043_v51 = vmul.f32 %v2904_v14, %v2903_v5  ;;  %v1050_v50 = vadd.f32 %v1046_v54, %v962_v9  ;;  %v699_v46 = vadd.f32 %v695_v13, %v607_v32  ;;  %v2908_v29 = vld [vmem:[#allocation37_spill] sm:$0xff]  ;;  %v2909_v60 = vld [vmem:[#allocation43_spill] sm:$0xff]  ;;  %v2910_v36 = vld [vmem:[#allocation40_spill] sm:$0xff] }
  0x97   : > { %v959_v37 = vadd.f32 %v955_v4, %v951_v55  ;;  %v1127_v6 = vmul.f32 %v2906_v62, %v2905_v39  ;;  %v1131_v7 = vmul.f32 %v2908_v29, %v2907_v56  ;;  %v1215_v22 = vmul.f32 %v2910_v36, %v2909_v60  ;;  %v2911_v12 = vld [vmem:[#allocation42_spill] sm:$0xff]  ;;  %v2912_v34 = vld [vmem:[#allocation41_spill] sm:$0xff]  ;;  %v2913_v42 = vld [vmem:[#allocation44_spill] sm:$0xff] }
  0x98   : > { %v1047_v23 = vadd.f32 %v1043_v51, %v1039_v52  ;;  %v1219_v8 = vmul.f32 %v2912_v34, %v2911_v12  ;;  %v1138_v1 = vadd.f32 %v1134_v17, %v1050_v50  ;;  %v787_v16 = vadd.f32 %v783_v0, %v699_v46  ;;  %v2914_v31 = vld [vmem:[#allocation47_spill] sm:$0xff]  ;;  %v2915_v32 = vld [vmem:[#allocation45_spill] sm:$0xff]  ;;  %v2916_v61 = vld [vmem:[#allocation46_spill] sm:$0xff] }
  0x99   : > { %v600_v54 = vmul.f32 %v2914_v31, %v2913_v42  ;;  %v604_v9 = vmul.f32 %v2916_v61, %v2915_v32  ;;  %v1135_v13 = vadd.f32 %v1131_v7, %v1127_v6  ;;  %v2917_v38 = vld [vmem:[#allocation51_spill] sm:$0xff]  ;;  %v2918_v55 = vld [vmem:[#allocation48_spill] sm:$0xff]  ;;  %v2919_v11 = vld [vmem:[#allocation50_spill] sm:$0xff] }
  0x9a   : > { %v1223_v18 = vadd.f32 %v1219_v8, %v1215_v22  ;;  %v688_v19 = vmul.f32 %v2918_v55, %v2917_v38  ;;  %v2920_v17 = vld [vmem:[#allocation49_spill] sm:$0xff]  ;;  %v1226_v0 = vadd.f32 %v1222_v30, %v1138_v1  ;;  %v875_v24 = vadd.f32 %v871_v15, %v787_v16  ;;  %v2921_v52 = vld [vmem:[#allocation52_spill] sm:$0xff]  ;;  %v2922_v51 = vld [vmem:[#allocation54_spill] sm:$0xff] }
  0x9b   : > { %v692_v4 = vmul.f32 %v2920_v17, %v2919_v11  ;;  %v608_v48 = vadd.f32 %v604_v9, %v600_v54  ;;  %v776_v5 = vmul.f32 %v2921_v52, %v2305_v26  ;;  %v2923_v50 = vld [vmem:[#allocation53_spill] sm:$0xff]  ;;  %v2924_v39 = vld [vmem:[#allocation59_spill] sm:$0xff]  ;;  %v2927_v29 = vld [vmem:[#allocation56_spill] sm:$0xff]  ;;  %v1216_v52 = vmul.f32 %v2376_v2, %v2396_v58 }
  0x9c   : > { %v780_v46 = vmul.f32 %v2923_v50, %v2922_v51  ;;  %v2925_v62 = vld [vmem:[#allocation55_spill] sm:$0xff]  ;;  %v2926_v56 = vld [vmem:[#allocation57_spill] sm:$0xff]  ;;  %1234 = vst [vmem:[%s2617_s6] sm:$0xff] %v1226_v0  ;;  %v963_v60 = vadd.f32 %v959_v37, %v875_v24  ;;  %v2928_v36 = vld [vmem:[#allocation62_spill] sm:$0xff] }
  0x9d   : > { %v696_v14 = vadd.f32 %v692_v4, %v688_v19  ;;  %v864_v6 = vmul.f32 %v2925_v62, %v2924_v39  ;;  %v868_v7 = vmul.f32 %v2927_v29, %v2926_v56  ;;  %v2929_v22 = vld [vmem:[#allocation58_spill] sm:$0xff]  ;;  %v2930_v15 = vld [vmem:[#allocation61_spill] sm:$0xff]  ;;  %v2931_v12 = vld [vmem:[#allocation60_spill] sm:$0xff]  ;;  %v689_v56 = vmul.f32 %v2412_v28, %v2432_v44 }
  0x9e   : > { %v952_v30 = vmul.f32 %v2929_v22, %v2928_v36  ;;  %v956_v34 = vmul.f32 %v2931_v12, %v2930_v15  ;;  %v2932_v8 = vld [vmem:[#allocation66_spill] sm:$0xff]  ;;  %v2933_v26 = vld [vmem:[#allocation63_spill] sm:$0xff]  ;;  %v784_v42 = vadd.f32 %v780_v46, %v776_v5  ;;  %v2934_v54 = vld [vmem:[#allocation65_spill] sm:$0xff]  ;;  %v1051_v9 = vadd.f32 %v1047_v23, %v963_v60 }
  0x9f   : > { %v1040_v1 = vmul.f32 %v2933_v26, %v2932_v8  ;;  %v700_v16 = vadd.f32 %v696_v14, %v608_v48  ;;  %v872_v31 = vadd.f32 %v868_v7, %v864_v6  ;;  %v2935_v32 = vld [vmem:[#allocation64_spill] sm:$0xff]  ;;  %v2936_v55 = vld [vmem:[#allocation70_spill] sm:$0xff]  ;;  %v2937_v19 = vld [vmem:[#allocation67_spill] sm:$0xff]  ;;  %v1220_v48 = vmul.f32 %v2381_v21, %v2385_v35 }
  0xa0   : > { %v1044_v61 = vmul.f32 %v2935_v32, %v2934_v54  ;;  %v960_v38 = vadd.f32 %v956_v34, %v952_v30  ;;  %v1128_v37 = vmul.f32 %v2937_v19, %v2936_v55  ;;  %v2938_v11 = vld [vmem:[#allocation69_spill] sm:$0xff]  ;;  %v2939_v17 = vld [vmem:[#allocation68_spill] sm:$0xff]  ;;  %v1139_v5 = vadd.f32 %v1135_v13, %v1051_v9  ;;  %v2941_v50 = vld [vmem:[#allocation71_spill] sm:$0xff] }
  0xa1   : > { %v1132_v4 = vmul.f32 %v2939_v17, %v2938_v11  ;;  %v788_v0 = vadd.f32 %v784_v42, %v700_v16  ;;  %v2940_v23 = vld [vmem:[#allocation73_spill] sm:$0xff]  ;;  %v2942_v46 = vld [vmem:[#allocation72_spill] sm:$0xff]  ;;  %v1224_v6 = vadd.f32 %v1220_v48, %v1216_v52  ;;  %v2943_v29 = vld [vmem:[#allocation74_spill] sm:$0xff] }
  0xa2   : > { %v1048_v24 = vadd.f32 %v1044_v61, %v1040_v1  ;;  %v601_v51 = vmul.f32 %v2940_v23, %v2388_v27  ;;  %v605_v39 = vmul.f32 %v2942_v46, %v2941_v50  ;;  %v693_v2 = vmul.f32 %v2419_v47, %v2943_v29  ;;  %v2944_v21 = vld [vmem:[#allocation75_spill] sm:$0xff]  ;;  %v2945_v13 = vld [vmem:[#allocation77_spill] sm:$0xff]  ;;  %v2946_v60 = vld [vmem:[#allocation76_spill] sm:$0xff] }
  0xa3   : > { %v1136_v14 = vadd.f32 %v1132_v4, %v1128_v37  ;;  %v876_v62 = vadd.f32 %v872_v31, %v788_v0  ;;  %v1227_v58 = vadd.f32 %v1223_v18, %v1139_v5  ;;  %v777_v35 = vmul.f32 %v2944_v21, %v2448_v53  ;;  %v2947_v30 = vld [vmem:[#allocation78_spill] sm:$0xff]  ;;  %v2948_v12 = vld [vmem:[#allocation79_spill] sm:$0xff]  ;;  %v2949_v34 = vld [vmem:[#allocation80_spill] sm:$0xff] }
  0xa4   : > { %v609_v7 = vadd.f32 %v605_v39, %v601_v51  ;;  %v781_v36 = vmul.f32 %v2946_v60, %v2945_v13  ;;  %v697_v22 = vadd.f32 %v693_v2, %v689_v56  ;;  %v865_v15 = vmul.f32 %v2947_v30, %v2470_v59  ;;  %v2950_v44 = vld [vmem:[#allocation81_spill] sm:$0xff]  ;;  %v2951_v42 = vld [vmem:[#allocation83_spill] sm:$0xff]  ;;  %v2952_v59 = vld [vmem:[#allocation82_spill] sm:$0xff] }
  0xa5   : > { %v964_v27 = vadd.f32 %v960_v38, %v876_v62  ;;  %v869_v8 = vmul.f32 %v2949_v34, %v2948_v12  ;;  %1235 = vst [vmem:[%s2617_s6 + $0x8] sm:$0xff] %v1227_v58  ;;  %v953_v47 = vmul.f32 %v2462_v63, %v2484_v45  ;;  %v957_v18 = vmul.f32 %v2473_v10, %v2950_v44  ;;  %v2953_v38 = vld [vmem:[#allocation84_spill] sm:$0xff] }
  0xa6   : > { %v785_v28 = vadd.f32 %v781_v36, %v777_v35  ;;  %v1041_v53 = vmul.f32 %v2480_v20, %v2499_v41  ;;  %v701_v1 = vadd.f32 %v697_v22, %v609_v7  ;;  %v1045_v31 = vmul.f32 %v2952_v59, %v2951_v42 }
  0xa7   : > { %v1052_v26 = vadd.f32 %v1048_v24, %v964_v27  ;;  %v873_v16 = vadd.f32 %v869_v8, %v865_v15  ;;  %v961_v54 = vadd.f32 %v957_v18, %v953_v47  ;;  %v1129_v63 = vmul.f32 %v2506_v43, %v2519_v3 }
  0xa8   : > { %v789_v61 = vadd.f32 %v785_v28, %v701_v1  ;;  %v1133_v45 = vmul.f32 %v2509_v25, %v2515_v49  ;;  %v1217_v10 = vmul.f32 %v2522_v57, %v2534_v40  ;;  %v1049_v9 = vadd.f32 %v1045_v31, %v1041_v53 }
  0xa9   : > { %v1140_v32 = vadd.f32 %v1136_v14, %v1052_v26  ;;  %v1221_v55 = vmul.f32 %v2953_v38, %v2530_v33 }
  0xaa   : > { %v877_v41 = vadd.f32 %v873_v16, %v789_v61  ;;  %v1137_v37 = vadd.f32 %v1133_v45, %v1129_v63 }
  0xab   : > { %v1228_v20 = vadd.f32 %v1224_v6, %v1140_v32  ;;  %v1225_v17 = vadd.f32 %v1221_v55, %v1217_v10 }
  0xac   : > { %v965_v19 = vadd.f32 %v961_v54, %v877_v41 }
  0xad   : > { %1236 = vst [vmem:[%s2617_s6 + $0x10] sm:$0xff] %v1228_v20 }
  0xae   : > { %v1053_v11 = vadd.f32 %v1049_v9, %v965_v19 }
  0xb0   : > { %v1141_v4 = vadd.f32 %v1137_v37, %v1053_v11 }
  0xb2   : > { %v1229_v0 = vadd.f32 %v1225_v17, %v1141_v4 }
  0xb4   : > { %1237 = vst [vmem:[%s2617_s6 + $0x18] sm:$0xff] %v1229_v0 }
  0xb5 PF: > { %s16_s24 = sadd.s32 1, %s1641_s24   ;;  %s2954_s18 = smov %s1621_s19 }
  0xb6   : > { %p13_p12 = scmp.ge.s32.totalorder %s16_s24, 10   ;;  %s2955_s19 = smov %s1726_s30 }
  0xb7   : > { %s2956_s20 = smov %s1633_s22  ;;  %s2957_s21 = smov %s1637_s23 }
  0xb8   : > { %s2958_s22 = smov %s2961_s25  ;;  %s2959_s23 = smov %s2965_s26 }
  0xb9   :  { %15 = sbr.rel (!%p13_p12) target bundleno = 4 (0x4), region = 171 }

// kernel: reverse.8
= control target key start
LH: loop header
LB: loop body
LE: loop exit
PB: predicated region body
PF: predicated region fallthrough
CT: control target
= control target key end

     0   :  { %s2312_s0 = inlined_call_operand.vmem [shape: f32[2,8,16,16,6], index: 0, kind: input, shape index: {}]   ;;  %s2313_s1 = inlined_call_operand.vmem [shape: f32[2,8,16,16,6], index: 1, kind: output, shape index: {}]  }
   0x1   :  { %v768_v0 = vld [vmem:[%s2312_s0 + $0x50] sm:$0xff]  ;;  %v799_v16 = vld [vmem:[%s2312_s0 + $0x40] sm:$0xff] }
   0x2   :  { %v769_v1 = vld [vmem:[%s2312_s0 + $0x350] sm:$0xff]  ;;  %4 = vst [vmem:[%s2313_s1] sm:$0xff] %v768_v0  ;;  %v801_v17 = vld [vmem:[%s2312_s0 + $0x340] sm:$0xff]  ;;  %800 = vst [vmem:[%s2313_s1 + $0x10] sm:$0xff] %v799_v16 }
   0x3   :  { %v771_v2 = vld [vmem:[%s2312_s0 + $0xb0] sm:$0xff]  ;;  %770 = vst [vmem:[%s2313_s1 + $0x300] sm:$0xff] %v769_v1  ;;  %802 = vst [vmem:[%s2313_s1 + $0x310] sm:$0xff] %v801_v17  ;;  %v803_v18 = vld [vmem:[%s2312_s0 + $0xa0] sm:$0xff] }
   0x4   :  { %772 = vst [vmem:[%s2313_s1 + $0x60] sm:$0xff] %v771_v2  ;;  %v773_v3 = vld [vmem:[%s2312_s0 + $0x3b0] sm:$0xff]  ;;  %v805_v19 = vld [vmem:[%s2312_s0 + $0x3a0] sm:$0xff]  ;;  %804 = vst [vmem:[%s2313_s1 + $0x70] sm:$0xff] %v803_v18 }
   0x5   :  { %v775_v4 = vld [vmem:[%s2312_s0 + $0x110] sm:$0xff]  ;;  %774 = vst [vmem:[%s2313_s1 + $0x360] sm:$0xff] %v773_v3  ;;  %v807_v20 = vld [vmem:[%s2312_s0 + $0x100] sm:$0xff]  ;;  %806 = vst [vmem:[%s2313_s1 + $0x370] sm:$0xff] %v805_v19 }
   0x6   :  { %v777_v5 = vld [vmem:[%s2312_s0 + $0x410] sm:$0xff]  ;;  %776 = vst [vmem:[%s2313_s1 + $0xc0] sm:$0xff] %v775_v4  ;;  %808 = vst [vmem:[%s2313_s1 + $0xd0] sm:$0xff] %v807_v20  ;;  %v809_v21 = vld [vmem:[%s2312_s0 + $0x400] sm:$0xff] }
   0x7   :  { %778 = vst [vmem:[%s2313_s1 + $0x3c0] sm:$0xff] %v777_v5  ;;  %v779_v6 = vld [vmem:[%s2312_s0 + $0x170] sm:$0xff]  ;;  %v811_v22 = vld [vmem:[%s2312_s0 + $0x160] sm:$0xff]  ;;  %810 = vst [vmem:[%s2313_s1 + $0x3d0] sm:$0xff] %v809_v21 }
   0x8   :  { %v781_v7 = vld [vmem:[%s2312_s0 + $0x470] sm:$0xff]  ;;  %780 = vst [vmem:[%s2313_s1 + $0x120] sm:$0xff] %v779_v6  ;;  %v813_v23 = vld [vmem:[%s2312_s0 + $0x460] sm:$0xff]  ;;  %812 = vst [vmem:[%s2313_s1 + $0x130] sm:$0xff] %v811_v22 }
   0x9   :  { %v783_v8 = vld [vmem:[%s2312_s0 + $0x1d0] sm:$0xff]  ;;  %782 = vst [vmem:[%s2313_s1 + $0x420] sm:$0xff] %v781_v7  ;;  %814 = vst [vmem:[%s2313_s1 + $0x430] sm:$0xff] %v813_v23  ;;  %v815_v24 = vld [vmem:[%s2312_s0 + $0x1c0] sm:$0xff] }
   0xa   :  { %784 = vst [vmem:[%s2313_s1 + $0x180] sm:$0xff] %v783_v8  ;;  %v785_v9 = vld [vmem:[%s2312_s0 + $0x4d0] sm:$0xff]  ;;  %v817_v25 = vld [vmem:[%s2312_s0 + $0x4c0] sm:$0xff]  ;;  %816 = vst [vmem:[%s2313_s1 + $0x190] sm:$0xff] %v815_v24 }
   0xb   :  { %v787_v10 = vld [vmem:[%s2312_s0 + $0x230] sm:$0xff]  ;;  %786 = vst [vmem:[%s2313_s1 + $0x480] sm:$0xff] %v785_v9  ;;  %v819_v26 = vld [vmem:[%s2312_s0 + $0x220] sm:$0xff]  ;;  %818 = vst [vmem:[%s2313_s1 + $0x490] sm:$0xff] %v817_v25 }
   0xc   :  { %v789_v11 = vld [vmem:[%s2312_s0 + $0x530] sm:$0xff]  ;;  %788 = vst [vmem:[%s2313_s1 + $0x1e0] sm:$0xff] %v787_v10  ;;  %820 = vst [vmem:[%s2313_s1 + $0x1f0] sm:$0xff] %v819_v26  ;;  %v821_v27 = vld [vmem:[%s2312_s0 + $0x520] sm:$0xff] }
   0xd   :  { %790 = vst [vmem:[%s2313_s1 + $0x4e0] sm:$0xff] %v789_v11  ;;  %v791_v12 = vld [vmem:[%s2312_s0 + $0x290] sm:$0xff]  ;;  %v823_v28 = vld [vmem:[%s2312_s0 + $0x280] sm:$0xff]  ;;  %822 = vst [vmem:[%s2313_s1 + $0x4f0] sm:$0xff] %v821_v27 }
   0xe   :  { %v793_v13 = vld [vmem:[%s2312_s0 + $0x590] sm:$0xff]  ;;  %792 = vst [vmem:[%s2313_s1 + $0x240] sm:$0xff] %v791_v12  ;;  %v825_v29 = vld [vmem:[%s2312_s0 + $0x580] sm:$0xff]  ;;  %824 = vst [vmem:[%s2313_s1 + $0x250] sm:$0xff] %v823_v28 }
   0xf   :  { %v795_v14 = vld [vmem:[%s2312_s0 + $0x2f0] sm:$0xff]  ;;  %794 = vst [vmem:[%s2313_s1 + $0x540] sm:$0xff] %v793_v13  ;;  %826 = vst [vmem:[%s2313_s1 + $0x550] sm:$0xff] %v825_v29  ;;  %v827_v30 = vld [vmem:[%s2312_s0 + $0x2e0] sm:$0xff] }
  0x10   :  { %796 = vst [vmem:[%s2313_s1 + $0x2a0] sm:$0xff] %v795_v14  ;;  %v797_v15 = vld [vmem:[%s2312_s0 + $0x5f0] sm:$0xff]  ;;  %v829_v31 = vld [vmem:[%s2312_s0 + $0x5e0] sm:$0xff]  ;;  %828 = vst [vmem:[%s2313_s1 + $0x2b0] sm:$0xff] %v827_v30 }
  0x11   :  { %798 = vst [vmem:[%s2313_s1 + $0x5a0] sm:$0xff] %v797_v15  ;;  %v831_v32 = vld [vmem:[%s2312_s0 + $0x30] sm:$0xff]  ;;  %830 = vst [vmem:[%s2313_s1 + $0x5b0] sm:$0xff] %v829_v31  ;;  %v863_v48 = vld [vmem:[%s2312_s0 + $0x20] sm:$0xff] }
  0x12   :  { %832 = vst [vmem:[%s2313_s1 + $0x20] sm:$0xff] %v831_v32  ;;  %v833_v33 = vld [vmem:[%s2312_s0 + $0x330] sm:$0xff]  ;;  %v865_v49 = vld [vmem:[%s2312_s0 + $0x320] sm:$0xff]  ;;  %864 = vst [vmem:[%s2313_s1 + $0x30] sm:$0xff] %v863_v48 }
  0x13   :  { %v835_v34 = vld [vmem:[%s2312_s0 + $0x90] sm:$0xff]  ;;  %834 = vst [vmem:[%s2313_s1 + $0x320] sm:$0xff] %v833_v33  ;;  %v867_v50 = vld [vmem:[%s2312_s0 + $0x80] sm:$0xff]  ;;  %866 = vst [vmem:[%s2313_s1 + $0x330] sm:$0xff] %v865_v49 }
  0x14   :  { %v837_v35 = vld [vmem:[%s2312_s0 + $0x390] sm:$0xff]  ;;  %836 = vst [vmem:[%s2313_s1 + $0x80] sm:$0xff] %v835_v34  ;;  %868 = vst [vmem:[%s2313_s1 + $0x90] sm:$0xff] %v867_v50  ;;  %v869_v51 = vld [vmem:[%s2312_s0 + $0x380] sm:$0xff] }
  0x15   :  { %838 = vst [vmem:[%s2313_s1 + $0x380] sm:$0xff] %v837_v35  ;;  %v839_v36 = vld [vmem:[%s2312_s0 + $0xf0] sm:$0xff]  ;;  %v871_v52 = vld [vmem:[%s2312_s0 + $0xe0] sm:$0xff]  ;;  %870 = vst [vmem:[%s2313_s1 + $0x390] sm:$0xff] %v869_v51 }
  0x16   :  { %v841_v37 = vld [vmem:[%s2312_s0 + $0x3f0] sm:$0xff]  ;;  %840 = vst [vmem:[%s2313_s1 + $0xe0] sm:$0xff] %v839_v36  ;;  %v873_v53 = vld [vmem:[%s2312_s0 + $0x3e0] sm:$0xff]  ;;  %872 = vst [vmem:[%s2313_s1 + $0xf0] sm:$0xff] %v871_v52 }
  0x17   :  { %v843_v38 = vld [vmem:[%s2312_s0 + $0x150] sm:$0xff]  ;;  %842 = vst [vmem:[%s2313_s1 + $0x3e0] sm:$0xff] %v841_v37  ;;  %874 = vst [vmem:[%s2313_s1 + $0x3f0] sm:$0xff] %v873_v53  ;;  %v875_v54 = vld [vmem:[%s2312_s0 + $0x140] sm:$0xff] }
  0x18   :  { %844 = vst [vmem:[%s2313_s1 + $0x140] sm:$0xff] %v843_v38  ;;  %v845_v39 = vld [vmem:[%s2312_s0 + $0x450] sm:$0xff]  ;;  %v877_v55 = vld [vmem:[%s2312_s0 + $0x440] sm:$0xff]  ;;  %876 = vst [vmem:[%s2313_s1 + $0x150] sm:$0xff] %v875_v54 }
  0x19   :  { %v847_v40 = vld [vmem:[%s2312_s0 + $0x1b0] sm:$0xff]  ;;  %846 = vst [vmem:[%s2313_s1 + $0x440] sm:$0xff] %v845_v39  ;;  %v879_v56 = vld [vmem:[%s2312_s0 + $0x1a0] sm:$0xff]  ;;  %878 = vst [vmem:[%s2313_s1 + $0x450] sm:$0xff] %v877_v55 }
  0x1a   :  { %v849_v41 = vld [vmem:[%s2312_s0 + $0x4b0] sm:$0xff]  ;;  %848 = vst [vmem:[%s2313_s1 + $0x1a0] sm:$0xff] %v847_v40  ;;  %880 = vst [vmem:[%s2313_s1 + $0x1b0] sm:$0xff] %v879_v56  ;;  %v881_v57 = vld [vmem:[%s2312_s0 + $0x4a0] sm:$0xff] }
  0x1b   :  { %850 = vst [vmem:[%s2313_s1 + $0x4a0] sm:$0xff] %v849_v41  ;;  %v851_v42 = vld [vmem:[%s2312_s0 + $0x210] sm:$0xff]  ;;  %v883_v58 = vld [vmem:[%s2312_s0 + $0x200] sm:$0xff]  ;;  %882 = vst [vmem:[%s2313_s1 + $0x4b0] sm:$0xff] %v881_v57 }
  0x1c   :  { %v853_v43 = vld [vmem:[%s2312_s0 + $0x510] sm:$0xff]  ;;  %852 = vst [vmem:[%s2313_s1 + $0x200] sm:$0xff] %v851_v42  ;;  %v885_v59 = vld [vmem:[%s2312_s0 + $0x500] sm:$0xff]  ;;  %884 = vst [vmem:[%s2313_s1 + $0x210] sm:$0xff] %v883_v58 }
  0x1d   :  { %v855_v44 = vld [vmem:[%s2312_s0 + $0x270] sm:$0xff]  ;;  %854 = vst [vmem:[%s2313_s1 + $0x500] sm:$0xff] %v853_v43  ;;  %886 = vst [vmem:[%s2313_s1 + $0x510] sm:$0xff] %v885_v59  ;;  %v887_v60 = vld [vmem:[%s2312_s0 + $0x260] sm:$0xff] }
  0x1e   :  { %856 = vst [vmem:[%s2313_s1 + $0x260] sm:$0xff] %v855_v44  ;;  %v857_v45 = vld [vmem:[%s2312_s0 + $0x570] sm:$0xff]  ;;  %v889_v61 = vld [vmem:[%s2312_s0 + $0x560] sm:$0xff]  ;;  %888 = vst [vmem:[%s2313_s1 + $0x270] sm:$0xff] %v887_v60 }
  0x1f   :  { %v859_v46 = vld [vmem:[%s2312_s0 + $0x2d0] sm:$0xff]  ;;  %858 = vst [vmem:[%s2313_s1 + $0x560] sm:$0xff] %v857_v45  ;;  %v891_v62 = vld [vmem:[%s2312_s0 + $0x2c0] sm:$0xff]  ;;  %890 = vst [vmem:[%s2313_s1 + $0x570] sm:$0xff] %v889_v61 }
  0x20   :  { %v861_v47 = vld [vmem:[%s2312_s0 + $0x5d0] sm:$0xff]  ;;  %860 = vst [vmem:[%s2313_s1 + $0x2c0] sm:$0xff] %v859_v46  ;;  %892 = vst [vmem:[%s2313_s1 + $0x2d0] sm:$0xff] %v891_v62  ;;  %v893_v63 = vld [vmem:[%s2312_s0 + $0x5c0] sm:$0xff] }
  0x21   :  { %862 = vst [vmem:[%s2313_s1 + $0x5c0] sm:$0xff] %v861_v47  ;;  %v895_v0 = vld [vmem:[%s2312_s0 + $0x10] sm:$0xff]  ;;  %894 = vst [vmem:[%s2313_s1 + $0x5d0] sm:$0xff] %v893_v63  ;;  %v321_v16 = vld [vmem:[%s2312_s0] sm:$0xff] }
  0x22   :  { %v897_v1 = vld [vmem:[%s2312_s0 + $0x310] sm:$0xff]  ;;  %896 = vst [vmem:[%s2313_s1 + $0x40] sm:$0xff] %v895_v0  ;;  %927 = vst [vmem:[%s2313_s1 + $0x50] sm:$0xff] %v321_v16  ;;  %v928_v17 = vld [vmem:[%s2312_s0 + $0x300] sm:$0xff] }
  0x23   :  { %898 = vst [vmem:[%s2313_s1 + $0x340] sm:$0xff] %v897_v1  ;;  %v899_v2 = vld [vmem:[%s2312_s0 + $0x70] sm:$0xff]  ;;  %v930_v18 = vld [vmem:[%s2312_s0 + $0x60] sm:$0xff]  ;;  %929 = vst [vmem:[%s2313_s1 + $0x350] sm:$0xff] %v928_v17 }
  0x24   :  { %v901_v3 = vld [vmem:[%s2312_s0 + $0x370] sm:$0xff]  ;;  %900 = vst [vmem:[%s2313_s1 + $0xa0] sm:$0xff] %v899_v2  ;;  %v932_v19 = vld [vmem:[%s2312_s0 + $0x360] sm:$0xff]  ;;  %931 = vst [vmem:[%s2313_s1 + $0xb0] sm:$0xff] %v930_v18 }
  0x25   :  { %v903_v4 = vld [vmem:[%s2312_s0 + $0xd0] sm:$0xff]  ;;  %902 = vst [vmem:[%s2313_s1 + $0x3a0] sm:$0xff] %v901_v3  ;;  %933 = vst [vmem:[%s2313_s1 + $0x3b0] sm:$0xff] %v932_v19  ;;  %v934_v20 = vld [vmem:[%s2312_s0 + $0xc0] sm:$0xff] }
  0x26   :  { %904 = vst [vmem:[%s2313_s1 + $0x100] sm:$0xff] %v903_v4  ;;  %v905_v5 = vld [vmem:[%s2312_s0 + $0x3d0] sm:$0xff]  ;;  %v936_v21 = vld [vmem:[%s2312_s0 + $0x3c0] sm:$0xff]  ;;  %935 = vst [vmem:[%s2313_s1 + $0x110] sm:$0xff] %v934_v20 }
  0x27   :  { %v907_v6 = vld [vmem:[%s2312_s0 + $0x130] sm:$0xff]  ;;  %906 = vst [vmem:[%s2313_s1 + $0x400] sm:$0xff] %v905_v5  ;;  %v938_v22 = vld [vmem:[%s2312_s0 + $0x120] sm:$0xff]  ;;  %937 = vst [vmem:[%s2313_s1 + $0x410] sm:$0xff] %v936_v21 }
  0x28   :  { %v909_v7 = vld [vmem:[%s2312_s0 + $0x430] sm:$0xff]  ;;  %908 = vst [vmem:[%s2313_s1 + $0x160] sm:$0xff] %v907_v6  ;;  %939 = vst [vmem:[%s2313_s1 + $0x170] sm:$0xff] %v938_v22  ;;  %v940_v23 = vld [vmem:[%s2312_s0 + $0x420] sm:$0xff] }
  0x29   :  { %910 = vst [vmem:[%s2313_s1 + $0x460] sm:$0xff] %v909_v7  ;;  %v911_v8 = vld [vmem:[%s2312_s0 + $0x190] sm:$0xff]  ;;  %v942_v24 = vld [vmem:[%s2312_s0 + $0x180] sm:$0xff]  ;;  %941 = vst [vmem:[%s2313_s1 + $0x470] sm:$0xff] %v940_v23 }
  0x2a   :  { %v913_v9 = vld [vmem:[%s2312_s0 + $0x490] sm:$0xff]  ;;  %912 = vst [vmem:[%s2313_s1 + $0x1c0] sm:$0xff] %v911_v8  ;;  %v944_v25 = vld [vmem:[%s2312_s0 + $0x480] sm:$0xff]  ;;  %943 = vst [vmem:[%s2313_s1 + $0x1d0] sm:$0xff] %v942_v24 }
  0x2b   :  { %v915_v10 = vld [vmem:[%s2312_s0 + $0x1f0] sm:$0xff]  ;;  %914 = vst [vmem:[%s2313_s1 + $0x4c0] sm:$0xff] %v913_v9  ;;  %945 = vst [vmem:[%s2313_s1 + $0x4d0] sm:$0xff] %v944_v25  ;;  %v946_v26 = vld [vmem:[%s2312_s0 + $0x1e0] sm:$0xff] }
  0x2c   :  { %916 = vst [vmem:[%s2313_s1 + $0x220] sm:$0xff] %v915_v10  ;;  %v917_v11 = vld [vmem:[%s2312_s0 + $0x4f0] sm:$0xff]  ;;  %v948_v27 = vld [vmem:[%s2312_s0 + $0x4e0] sm:$0xff]  ;;  %947 = vst [vmem:[%s2313_s1 + $0x230] sm:$0xff] %v946_v26 }
  0x2d   :  { %v919_v12 = vld [vmem:[%s2312_s0 + $0x250] sm:$0xff]  ;;  %918 = vst [vmem:[%s2313_s1 + $0x520] sm:$0xff] %v917_v11  ;;  %v950_v28 = vld [vmem:[%s2312_s0 + $0x240] sm:$0xff]  ;;  %949 = vst [vmem:[%s2313_s1 + $0x530] sm:$0xff] %v948_v27 }
  0x2e   :  { %v921_v13 = vld [vmem:[%s2312_s0 + $0x550] sm:$0xff]  ;;  %920 = vst [vmem:[%s2313_s1 + $0x280] sm:$0xff] %v919_v12  ;;  %951 = vst [vmem:[%s2313_s1 + $0x290] sm:$0xff] %v950_v28  ;;  %v952_v29 = vld [vmem:[%s2312_s0 + $0x540] sm:$0xff] }
  0x2f   :  { %922 = vst [vmem:[%s2313_s1 + $0x580] sm:$0xff] %v921_v13  ;;  %v923_v14 = vld [vmem:[%s2312_s0 + $0x2b0] sm:$0xff]  ;;  %v954_v30 = vld [vmem:[%s2312_s0 + $0x2a0] sm:$0xff]  ;;  %953 = vst [vmem:[%s2313_s1 + $0x590] sm:$0xff] %v952_v29 }
  0x30   :  { %v925_v15 = vld [vmem:[%s2312_s0 + $0x5b0] sm:$0xff]  ;;  %924 = vst [vmem:[%s2313_s1 + $0x2e0] sm:$0xff] %v923_v14  ;;  %v956_v31 = vld [vmem:[%s2312_s0 + $0x5a0] sm:$0xff]  ;;  %955 = vst [vmem:[%s2313_s1 + $0x2f0] sm:$0xff] %v954_v30 }
  0x31   :  { %926 = vst [vmem:[%s2313_s1 + $0x5e0] sm:$0xff] %v925_v15  ;;  %957 = vst [vmem:[%s2313_s1 + $0x5f0] sm:$0xff] %v956_v31  ;;  %v958_v32 = vld [vmem:[%s2312_s0 + $0x58] sm:$0xff]  ;;  %v990_v48 = vld [vmem:[%s2312_s0 + $0x48] sm:$0xff] }
  0x32   :  { %v960_v33 = vld [vmem:[%s2312_s0 + $0x358] sm:$0xff]  ;;  %959 = vst [vmem:[%s2313_s1 + $0x8] sm:$0xff] %v958_v32  ;;  %v992_v49 = vld [vmem:[%s2312_s0 + $0x348] sm:$0xff]  ;;  %991 = vst [vmem:[%s2313_s1 + $0x18] sm:$0xff] %v990_v48 }
  0x33   :  { %v962_v34 = vld [vmem:[%s2312_s0 + $0xb8] sm:$0xff]  ;;  %961 = vst [vmem:[%s2313_s1 + $0x308] sm:$0xff] %v960_v33  ;;  %993 = vst [vmem:[%s2313_s1 + $0x318] sm:$0xff] %v992_v49  ;;  %v994_v50 = vld [vmem:[%s2312_s0 + $0xa8] sm:$0xff] }
  0x34   :  { %963 = vst [vmem:[%s2313_s1 + $0x68] sm:$0xff] %v962_v34  ;;  %v964_v35 = vld [vmem:[%s2312_s0 + $0x3b8] sm:$0xff]  ;;  %v996_v51 = vld [vmem:[%s2312_s0 + $0x3a8] sm:$0xff]  ;;  %995 = vst [vmem:[%s2313_s1 + $0x78] sm:$0xff] %v994_v50 }
  0x35   :  { %v966_v36 = vld [vmem:[%s2312_s0 + $0x118] sm:$0xff]  ;;  %965 = vst [vmem:[%s2313_s1 + $0x368] sm:$0xff] %v964_v35  ;;  %v998_v52 = vld [vmem:[%s2312_s0 + $0x108] sm:$0xff]  ;;  %997 = vst [vmem:[%s2313_s1 + $0x378] sm:$0xff] %v996_v51 }
  0x36   :  { %v968_v37 = vld [vmem:[%s2312_s0 + $0x418] sm:$0xff]  ;;  %967 = vst [vmem:[%s2313_s1 + $0xc8] sm:$0xff] %v966_v36  ;;  %999 = vst [vmem:[%s2313_s1 + $0xd8] sm:$0xff] %v998_v52  ;;  %v1000_v53 = vld [vmem:[%s2312_s0 + $0x408] sm:$0xff] }
  0x37   :  { %969 = vst [vmem:[%s2313_s1 + $0x3c8] sm:$0xff] %v968_v37  ;;  %v970_v38 = vld [vmem:[%s2312_s0 + $0x178] sm:$0xff]  ;;  %v1002_v54 = vld [vmem:[%s2312_s0 + $0x168] sm:$0xff]  ;;  %1001 = vst [vmem:[%s2313_s1 + $0x3d8] sm:$0xff] %v1000_v53 }
  0x38   :  { %v972_v39 = vld [vmem:[%s2312_s0 + $0x478] sm:$0xff]  ;;  %971 = vst [vmem:[%s2313_s1 + $0x128] sm:$0xff] %v970_v38  ;;  %v1004_v55 = vld [vmem:[%s2312_s0 + $0x468] sm:$0xff]  ;;  %1003 = vst [vmem:[%s2313_s1 + $0x138] sm:$0xff] %v1002_v54 }
  0x39   :  { %v974_v40 = vld [vmem:[%s2312_s0 + $0x1d8] sm:$0xff]  ;;  %973 = vst [vmem:[%s2313_s1 + $0x428] sm:$0xff] %v972_v39  ;;  %1005 = vst [vmem:[%s2313_s1 + $0x438] sm:$0xff] %v1004_v55  ;;  %v1006_v56 = vld [vmem:[%s2312_s0 + $0x1c8] sm:$0xff] }
  0x3a   :  { %975 = vst [vmem:[%s2313_s1 + $0x188] sm:$0xff] %v974_v40  ;;  %v976_v41 = vld [vmem:[%s2312_s0 + $0x4d8] sm:$0xff]  ;;  %v1008_v57 = vld [vmem:[%s2312_s0 + $0x4c8] sm:$0xff]  ;;  %1007 = vst [vmem:[%s2313_s1 + $0x198] sm:$0xff] %v1006_v56 }
  0x3b   :  { %v978_v42 = vld [vmem:[%s2312_s0 + $0x238] sm:$0xff]  ;;  %977 = vst [vmem:[%s2313_s1 + $0x488] sm:$0xff] %v976_v41  ;;  %v1010_v58 = vld [vmem:[%s2312_s0 + $0x228] sm:$0xff]  ;;  %1009 = vst [vmem:[%s2313_s1 + $0x498] sm:$0xff] %v1008_v57 }
  0x3c   :  { %v980_v43 = vld [vmem:[%s2312_s0 + $0x538] sm:$0xff]  ;;  %979 = vst [vmem:[%s2313_s1 + $0x1e8] sm:$0xff] %v978_v42  ;;  %1011 = vst [vmem:[%s2313_s1 + $0x1f8] sm:$0xff] %v1010_v58  ;;  %v1012_v59 = vld [vmem:[%s2312_s0 + $0x528] sm:$0xff] }
  0x3d   :  { %981 = vst [vmem:[%s2313_s1 + $0x4e8] sm:$0xff] %v980_v43  ;;  %v982_v44 = vld [vmem:[%s2312_s0 + $0x298] sm:$0xff]  ;;  %v1014_v60 = vld [vmem:[%s2312_s0 + $0x288] sm:$0xff]  ;;  %1013 = vst [vmem:[%s2313_s1 + $0x4f8] sm:$0xff] %v1012_v59 }
  0x3e   :  { %v984_v45 = vld [vmem:[%s2312_s0 + $0x598] sm:$0xff]  ;;  %983 = vst [vmem:[%s2313_s1 + $0x248] sm:$0xff] %v982_v44  ;;  %v1016_v61 = vld [vmem:[%s2312_s0 + $0x588] sm:$0xff]  ;;  %1015 = vst [vmem:[%s2313_s1 + $0x258] sm:$0xff] %v1014_v60 }
  0x3f   :  { %v986_v46 = vld [vmem:[%s2312_s0 + $0x2f8] sm:$0xff]  ;;  %985 = vst [vmem:[%s2313_s1 + $0x548] sm:$0xff] %v984_v45  ;;  %1017 = vst [vmem:[%s2313_s1 + $0x558] sm:$0xff] %v1016_v61  ;;  %v1018_v62 = vld [vmem:[%s2312_s0 + $0x2e8] sm:$0xff] }
  0x40   :  { %987 = vst [vmem:[%s2313_s1 + $0x2a8] sm:$0xff] %v986_v46  ;;  %v988_v47 = vld [vmem:[%s2312_s0 + $0x5f8] sm:$0xff]  ;;  %v1020_v63 = vld [vmem:[%s2312_s0 + $0x5e8] sm:$0xff]  ;;  %1019 = vst [vmem:[%s2313_s1 + $0x2b8] sm:$0xff] %v1018_v62 }
  0x41   :  { %989 = vst [vmem:[%s2313_s1 + $0x5a8] sm:$0xff] %v988_v47  ;;  %v1022_v0 = vld [vmem:[%s2312_s0 + $0x38] sm:$0xff]  ;;  %1021 = vst [vmem:[%s2313_s1 + $0x5b8] sm:$0xff] %v1020_v63  ;;  %v1054_v16 = vld [vmem:[%s2312_s0 + $0x28] sm:$0xff] }
  0x42   :  { %1023 = vst [vmem:[%s2313_s1 + $0x28] sm:$0xff] %v1022_v0  ;;  %v1024_v1 = vld [vmem:[%s2312_s0 + $0x338] sm:$0xff]  ;;  %v1056_v17 = vld [vmem:[%s2312_s0 + $0x328] sm:$0xff]  ;;  %1055 = vst [vmem:[%s2313_s1 + $0x38] sm:$0xff] %v1054_v16 }
  0x43   :  { %v1026_v2 = vld [vmem:[%s2312_s0 + $0x98] sm:$0xff]  ;;  %1025 = vst [vmem:[%s2313_s1 + $0x328] sm:$0xff] %v1024_v1  ;;  %v1058_v18 = vld [vmem:[%s2312_s0 + $0x88] sm:$0xff]  ;;  %1057 = vst [vmem:[%s2313_s1 + $0x338] sm:$0xff] %v1056_v17 }
  0x44   :  { %v1028_v3 = vld [vmem:[%s2312_s0 + $0x398] sm:$0xff]  ;;  %1027 = vst [vmem:[%s2313_s1 + $0x88] sm:$0xff] %v1026_v2  ;;  %1059 = vst [vmem:[%s2313_s1 + $0x98] sm:$0xff] %v1058_v18  ;;  %v1060_v19 = vld [vmem:[%s2312_s0 + $0x388] sm:$0xff] }
  0x45   :  { %1029 = vst [vmem:[%s2313_s1 + $0x388] sm:$0xff] %v1028_v3  ;;  %v1030_v4 = vld [vmem:[%s2312_s0 + $0xf8] sm:$0xff]  ;;  %v1062_v20 = vld [vmem:[%s2312_s0 + $0xe8] sm:$0xff]  ;;  %1061 = vst [vmem:[%s2313_s1 + $0x398] sm:$0xff] %v1060_v19 }
  0x46   :  { %v1032_v5 = vld [vmem:[%s2312_s0 + $0x3f8] sm:$0xff]  ;;  %1031 = vst [vmem:[%s2313_s1 + $0xe8] sm:$0xff] %v1030_v4  ;;  %v1064_v21 = vld [vmem:[%s2312_s0 + $0x3e8] sm:$0xff]  ;;  %1063 = vst [vmem:[%s2313_s1 + $0xf8] sm:$0xff] %v1062_v20 }
  0x47   :  { %v1034_v6 = vld [vmem:[%s2312_s0 + $0x158] sm:$0xff]  ;;  %1033 = vst [vmem:[%s2313_s1 + $0x3e8] sm:$0xff] %v1032_v5  ;;  %1065 = vst [vmem:[%s2313_s1 + $0x3f8] sm:$0xff] %v1064_v21  ;;  %v1066_v22 = vld [vmem:[%s2312_s0 + $0x148] sm:$0xff] }
  0x48   :  { %1035 = vst [vmem:[%s2313_s1 + $0x148] sm:$0xff] %v1034_v6  ;;  %v1036_v7 = vld [vmem:[%s2312_s0 + $0x458] sm:$0xff]  ;;  %v1068_v23 = vld [vmem:[%s2312_s0 + $0x448] sm:$0xff]  ;;  %1067 = vst [vmem:[%s2313_s1 + $0x158] sm:$0xff] %v1066_v22 }
  0x49   :  { %v1038_v8 = vld [vmem:[%s2312_s0 + $0x1b8] sm:$0xff]  ;;  %1037 = vst [vmem:[%s2313_s1 + $0x448] sm:$0xff] %v1036_v7  ;;  %v1070_v24 = vld [vmem:[%s2312_s0 + $0x1a8] sm:$0xff]  ;;  %1069 = vst [vmem:[%s2313_s1 + $0x458] sm:$0xff] %v1068_v23 }
  0x4a   :  { %v1040_v9 = vld [vmem:[%s2312_s0 + $0x4b8] sm:$0xff]  ;;  %1039 = vst [vmem:[%s2313_s1 + $0x1a8] sm:$0xff] %v1038_v8  ;;  %1071 = vst [vmem:[%s2313_s1 + $0x1b8] sm:$0xff] %v1070_v24  ;;  %v1072_v25 = vld [vmem:[%s2312_s0 + $0x4a8] sm:$0xff] }
  0x4b   :  { %1041 = vst [vmem:[%s2313_s1 + $0x4a8] sm:$0xff] %v1040_v9  ;;  %v1042_v10 = vld [vmem:[%s2312_s0 + $0x218] sm:$0xff]  ;;  %v1074_v26 = vld [vmem:[%s2312_s0 + $0x208] sm:$0xff]  ;;  %1073 = vst [vmem:[%s2313_s1 + $0x4b8] sm:$0xff] %v1072_v25 }
  0x4c   :  { %v1044_v11 = vld [vmem:[%s2312_s0 + $0x518] sm:$0xff]  ;;  %1043 = vst [vmem:[%s2313_s1 + $0x208] sm:$0xff] %v1042_v10  ;;  %v1076_v27 = vld [vmem:[%s2312_s0 + $0x508] sm:$0xff]  ;;  %1075 = vst [vmem:[%s2313_s1 + $0x218] sm:$0xff] %v1074_v26 }
  0x4d   :  { %v1046_v12 = vld [vmem:[%s2312_s0 + $0x278] sm:$0xff]  ;;  %1045 = vst [vmem:[%s2313_s1 + $0x508] sm:$0xff] %v1044_v11  ;;  %1077 = vst [vmem:[%s2313_s1 + $0x518] sm:$0xff] %v1076_v27  ;;  %v1078_v28 = vld [vmem:[%s2312_s0 + $0x268] sm:$0xff] }
  0x4e   :  { %1047 = vst [vmem:[%s2313_s1 + $0x268] sm:$0xff] %v1046_v12  ;;  %v1048_v13 = vld [vmem:[%s2312_s0 + $0x578] sm:$0xff]  ;;  %v1080_v29 = vld [vmem:[%s2312_s0 + $0x568] sm:$0xff]  ;;  %1079 = vst [vmem:[%s2313_s1 + $0x278] sm:$0xff] %v1078_v28 }
  0x4f   :  { %v1050_v14 = vld [vmem:[%s2312_s0 + $0x2d8] sm:$0xff]  ;;  %1049 = vst [vmem:[%s2313_s1 + $0x568] sm:$0xff] %v1048_v13  ;;  %v1082_v30 = vld [vmem:[%s2312_s0 + $0x2c8] sm:$0xff]  ;;  %1081 = vst [vmem:[%s2313_s1 + $0x578] sm:$0xff] %v1080_v29 }
  0x50   :  { %v1052_v15 = vld [vmem:[%s2312_s0 + $0x5d8] sm:$0xff]  ;;  %1051 = vst [vmem:[%s2313_s1 + $0x2c8] sm:$0xff] %v1050_v14  ;;  %1083 = vst [vmem:[%s2313_s1 + $0x2d8] sm:$0xff] %v1082_v30  ;;  %v1084_v31 = vld [vmem:[%s2312_s0 + $0x5c8] sm:$0xff] }
  0x51   :  { %1053 = vst [vmem:[%s2313_s1 + $0x5c8] sm:$0xff] %v1052_v15  ;;  %v1086_v32 = vld [vmem:[%s2312_s0 + $0x18] sm:$0xff]  ;;  %1085 = vst [vmem:[%s2313_s1 + $0x5d8] sm:$0xff] %v1084_v31  ;;  %v1118_v48 = vld [vmem:[%s2312_s0 + $0x8] sm:$0xff] }
  0x52   :  { %v1088_v33 = vld [vmem:[%s2312_s0 + $0x318] sm:$0xff]  ;;  %1087 = vst [vmem:[%s2313_s1 + $0x48] sm:$0xff] %v1086_v32  ;;  %1119 = vst [vmem:[%s2313_s1 + $0x58] sm:$0xff] %v1118_v48  ;;  %v1120_v49 = vld [vmem:[%s2312_s0 + $0x308] sm:$0xff] }
  0x53   :  { %1089 = vst [vmem:[%s2313_s1 + $0x348] sm:$0xff] %v1088_v33  ;;  %v1090_v34 = vld [vmem:[%s2312_s0 + $0x78] sm:$0xff]  ;;  %v1122_v50 = vld [vmem:[%s2312_s0 + $0x68] sm:$0xff]  ;;  %1121 = vst [vmem:[%s2313_s1 + $0x358] sm:$0xff] %v1120_v49 }
  0x54   :  { %v1092_v35 = vld [vmem:[%s2312_s0 + $0x378] sm:$0xff]  ;;  %1091 = vst [vmem:[%s2313_s1 + $0xa8] sm:$0xff] %v1090_v34  ;;  %v1124_v51 = vld [vmem:[%s2312_s0 + $0x368] sm:$0xff]  ;;  %1123 = vst [vmem:[%s2313_s1 + $0xb8] sm:$0xff] %v1122_v50 }
  0x55   :  { %v1094_v36 = vld [vmem:[%s2312_s0 + $0xd8] sm:$0xff]  ;;  %1093 = vst [vmem:[%s2313_s1 + $0x3a8] sm:$0xff] %v1092_v35  ;;  %1125 = vst [vmem:[%s2313_s1 + $0x3b8] sm:$0xff] %v1124_v51  ;;  %v1126_v52 = vld [vmem:[%s2312_s0 + $0xc8] sm:$0xff] }
  0x56   :  { %1095 = vst [vmem:[%s2313_s1 + $0x108] sm:$0xff] %v1094_v36  ;;  %v1096_v37 = vld [vmem:[%s2312_s0 + $0x3d8] sm:$0xff]  ;;  %v1128_v53 = vld [vmem:[%s2312_s0 + $0x3c8] sm:$0xff]  ;;  %1127 = vst [vmem:[%s2313_s1 + $0x118] sm:$0xff] %v1126_v52 }
  0x57   :  { %v1098_v38 = vld [vmem:[%s2312_s0 + $0x138] sm:$0xff]  ;;  %1097 = vst [vmem:[%s2313_s1 + $0x408] sm:$0xff] %v1096_v37  ;;  %v1130_v54 = vld [vmem:[%s2312_s0 + $0x128] sm:$0xff]  ;;  %1129 = vst [vmem:[%s2313_s1 + $0x418] sm:$0xff] %v1128_v53 }
  0x58   :  { %v1100_v39 = vld [vmem:[%s2312_s0 + $0x438] sm:$0xff]  ;;  %1099 = vst [vmem:[%s2313_s1 + $0x168] sm:$0xff] %v1098_v38  ;;  %1131 = vst [vmem:[%s2313_s1 + $0x178] sm:$0xff] %v1130_v54  ;;  %v1132_v55 = vld [vmem:[%s2312_s0 + $0x428] sm:$0xff] }
  0x59   :  { %1101 = vst [vmem:[%s2313_s1 + $0x468] sm:$0xff] %v1100_v39  ;;  %v1102_v40 = vld [vmem:[%s2312_s0 + $0x198] sm:$0xff]  ;;  %v1134_v56 = vld [vmem:[%s2312_s0 + $0x188] sm:$0xff]  ;;  %1133 = vst [vmem:[%s2313_s1 + $0x478] sm:$0xff] %v1132_v55 }
  0x5a   :  { %v1104_v41 = vld [vmem:[%s2312_s0 + $0x498] sm:$0xff]  ;;  %1103 = vst [vmem:[%s2313_s1 + $0x1c8] sm:$0xff] %v1102_v40  ;;  %v1136_v57 = vld [vmem:[%s2312_s0 + $0x488] sm:$0xff]  ;;  %1135 = vst [vmem:[%s2313_s1 + $0x1d8] sm:$0xff] %v1134_v56 }
  0x5b   :  { %v1106_v42 = vld [vmem:[%s2312_s0 + $0x1f8] sm:$0xff]  ;;  %1105 = vst [vmem:[%s2313_s1 + $0x4c8] sm:$0xff] %v1104_v41  ;;  %1137 = vst [vmem:[%s2313_s1 + $0x4d8] sm:$0xff] %v1136_v57  ;;  %v1138_v58 = vld [vmem:[%s2312_s0 + $0x1e8] sm:$0xff] }
  0x5c   :  { %1107 = vst [vmem:[%s2313_s1 + $0x228] sm:$0xff] %v1106_v42  ;;  %v1108_v43 = vld [vmem:[%s2312_s0 + $0x4f8] sm:$0xff]  ;;  %v1140_v59 = vld [vmem:[%s2312_s0 + $0x4e8] sm:$0xff]  ;;  %1139 = vst [vmem:[%s2313_s1 + $0x238] sm:$0xff] %v1138_v58 }
  0x5d   :  { %v1110_v44 = vld [vmem:[%s2312_s0 + $0x258] sm:$0xff]  ;;  %1109 = vst [vmem:[%s2313_s1 + $0x528] sm:$0xff] %v1108_v43  ;;  %v1142_v60 = vld [vmem:[%s2312_s0 + $0x248] sm:$0xff]  ;;  %1141 = vst [vmem:[%s2313_s1 + $0x538] sm:$0xff] %v1140_v59 }
  0x5e   :  { %v1112_v45 = vld [vmem:[%s2312_s0 + $0x558] sm:$0xff]  ;;  %1111 = vst [vmem:[%s2313_s1 + $0x288] sm:$0xff] %v1110_v44  ;;  %1143 = vst [vmem:[%s2313_s1 + $0x298] sm:$0xff] %v1142_v60  ;;  %v1144_v61 = vld [vmem:[%s2312_s0 + $0x548] sm:$0xff] }
  0x5f   :  { %1113 = vst [vmem:[%s2313_s1 + $0x588] sm:$0xff] %v1112_v45  ;;  %v1114_v46 = vld [vmem:[%s2312_s0 + $0x2b8] sm:$0xff]  ;;  %v1146_v62 = vld [vmem:[%s2312_s0 + $0x2a8] sm:$0xff]  ;;  %1145 = vst [vmem:[%s2313_s1 + $0x598] sm:$0xff] %v1144_v61 }
  0x60   :  { %v1116_v47 = vld [vmem:[%s2312_s0 + $0x5b8] sm:$0xff]  ;;  %1115 = vst [vmem:[%s2313_s1 + $0x2e8] sm:$0xff] %v1114_v46  ;;  %v1148_v63 = vld [vmem:[%s2312_s0 + $0x5a8] sm:$0xff]  ;;  %1147 = vst [vmem:[%s2313_s1 + $0x2f8] sm:$0xff] %v1146_v62 }
  0x61   :  { %1117 = vst [vmem:[%s2313_s1 + $0x5e8] sm:$0xff] %v1116_v47  ;;  %1149 = vst [vmem:[%s2313_s1 + $0x5f8] sm:$0xff] %v1148_v63 }

// kernel: _lambda_.13
= control target key start
LH: loop header
LB: loop body
LE: loop exit
PB: predicated region body
PF: predicated region fallthrough
CT: control target
= control target key end

     0   :  { %s1105_s15 = smov 0   ;;  %s1107_s16 = smov 0   ;;  %s1563_s0 = inlined_call_operand.vmem [shape: f32[2,8,3584], index: 0, kind: input, shape index: {}]   ;;  %s1564_s1 = inlined_call_operand.vmem [shape: f32[2,8,3584], index: 1, kind: input, shape index: {}]   ;;  %s1565_s2 = inlined_call_operand.vmem [shape: f32[8,8], index: 2, kind: input, shape index: {}]   ;;  %s1566_s3 = inlined_call_operand.vmem [shape: f32[8,1], index: 3, kind: input, shape index: {}]   ;;  %s1567_s4 = inlined_call_operand.vmem [shape: f32[2,8,3584], index: 4, kind: output, shape index: {}]  }
   0x1   :  { %s1109_s17 = smov 0   ;;  %s1111_s18 = smov 0  }
   0x2   :  { %s1113_s19 = smov 0  }
   0x3 LB: > { %s23_s20 = sadd.s32 1, %s1062_s17  ;;  %s26_s21 = sadd.s32 1, %s1066_s18  ;;  %s1070_s19 = sphi %s1113_s19, %s14_s19   ;;  %s1066_s18 = sphi %s1111_s18, %s1600_s18   ;;  %s1062_s17 = sphi %s1109_s17, %s1599_s17   ;;  %s1058_s16 = sphi %s1107_s16, %s1598_s16   ;;  %s1054_s15 = sphi %s1105_s15, %s1597_s15  }
   0x4   : > { %p24_p0 = scmp.ge.s32.totalorder %s23_s20, 4  ;;  %p940_p1 = scmp.ge.s32.totalorder %s1070_s19, 1 }
   0x5   : > { %p200_p2 = scmp.lt.s32.totalorder %s1070_s19, 9 }
   0x6   : > { %s1602_s20 = smov (%p24_p0, %s23_s20), 0  ;;  %s1604_s21 = smov (!%p24_p0, %s26_s21), %s1066_s18 }
   0x7   : > { %p201_p3 = pnand %p940_p1, %p200_p2  ;;  %p28_p4 = scmp.ge.s32.totalorder %s1604_s21, 2 }
   0x8   : > { %v293_v0 = vld [vmem:[%s1565_s2] sm:$0xff] (!%p201_p3)  ;;  %v1072_v2 = vmov (!%p201_p3), 1   ;;  %v1073_v3 = vmov (!%p201_p3), 0   ;;  %v1074_v4 = vmov (!%p201_p3), 2   ;;  %v1075_v5 = vmov (!%p201_p3), 3   ;;  %p244_p5 = scmp.lt.s32.totalorder (!%p201_p3), %s1058_s16, 1 }
   0x9   : > { %s1606_s21 = smov (%p28_p4, %s1604_s21), 0  ;;  %204 = sbr.rel (%p201_p3) target bundleno = 210 (0xd2), region = 36 }
   0xa   : > { %v280_v1 = vld [vmem:[%s1566_s3] sm:$0xff] (!%p201_p3)  ;;  %1010 = vset.pattern.permute.xlu1 (!%p201_p3), %v1072_v2  ;;  %1009 = vset.pattern.permute.xlu0 (!%p201_p3), %v1073_v3  ;;  %v1076_v6 = vmov (!%p201_p3), 4   ;;  %v1077_v7 = vmov (!%p201_p3), 6   ;;  %v1078_v8 = vmov (!%p201_p3), 5   ;;  %v1079_v9 = vmov (!%p201_p3), 7   ;;  %s243_s26 = smul.u32 (!%p201_p3), 7, %s1054_s15 }
   0xb   : > { %357 = vperm.xlu1 (!%p201_p3), %1010, %v293_v0   ;;  %283 = vperm.xlu0 (!%p201_p3), %1009, %v280_v1   ;;  %v303_v10 = vlaneseq (!%p201_p3) }
   0xc   : > { %p246_p6 = scmp.lt.s32.totalorder (!%p201_p3), %s243_s26, 27 }
   0xd   : > { %v304_v11 = vshrl.u32 (!%p201_p3), %v303_v10, 7 }
   0xf   : > { %1011 = vset.pattern.permute.xlu1 (!%p201_p3), %v1074_v4  ;;  %299 = vperm.xlu0 (!%p201_p3), %1009, %v293_v0   ;;  %v1158_v14 = vsub.s32 (!%p201_p3), 0, %v304_v11  ;;  %v1160_v15 = vsub.s32 (!%p201_p3), 1, %v304_v11  ;;  %v1162_v16 = vsub.s32 (!%p201_p3), 2, %v304_v11  ;;  %v1164_v17 = vsub.s32 (!%p201_p3), 3, %v304_v11 }
  0x10   : > { %415 = vperm.xlu1 %1011, %v293_v0   ;;  %s1608_s16 = smov (!%p244_p5, %s1058_s16), 1  ;;  %s1610_s26 = smov (!%p246_p6, %s243_s26), 27  ;;  %v1168_v20 = vsub.s32 4, %v304_v11  ;;  %v1170_v21 = vsub.s32 5, %v304_v11  ;;  %v1172_v22 = vsub.s32 6, %v304_v11 }
  0x11   : > { %s960_s27 = smul.u32 28, %s1608_s16 }
  0x13   : > { %1012 = vset.pattern.permute.xlu0 %v1075_v5  ;;  %s249_s28 = sadd.s32 %s960_s27, %s1610_s26 }
  0x14   : > { %1013 = vset.pattern.permute.xlu1 %v1076_v6  ;;  %473 = vperm.xlu0 %1012, %v293_v0   ;;  %s1148_s29 = sshll.u32 %s249_s28, 3 }
  0x15   : > { %531 = vperm.xlu1 %1013, %v293_v0   ;;  %s1154_s6 = scalar_lea.vmem %s1563_s0, %s1148_s29  ;;  %s1274_s9 = scalar_lea.vmem %s1564_s1, %s1148_s29 }
  0x16   : > { %v944_v12 = vld [vmem:[%s1154_s6 + $0x1] ss:$8 sm:$0xf]  ;;  %v294_v18 = vld [vmem:[%s1154_s6] ss:$8 sm:$0xf]  ;;  %s271_s12 = scalar_lea.vmem %s1567_s4, %s1148_s29 }
  0x17   : > { %v945_v13 = vld [vmem:[%s1154_s6 + $0x1] ss:$8 sm:$0xf0]  ;;  %v295_v19 = vld [vmem:[%s1154_s6] ss:$8 sm:$0xf0] }
  0x18   : > { %1015 = vset.pattern.permute.xlu0 %v1077_v7  ;;  %v1174_v23 = vor.u32 %v945_v13, %v944_v12  ;;  %v946_v24 = vld [vmem:[%s1154_s6 + $0x2] ss:$8 sm:$0xf]  ;;  %v1178_v26 = vor.u32 %v295_v19, %v294_v18  ;;  %v950_v27 = vld [vmem:[%s1154_s6 + $0x4] ss:$8 sm:$0xf] }
  0x19   : > { %1014 = vset.pattern.permute.xlu1 %v1078_v8  ;;  %647 = vperm.xlu0 %1015, %v293_v0   ;;  %v947_v25 = vld [vmem:[%s1154_s6 + $0x2] ss:$8 sm:$0xf0]  ;;  %v951_v28 = vld [vmem:[%s1154_s6 + $0x4] ss:$8 sm:$0xf0] }
  0x1a   : > { %589 = vperm.xlu1 %1014, %v293_v0   ;;  %v364_v29 = vrot.slane %v1174_v23, %v1158_v14  ;;  %v368_v30 = vrot.slane %v1174_v23, %v1160_v15  ;;  %v372_v31 = vrot.slane %v1174_v23, %v1162_v16  ;;  %v1188_v32 = vor.u32 %v947_v25, %v946_v24  ;;  %v948_v37 = vld [vmem:[%s1154_s6 + $0x3] ss:$8 sm:$0xf]  ;;  %v952_v43 = vld [vmem:[%s1154_s6 + $0x5] ss:$8 sm:$0xf] }
  0x1b   : > { %v376_v33 = vrot.slane %v1174_v23, %v1164_v17  ;;  %v380_v34 = vrot.slane %v1174_v23, %v1168_v20  ;;  %v384_v35 = vrot.slane %v1174_v23, %v1170_v21  ;;  %v388_v36 = vrot.slane %v1174_v23, %v1172_v22  ;;  %v949_v38 = vld [vmem:[%s1154_s6 + $0x3] ss:$8 sm:$0xf0]  ;;  %v953_v44 = vld [vmem:[%s1154_s6 + $0x5] ss:$8 sm:$0xf0] }
  0x1c   : > { %v306_v39 = vrot.slane %v1178_v26, %v1158_v14  ;;  %v310_v40 = vrot.slane %v1178_v26, %v1160_v15  ;;  %v314_v41 = vrot.slane %v1178_v26, %v1162_v16  ;;  %v1206_v42 = vor.u32 %v951_v28, %v950_v27  ;;  %v954_v49 = vld [vmem:[%s1154_s6 + $0x6] ss:$8 sm:$0xf]  ;;  %v956_v63 = vld [vmem:[%s1154_s6 + $0x7] ss:$8 sm:$0xf] }
  0x1d   : > { %1017 = vset.pattern.permute.xlu0 %v1079_v9  ;;  %v318_v45 = vrot.slane %v1178_v26, %v1164_v17  ;;  %v322_v46 = vrot.slane %v1178_v26, %v1168_v20  ;;  %v326_v47 = vrot.slane %v1178_v26, %v1170_v21  ;;  %v330_v48 = vrot.slane %v1178_v26, %v1172_v22  ;;  %v955_v50 = vld [vmem:[%s1154_s6 + $0x6] ss:$8 sm:$0xf0] }
  0x1e   : > { %1016 = vset.pattern.permute.xlu1 %v1079_v9  ;;  %v422_v51 = vrot.slane %v1188_v32, %v1158_v14  ;;  %v426_v52 = vrot.slane %v1188_v32, %v1160_v15  ;;  %v430_v53 = vrot.slane %v1188_v32, %v1162_v16  ;;  %v1226_v54 = vor.u32 %v949_v38, %v948_v37  ;;  %v274_v28 = vld [vmem:[%s1274_s9 + $0x8] sm:$0xff]  ;;  %v276_v27 = vld [vmem:[%s1274_s9 + $0x18] sm:$0xff]  ;;  %v277_v19 = vld [vmem:[%s1274_s9 + $0x20] sm:$0xff] }
  0x1f   : > { %705 = vperm.xlu1 %1016, %v293_v0   ;;  %v434_v55 = vrot.slane %v1188_v32, %v1164_v17  ;;  %v438_v56 = vrot.slane %v1188_v32, %v1168_v20  ;;  %v442_v57 = vrot.slane %v1188_v32, %v1170_v21  ;;  %v446_v58 = vrot.slane %v1188_v32, %v1172_v22  ;;  %v957_v0 = vld [vmem:[%s1154_s6 + $0x7] ss:$8 sm:$0xf0] }
  0x20   : > { %v538_v59 = vrot.slane %v1206_v42, %v1158_v14  ;;  %v542_v60 = vrot.slane %v1206_v42, %v1160_v15  ;;  %v1240_v61 = vor.u32 %v953_v44, %v952_v43  ;;  %v1242_v62 = vor.u32 %v955_v50, %v954_v49  ;;  %v273_v50 = vld [vmem:[%s1274_s9] sm:$0xff]  ;;  %v275_v49 = vld [vmem:[%s1274_s9 + $0x10] sm:$0xff]  ;;  %v278_v18 = vld [vmem:[%s1274_s9 + $0x28] sm:$0xff] }
  0x21   : > { %v546_v1 = vrot.slane %v1206_v42, %v1162_v16  ;;  %v550_v2 = vrot.slane %v1206_v42, %v1164_v17  ;;  %v554_v3 = vrot.slane %v1206_v42, %v1168_v20  ;;  %v558_v4 = vrot.slane %v1206_v42, %v1170_v21  ;;  %v279_v25 = vld [vmem:[%s1274_s9 + $0x30] sm:$0xff] }
  0x22   : > { %v1268_v12 = vor.u32 %v957_v0, %v956_v63 }
  0x8a   : > { %v358_v44 = vpop.permute.xlu1 %357  ;;  %v284_v37 = vpop.permute.xlu0 %283 }
  0x8b   : > { %v396_v43 = vmul.f32 %v364_v29, %v358_v44  ;;  %v397_v24 = vmul.f32 %v368_v30, %v358_v44  ;;  %v398_v38 = vmul.f32 %v372_v31, %v358_v44  ;;  %v399_v29 = vmul.f32 %v376_v33, %v358_v44 }
  0x8c   : > { %v400_v30 = vmul.f32 %v380_v34, %v358_v44  ;;  %v401_v13 = vmul.f32 %v384_v35, %v358_v44  ;;  %v402_v0 = vmul.f32 %v388_v36, %v358_v44  ;;  %v286_v63 = vadd.f32 %v284_v37, %v273_v50 }
  0x8d   : > { %v287_v11 = vadd.f32 %v284_v37, %v274_v28  ;;  %v288_v10 = vadd.f32 %v284_v37, %v275_v49  ;;  %v289_v31 = vadd.f32 %v284_v37, %v276_v27  ;;  %v290_v9 = vadd.f32 %v284_v37, %v277_v19 }
  0x8e   : > { %v291_v8 = vadd.f32 %v284_v37, %v278_v18  ;;  %v292_v7 = vadd.f32 %v284_v37, %v279_v25  ;;  %v300_v33 = vpop.permute.xlu0 %299 }
  0x8f   : > { %v338_v34 = vmul.f32 %v306_v39, %v300_v33  ;;  %v339_v35 = vmul.f32 %v310_v40, %v300_v33  ;;  %v340_v23 = vmul.f32 %v314_v41, %v300_v33  ;;  %v341_v36 = vmul.f32 %v318_v45, %v300_v33  ;;  %v416_v19 = vpop.permute.xlu1 %415 }
  0x90   : > { %v342_v18 = vmul.f32 %v322_v46, %v300_v33  ;;  %v343_v39 = vmul.f32 %v326_v47, %v300_v33  ;;  %v344_v40 = vmul.f32 %v330_v48, %v300_v33  ;;  %v454_v41 = vmul.f32 %v422_v51, %v416_v19 }
  0x91   : > { %v345_v25 = vadd.f32 %v338_v34, %v286_v63  ;;  %v346_v27 = vadd.f32 %v339_v35, %v287_v11  ;;  %v347_v45 = vadd.f32 %v340_v23, %v288_v10  ;;  %v348_v28 = vadd.f32 %v341_v36, %v289_v31 }
  0x92   : > { %v349_v37 = vadd.f32 %v342_v18, %v290_v9  ;;  %v350_v44 = vadd.f32 %v343_v39, %v291_v8  ;;  %v351_v49 = vadd.f32 %v344_v40, %v292_v7  ;;  %v455_v46 = vmul.f32 %v426_v52, %v416_v19 }
  0x93   : > { %v403_v47 = vadd.f32 %v396_v43, %v345_v25  ;;  %v404_v50 = vadd.f32 %v397_v24, %v346_v27  ;;  %v405_v6 = vadd.f32 %v398_v38, %v347_v45  ;;  %v406_v26 = vadd.f32 %v399_v29, %v348_v28 }
  0x94   : > { %v407_v48 = vadd.f32 %v400_v30, %v349_v37  ;;  %v408_v33 = vadd.f32 %v401_v13, %v350_v44  ;;  %v409_v5 = vadd.f32 %v402_v0, %v351_v49  ;;  %v456_v51 = vmul.f32 %v430_v53, %v416_v19  ;;  %v532_v10 = vpop.permute.xlu1 %531 }
  0x95   : > { %v457_v7 = vmul.f32 %v434_v55, %v416_v19  ;;  %v458_v52 = vmul.f32 %v438_v56, %v416_v19  ;;  %v459_v8 = vmul.f32 %v442_v57, %v416_v19  ;;  %v460_v9 = vmul.f32 %v446_v58, %v416_v19  ;;  %v474_v55 = vpop.permute.xlu0 %473 }
  0x96   : > { %v461_v11 = vadd.f32 %v454_v41, %v403_v47  ;;  %v462_v13 = vadd.f32 %v455_v46, %v404_v50  ;;  %v463_v53 = vadd.f32 %v456_v51, %v405_v6  ;;  %v570_v24 = vmul.f32 %v538_v59, %v532_v10 }
  0x97   : > { %v464_v38 = vadd.f32 %v457_v7, %v406_v26  ;;  %v465_v43 = vadd.f32 %v458_v52, %v407_v48  ;;  %v466_v63 = vadd.f32 %v459_v8, %v408_v33  ;;  %v467_v56 = vadd.f32 %v460_v9, %v409_v5 }
  0x98   : > { %v571_v57 = vmul.f32 %v542_v60, %v532_v10  ;;  %v572_v32 = vmul.f32 %v546_v1, %v532_v10  ;;  %v573_v58 = vmul.f32 %v550_v2, %v532_v10  ;;  %v574_v59 = vmul.f32 %v554_v3, %v532_v10 }
  0x99   : > { %v575_v5 = vmul.f32 %v558_v4, %v532_v10  ;;  %v1568_v6 = vrot.slane %v1206_v42, %v1172_v22  ;;  %v1569_v0 = vrot.slane %v1226_v54, %v1158_v14  ;;  %v1570_v29 = vrot.slane %v1226_v54, %v1160_v15  ;;  %v590_v30 = vpop.permute.xlu1 %589  ;;  %v648_v48 = vpop.permute.xlu0 %647 }
  0x9a   : > { %v1571_v3 = vrot.slane %v1226_v54, %v1162_v16  ;;  %v1572_v4 = vrot.slane %v1226_v54, %v1164_v17  ;;  %v1573_v42 = vrot.slane %v1226_v54, %v1168_v20  ;;  %v1574_v23 = vrot.slane %v1226_v54, %v1170_v21 }
  0x9b   : > { %v576_v60 = vmul.f32 %v1568_v6, %v532_v10  ;;  %v512_v1 = vmul.f32 %v1569_v0, %v474_v55  ;;  %v513_v2 = vmul.f32 %v1570_v29, %v474_v55  ;;  %v1575_v19 = vrot.slane %v1226_v54, %v1172_v22 }
  0x9c   : > { %v514_v31 = vmul.f32 %v1571_v3, %v474_v55  ;;  %v515_v34 = vmul.f32 %v1572_v4, %v474_v55  ;;  %v516_v35 = vmul.f32 %v1573_v42, %v474_v55  ;;  %v517_v36 = vmul.f32 %v1574_v23, %v474_v55 }
  0x9d   : > { %v518_v18 = vmul.f32 %v1575_v19, %v474_v55  ;;  %v519_v39 = vadd.f32 %v512_v1, %v461_v11  ;;  %v520_v40 = vadd.f32 %v513_v2, %v462_v13  ;;  %v1576_v41 = vrot.slane %v1240_v61, %v1158_v14 }
  0x9e   : > { %v521_v27 = vadd.f32 %v514_v31, %v463_v53  ;;  %v522_v45 = vadd.f32 %v515_v34, %v464_v38  ;;  %v523_v28 = vadd.f32 %v516_v35, %v465_v43  ;;  %v524_v37 = vadd.f32 %v517_v36, %v466_v63  ;;  %v706_v3 = vpop.permute.xlu1 %705 }
  0x9f   : > { %v628_v25 = vmul.f32 %v1576_v41, %v590_v30  ;;  %v525_v44 = vadd.f32 %v518_v18, %v467_v56  ;;  %v1577_v49 = vrot.slane %v1240_v61, %v1160_v15  ;;  %v1578_v47 = vrot.slane %v1240_v61, %v1162_v16 }
  0xa0   : > { %v1579_v50 = vrot.slane %v1240_v61, %v1164_v17  ;;  %v1580_v33 = vrot.slane %v1240_v61, %v1168_v20  ;;  %v1581_v10 = vrot.slane %v1240_v61, %v1170_v21  ;;  %v1582_v52 = vrot.slane %v1240_v61, %v1172_v22 }
  0xa1   : > { %v629_v46 = vmul.f32 %v1577_v49, %v590_v30  ;;  %v630_v54 = vmul.f32 %v1578_v47, %v590_v30  ;;  %v577_v9 = vadd.f32 %v570_v24, %v519_v39  ;;  %v578_v11 = vadd.f32 %v571_v57, %v520_v40 }
  0xa2   : > { %v631_v26 = vmul.f32 %v1579_v50, %v590_v30  ;;  %v632_v51 = vmul.f32 %v1580_v33, %v590_v30  ;;  %v633_v7 = vmul.f32 %v1581_v10, %v590_v30  ;;  %v634_v8 = vmul.f32 %v1582_v52, %v590_v30 }
  0xa3   : > { %v579_v13 = vadd.f32 %v572_v32, %v521_v27  ;;  %v580_v53 = vadd.f32 %v573_v58, %v522_v45  ;;  %v581_v55 = vadd.f32 %v574_v59, %v523_v28  ;;  %v582_v38 = vadd.f32 %v575_v5, %v524_v37 }
  0xa4   : > { %v583_v43 = vadd.f32 %v576_v60, %v525_v44  ;;  %v635_v63 = vadd.f32 %v628_v25, %v577_v9  ;;  %v1583_v56 = vrot.slane %v1242_v62, %v1158_v14  ;;  %v636_v0 = vadd.f32 %v629_v46, %v578_v11 }
  0xa5   : > { %v637_v1 = vadd.f32 %v630_v54, %v579_v13  ;;  %v638_v29 = vadd.f32 %v631_v26, %v580_v53  ;;  %v639_v2 = vadd.f32 %v632_v51, %v581_v55  ;;  %v640_v31 = vadd.f32 %v633_v7, %v582_v38 }
  0xa6   : > { %v686_v6 = vmul.f32 %v1583_v56, %v648_v48  ;;  %v641_v61 = vadd.f32 %v634_v8, %v583_v43  ;;  %v1584_v24 = vrot.slane %v1242_v62, %v1160_v15  ;;  %v1585_v32 = vrot.slane %v1242_v62, %v1162_v16 }
  0xa7   : > { %v1586_v59 = vrot.slane %v1242_v62, %v1164_v17  ;;  %v1587_v60 = vrot.slane %v1242_v62, %v1168_v20  ;;  %v1588_v4 = vrot.slane %v1242_v62, %v1170_v21  ;;  %v1589_v42 = vrot.slane %v1242_v62, %v1172_v22 }
  0xa8   : > { %v687_v57 = vmul.f32 %v1584_v24, %v648_v48  ;;  %v688_v58 = vmul.f32 %v1585_v32, %v648_v48  ;;  %v693_v23 = vadd.f32 %v686_v6, %v635_v63  ;;  %v1590_v18 = vrot.slane %v1268_v12, %v1158_v14 }
  0xa9   : > { %v689_v5 = vmul.f32 %v1586_v59, %v648_v48  ;;  %v690_v30 = vmul.f32 %v1587_v60, %v648_v48  ;;  %v691_v34 = vmul.f32 %v1588_v4, %v648_v48  ;;  %v692_v35 = vmul.f32 %v1589_v42, %v648_v48 }
  0xaa   : > { %v694_v36 = vadd.f32 %v687_v57, %v636_v0  ;;  %v695_v19 = vadd.f32 %v688_v58, %v637_v1  ;;  %v744_v39 = vmul.f32 %v1590_v18, %v706_v3  ;;  %v1591_v45 = vrot.slane %v1268_v12, %v1160_v15 }
  0xab   : > { %v696_v40 = vadd.f32 %v689_v5, %v638_v29  ;;  %v697_v41 = vadd.f32 %v690_v30, %v639_v2  ;;  %v698_v25 = vadd.f32 %v691_v34, %v640_v31  ;;  %v699_v27 = vadd.f32 %v692_v35, %v641_v61 }
  0xac   : > { %v745_v28 = vmul.f32 %v1591_v45, %v706_v3  ;;  %v1592_v37 = vrot.slane %v1268_v12, %v1162_v16  ;;  %v1593_v44 = vrot.slane %v1268_v12, %v1164_v17  ;;  %v1594_v14 = vrot.slane %v1268_v12, %v1168_v20 }
  0xad   : > { %v1595_v47 = vrot.slane %v1268_v12, %v1170_v21  ;;  %v1596_v15 = vrot.slane %v1268_v12, %v1172_v22  ;;  %v1495_v26 = vadd.f32 %v744_v39, %v693_v23 }
  0xae   : > { %v746_v62 = vmul.f32 %v1592_v37, %v706_v3  ;;  %v747_v49 = vmul.f32 %v1593_v44, %v706_v3  ;;  %v748_v46 = vmul.f32 %v1594_v14, %v706_v3  ;;  %v1497_v16 = vadd.f32 %v745_v28, %v694_v36 }
  0xaf   : > { %v749_v54 = vmul.f32 %v1595_v47, %v706_v3  ;;  %v750_v50 = vmul.f32 %v1596_v15, %v706_v3  ;;  %v758_v21 = vmul.f32 %v1495_v26, %v1495_v26 }
  0xb0   : > { %v1499_v48 = vadd.f32 %v746_v62, %v695_v19  ;;  %v1501_v17 = vadd.f32 %v747_v49, %v696_v40  ;;  %v1503_v33 = vadd.f32 %v748_v46, %v697_v41  ;;  %v759_v22 = vmul.f32 %v1497_v16, %v1497_v16 }
  0xb1   : > { %v1505_v20 = vadd.f32 %v749_v54, %v698_v25  ;;  %v1507_v51 = vadd.f32 %v750_v50, %v699_v27  ;;  %v765_v9 = vmul.f32 %v758_v21, %v1495_v26 }
  0xb2   : > { %v760_v12 = vmul.f32 %v1499_v48, %v1499_v48  ;;  %v761_v10 = vmul.f32 %v1501_v17, %v1501_v17  ;;  %v762_v7 = vmul.f32 %v1503_v33, %v1503_v33  ;;  %v766_v11 = vmul.f32 %v759_v22, %v1497_v16 }
  0xb3   : > { %v763_v52 = vmul.f32 %v1505_v20, %v1505_v20  ;;  %v764_v8 = vmul.f32 %v1507_v51, %v1507_v51  ;;  %v772_v63 = vmul.f32 0.044715, %v765_v9 }
  0xb4   : > { %v767_v13 = vmul.f32 %v760_v12, %v1499_v48  ;;  %v768_v53 = vmul.f32 %v761_v10, %v1501_v17  ;;  %v769_v55 = vmul.f32 %v762_v7, %v1503_v33  ;;  %v773_v56 = vmul.f32 0.044715, %v766_v11 }
  0xb5   : > { %v770_v38 = vmul.f32 %v763_v52, %v1505_v20  ;;  %v771_v43 = vmul.f32 %v764_v8, %v1507_v51  ;;  %v779_v3 = vadd.f32 %v772_v63, %v1495_v26 }
  0xb6   : > { %v774_v6 = vmul.f32 0.044715, %v767_v13  ;;  %v775_v0 = vmul.f32 0.044715, %v768_v53  ;;  %v776_v1 = vmul.f32 0.044715, %v769_v55  ;;  %v780_v31 = vadd.f32 %v773_v56, %v1497_v16 }
  0xb7   : > { %v777_v29 = vmul.f32 0.044715, %v770_v38  ;;  %v778_v2 = vmul.f32 0.044715, %v771_v43  ;;  %v786_v59 = vmul.f32 0.7978846, %v779_v3 }
  0xb8   : > { %v781_v61 = vadd.f32 %v774_v6, %v1499_v48  ;;  %v782_v24 = vadd.f32 %v775_v0, %v1501_v17  ;;  %v783_v57 = vadd.f32 %v776_v1, %v1503_v33  ;;  %v787_v5 = vmul.f32 0.7978846, %v780_v31 }
  0xb9   : > { %v784_v32 = vadd.f32 %v777_v29, %v1505_v20  ;;  %v785_v58 = vadd.f32 %v778_v2, %v1507_v51  ;;  %1018 = vtanh.f32 %v786_v59 }
  0xba   : > { %v788_v60 = vmul.f32 0.7978846, %v781_v61  ;;  %v789_v30 = vmul.f32 0.7978846, %v782_v24  ;;  %v790_v4 = vmul.f32 0.7978846, %v783_v57  ;;  %1020 = vtanh.f32 %v787_v5 }
  0xbb   : > { %v791_v34 = vmul.f32 0.7978846, %v784_v32  ;;  %v792_v42 = vmul.f32 0.7978846, %v785_v58 }
  0xbc   : > { %1022 = vtanh.f32 %v788_v60 }
  0xbd   : > { %1024 = vtanh.f32 %v789_v30 }
  0xbe   : > { %1026 = vtanh.f32 %v790_v4 }
  0xbf   : > { %1028 = vtanh.f32 %v791_v34 }
  0xc0   : > { %1030 = vtanh.f32 %v792_v42 }
  0xc3   : > { %v1019_v35 = vpop.eup %1018 }
  0xc4   : > { %v1021_v23 = vpop.eup %1020  ;;  %v800_v36 = vadd.f32 1.0, %v1019_v35 }
  0xc5   : > { %v801_v18 = vadd.f32 1.0, %v1021_v23 }
  0xc6   : > { %v1023_v19 = vpop.eup %1022  ;;  %v807_v41 = vmul.f32 0.5, %v800_v36 }
  0xc7   : > { %v1025_v39 = vpop.eup %1024  ;;  %v802_v40 = vadd.f32 1.0, %v1023_v19  ;;  %v808_v45 = vmul.f32 0.5, %v801_v18 }
  0xc8   : > { %v1027_v25 = vpop.eup %1026  ;;  %v803_v27 = vadd.f32 1.0, %v1025_v39  ;;  %v814_v44 = vmul.f32 %v807_v41, %v1495_v26 }
  0xc9   : > { %v1029_v28 = vpop.eup %1028  ;;  %v804_v37 = vadd.f32 1.0, %v1027_v25  ;;  %v809_v62 = vmul.f32 0.5, %v802_v40  ;;  %v815_v47 = vmul.f32 %v808_v45, %v1497_v16 }
  0xca   : > { %v1031_v49 = vpop.eup %1030  ;;  %v805_v14 = vadd.f32 1.0, %v1029_v28  ;;  %v810_v46 = vmul.f32 0.5, %v803_v27  ;;  %821 = vst [vmem:[%s271_s12] sm:$0xff] %v814_v44 }
  0xcb   : > { %v806_v54 = vadd.f32 1.0, %v1031_v49  ;;  %v811_v15 = vmul.f32 0.5, %v804_v37  ;;  %v816_v50 = vmul.f32 %v809_v62, %v1499_v48  ;;  %822 = vst [vmem:[%s271_s12 + $0x8] sm:$0xff] %v815_v47 }
  0xcc   : > { %v812_v21 = vmul.f32 0.5, %v805_v14  ;;  %v817_v22 = vmul.f32 %v810_v46, %v1501_v17 }
  0xcd   : > { %v813_v12 = vmul.f32 0.5, %v806_v54  ;;  %v818_v10 = vmul.f32 %v811_v15, %v1503_v33  ;;  %823 = vst [vmem:[%s271_s12 + $0x10] sm:$0xff] %v816_v50 }
  0xce   : > { %v819_v26 = vmul.f32 %v812_v21, %v1505_v20  ;;  %824 = vst [vmem:[%s271_s12 + $0x18] sm:$0xff] %v817_v22 }
  0xcf   : > { %v820_v7 = vmul.f32 %v813_v12, %v1507_v51  ;;  %825 = vst [vmem:[%s271_s12 + $0x20] sm:$0xff] %v818_v10 }
  0xd0   : > { %826 = vst [vmem:[%s271_s12 + $0x28] sm:$0xff] %v819_v26 }
  0xd1   : > { %827 = vst [vmem:[%s271_s12 + $0x30] sm:$0xff] %v820_v7 }
  0xd2 PF: > { %s14_s19 = sadd.s32 1, %s1070_s19   ;;  %s1597_s15 = smov %s1062_s17 }
  0xd3   : > { %p11_p7 = scmp.ge.s32.totalorder %s14_s19, 10   ;;  %s1598_s16 = smov %s1066_s18 }
  0xd4   : > { %s1599_s17 = smov %s1602_s20  ;;  %s1600_s18 = smov %s1606_s21 }
  0xd5   :  { %13 = sbr.rel (!%p11_p7) target bundleno = 3 (0x3), region = 76 }

// kernel: _lambda_.19
= control target key start
LH: loop header
LB: loop body
LE: loop exit
PB: predicated region body
PF: predicated region fallthrough
CT: control target
= control target key end

     0   :  { %s2308_s29 = smov 0   ;;  %s2310_s30 = smov 0   ;;  %s3095_s0 = inlined_call_operand.vmem [shape: f32[2,8,3584], index: 0, kind: input, shape index: {}]   ;;  %s3096_s1 = inlined_call_operand.vmem [shape: f32[2,8,3584], index: 1, kind: input, shape index: {}]   ;;  %s3097_s2 = inlined_call_operand.vmem [shape: f32[8,8], index: 2, kind: input, shape index: {}]   ;;  %s3098_s3 = inlined_call_operand.vmem [shape: f32[8,1], index: 3, kind: input, shape index: {}]   ;;  %s3099_s4 = inlined_call_operand.vmem [shape: bf16[128,8], index: 4, kind: input, shape index: {}]   ;;  %s3100_s5 = inlined_call_operand.vmem [shape: f32[128,1], index: 5, kind: input, shape index: {}]   ;;  %s3101_s6 = inlined_call_operand.vmem [shape: bf16[1,128], index: 6, kind: input, shape index: {}]   ;;  %s3102_s7 = inlined_call_operand.<no memory space> [shape: f32[1,1], index: 7, kind: input, shape index: {}]   ;;  %s3103_s8 = inlined_call_operand.vmem [shape: f32[2,1,3584], index: 8, kind: output, shape index: {}]  }
   0x1   :  { %v13_v0 = vstv %s3102_s7  ;;  %s2312_s9 = smov 0   ;;  %s2314_s10 = smov 0  }
   0x2   :  { %14 = vst [vmem:[#allocation2] sm:$0x1] %v13_v0  ;;  %s2316_s11 = smov 0  }
   0x3 LB: > { %s29_s7 = sadd.s32 1, %s2239_s9  ;;  %s32_s12 = sadd.s32 1, %s2243_s10  ;;  %s2247_s11 = sphi %s2316_s11, %s20_s11   ;;  %s2243_s10 = sphi %s2314_s10, %s3140_s10   ;;  %s2239_s9 = sphi %s2312_s9, %s3139_s9   ;;  %s2235_s30 = sphi %s2310_s30, %s3138_s30   ;;  %s2231_s29 = sphi %s2308_s29, %s3137_s29  }
   0x4   : > { %p30_p0 = scmp.ge.s32.totalorder %s29_s7, 4  ;;  %p2018_p1 = scmp.ge.s32.totalorder %s2247_s11, 1 }
   0x5   : > { %p302_p2 = scmp.lt.s32.totalorder %s2247_s11, 9 }
   0x6   : > { %s3142_s7 = smov (%p30_p0, %s29_s7), 0  ;;  %s3144_s12 = smov (!%p30_p0, %s32_s12), %s2243_s10 }
   0x7   : > { %p303_p3 = pnand %p2018_p1, %p302_p2  ;;  %p34_p4 = scmp.ge.s32.totalorder %s3144_s12, 2 }
   0x8   : > { %v402_v1 = vld [vmem:[%s3097_s2] sm:$0xff] (!%p303_p3)  ;;  %v2249_v3 = vmov (!%p303_p3), 1   ;;  %v3105_v4 = vmov (!%p303_p3), 0   ;;  %v2251_v5 = vmov (!%p303_p3), 2   ;;  %v2252_v6 = vmov (!%p303_p3), 3   ;;  %p353_p5 = scmp.lt.s32.totalorder (!%p303_p3), %s2235_s30, 1 }
   0x9   : > { %s3146_s12 = smov (%p34_p4, %s3144_s12), 0  ;;  %306 = sbr.rel (%p303_p3) target bundleno = 734 (0x2de), region = 52 }
   0xa   : > { %v389_v2 = vld [vmem:[%s3098_s3] sm:$0xff] (!%p303_p3)  ;;  %2192 = vset.pattern.permute.xlu1 (!%p303_p3), %v2249_v3  ;;  %2191 = vset.pattern.permute.xlu0 (!%p303_p3), %v3105_v4  ;;  %v2253_v7 = vmov (!%p303_p3), 4   ;;  %v2254_v8 = vmov (!%p303_p3), 6   ;;  %v2255_v9 = vmov (!%p303_p3), 5   ;;  %v2256_v10 = vmov (!%p303_p3), 7   ;;  %s352_s17 = smul.u32 (!%p303_p3), 7, %s2231_s29 }
   0xb   : > { %466 = vperm.xlu1 (!%p303_p3), %2192, %v402_v1   ;;  %392 = vperm.xlu0 (!%p303_p3), %2191, %v389_v2   ;;  %v890_v11 = vld [vmem:[%s3100_s5] sm:$0xff] (!%p303_p3)  ;;  %v891_v12 = vld [vmem:[%s3100_s5 + $0x8] sm:$0xff] (!%p303_p3)  ;;  %v892_v13 = vld [vmem:[%s3100_s5 + $0x10] sm:$0xff] (!%p303_p3)  ;;  %v3104_v16 = vlaneseq (!%p303_p3)  ;;  %vm1051_vm0 = vcmask (!%p303_p3), 1043456   ;;  %vm1026_vm1 = vcmask (!%p303_p3), 64512   ;;  %vm2258_vm2 = vmmov (!%p303_p3), 0  }
   0xc   : > { %1105 = vmatprep.mubr.bf16.mxu0 (!%p303_p3), %v3105_v4  ;;  %1165 = vmatprep.mubr.bf16.mxu1 (!%p303_p3), %v3105_v4  ;;  %p355_p6 = scmp.lt.s32.totalorder (!%p303_p3), %s352_s17, 27  ;;  %v893_v14 = vld [vmem:[%s3100_s5 + $0x18] sm:$0xff] (!%p303_p3)  ;;  %v894_v15 = vld [vmem:[%s3100_s5 + $0x20] sm:$0xff] (!%p303_p3)  ;;  %v895_v17 = vld [vmem:[%s3100_s5 + $0x28] sm:$0xff] (!%p303_p3) }
   0xd   : > { %v896_v18 = vld [vmem:[%s3100_s5 + $0x30] sm:$0xff] (!%p303_p3)  ;;  %v2388_v19 = vshrl.u32 (!%p303_p3), %v3104_v16, 7  ;;  %v897_v22 = vld [vmem:[%s3100_s5 + $0x38] sm:$0xff] (!%p303_p3)  ;;  %v898_v23 = vld [vmem:[%s3100_s5 + $0x40] sm:$0xff] (!%p303_p3) }
   0xe   : > { %v899_v30 = vld [vmem:[%s3100_s5 + $0x48] sm:$0xff] (!%p303_p3)  ;;  %v900_v31 = vld [vmem:[%s3100_s5 + $0x50] sm:$0xff] (!%p303_p3)  ;;  %v901_v57 = vld [vmem:[%s3100_s5 + $0x58] sm:$0xff] (!%p303_p3) }
   0xf   : > { %2193 = vset.pattern.permute.xlu1 (!%p303_p3), %v2251_v5  ;;  %408 = vperm.xlu0 (!%p303_p3), %2191, %v402_v1   ;;  %v2401_v26 = vsub.s32 (!%p303_p3), 0, %v2388_v19  ;;  %v2404_v27 = vsub.s32 (!%p303_p3), 1, %v2388_v19  ;;  %v2407_v28 = vsub.s32 (!%p303_p3), 2, %v2388_v19  ;;  %v2418_v32 = vsub.s32 (!%p303_p3), 3, %v2388_v19  ;;  %v902_v58 = vld [vmem:[%s3100_s5 + $0x60] sm:$0xff] (!%p303_p3)  ;;  %v903_v5 = vld [vmem:[%s3100_s5 + $0x68] sm:$0xff] (!%p303_p3) }
  0x10   : > { %524 = vperm.xlu1 %2193, %v402_v1   ;;  %s3148_s30 = smov (!%p353_p5, %s2235_s30), 1  ;;  %s3150_s17 = smov (!%p355_p6, %s352_s17), 27  ;;  %v2421_v33 = vsub.s32 4, %v2388_v19  ;;  %v2424_v34 = vsub.s32 5, %v2388_v19  ;;  %v2427_v35 = vsub.s32 6, %v2388_v19 }
  0x11   : > { %s2139_s20 = smul.u32 28, %s3148_s30 }
  0x13   : > { %2194 = vset.pattern.permute.xlu0 %v2252_v6  ;;  %s2365_s25 = sadd.s32 %s2139_s20, %s3150_s17 }
  0x14   : > { %2195 = vset.pattern.permute.xlu1 %v2253_v7  ;;  %582 = vperm.xlu0 %2194, %v402_v1   ;;  %s2019_s30 = sshll.u32 %s2365_s25, 3  ;;  %s379_s28 = scalar_lea.vmem %s3103_s8, %s2365_s25 }
  0x15   : > { %640 = vperm.xlu1 %2195, %v402_v1   ;;  %s2385_s19 = scalar_lea.vmem %s3095_s0, %s2019_s30  ;;  %s2551_s24 = scalar_lea.vmem %s3096_s1, %s2019_s30 }
  0x16   : > { %v2021_v20 = vld [vmem:[%s2385_s19 + $0x1] ss:$8 sm:$0xf]  ;;  %v403_v24 = vld [vmem:[%s2385_s19] ss:$8 sm:$0xf] }
  0x17   : > { %v2022_v21 = vld [vmem:[%s2385_s19 + $0x1] ss:$8 sm:$0xf0]  ;;  %v404_v25 = vld [vmem:[%s2385_s19] ss:$8 sm:$0xf0] }
  0x18   : > { %2197 = vset.pattern.permute.xlu0 %v2254_v8  ;;  %v2409_v29 = vor.u32 %v2022_v21, %v2021_v20  ;;  %v2429_v36 = vor.u32 %v404_v25, %v403_v24  ;;  %v2023_v37 = vld [vmem:[%s2385_s19 + $0x2] ss:$8 sm:$0xf]  ;;  %v2027_v39 = vld [vmem:[%s2385_s19 + $0x4] ss:$8 sm:$0xf] }
  0x19   : > { %2196 = vset.pattern.permute.xlu1 %v2255_v9  ;;  %756 = vperm.xlu0 %2197, %v402_v1   ;;  %v2024_v38 = vld [vmem:[%s2385_s19 + $0x2] ss:$8 sm:$0xf0]  ;;  %v2028_v40 = vld [vmem:[%s2385_s19 + $0x4] ss:$8 sm:$0xf0] }
  0x1a   : > { %698 = vperm.xlu1 %2196, %v402_v1   ;;  %v473_v41 = vrot.slane %v2409_v29, %v2401_v26  ;;  %v477_v42 = vrot.slane %v2409_v29, %v2404_v27  ;;  %v2025_v43 = vld [vmem:[%s2385_s19 + $0x3] ss:$8 sm:$0xf]  ;;  %v481_v45 = vrot.slane %v2409_v29, %v2407_v28  ;;  %v485_v46 = vrot.slane %v2409_v29, %v2418_v32  ;;  %v2029_v49 = vld [vmem:[%s2385_s19 + $0x5] ss:$8 sm:$0xf] }
  0x1b   : > { %v2026_v44 = vld [vmem:[%s2385_s19 + $0x3] ss:$8 sm:$0xf0]  ;;  %v489_v47 = vrot.slane %v2409_v29, %v2421_v33  ;;  %v2447_v48 = vor.u32 %v2024_v38, %v2023_v37  ;;  %v2030_v50 = vld [vmem:[%s2385_s19 + $0x5] ss:$8 sm:$0xf0]  ;;  %v493_v52 = vrot.slane %v2409_v29, %v2424_v34  ;;  %v497_v53 = vrot.slane %v2409_v29, %v2427_v35 }
  0x1c   : > { %v2031_v51 = vld [vmem:[%s2385_s19 + $0x6] ss:$8 sm:$0xf]  ;;  %v415_v54 = vrot.slane %v2429_v36, %v2401_v26  ;;  %v419_v55 = vrot.slane %v2429_v36, %v2404_v27  ;;  %v423_v59 = vrot.slane %v2429_v36, %v2407_v28  ;;  %v427_v60 = vrot.slane %v2429_v36, %v2418_v32  ;;  %v2033_v62 = vld [vmem:[%s2385_s19 + $0x7] ss:$8 sm:$0xf] }
  0x1d   : > { %2200 = vset.pattern.permute.xlu0 %v3105_v4  ;;  %v2032_v56 = vld [vmem:[%s2385_s19 + $0x6] ss:$8 sm:$0xf0]  ;;  %v2471_v61 = vor.u32 %v2028_v40, %v2027_v39  ;;  %v2034_v63 = vld [vmem:[%s2385_s19 + $0x7] ss:$8 sm:$0xf0]  ;;  %v431_v0 = vrot.slane %v2429_v36, %v2421_v33  ;;  %v439_v2 = vrot.slane %v2429_v36, %v2427_v35  ;;  %v2481_v3 = vor.u32 %v2026_v44, %v2025_v43 }
  0x1e   : > { %2198 = vset.pattern.permute.xlu1 %v2256_v10  ;;  %913 = vperm.xlu0 %2200, %v891_v12   ;;  %v539_v6 = vrot.slane %v2447_v48, %v2407_v28  ;;  %v543_v7 = vrot.slane %v2447_v48, %v2418_v32  ;;  %v547_v8 = vrot.slane %v2447_v48, %v2421_v33  ;;  %v904_v43 = vld [vmem:[%s3100_s5 + $0x70] sm:$0xff]  ;;  %v905_v44 = vld [vmem:[%s3100_s5 + $0x78] sm:$0xff]  ;;  %v1678_v40 = vld [vmem:[#allocation2] sm:$0x1] }
  0x1f   : > { %814 = vperm.xlu1 %2198, %v402_v1   ;;  %v435_v1 = vrot.slane %v2429_v36, %v2424_v34  ;;  %v551_v9 = vrot.slane %v2447_v48, %v2424_v34  ;;  %v555_v10 = vrot.slane %v2447_v48, %v2427_v35  ;;  %v2498_v12 = vor.u32 %v2032_v56, %v2031_v51  ;;  %v388_v51 = vld [vmem:[%s2551_s24 + $0x30] sm:$0xff] }
  0x20   : > { %v671_v20 = vrot.slane %v2471_v61, %v2427_v35  ;;  %v597_v21 = vrot.slane %v2481_v3, %v2407_v28  ;;  %v609_v24 = vrot.slane %v2481_v3, %v2424_v34 }
  0x22   : > { %928 = vperm.xlu0 %2200, %v894_v15   ;;  %v667_v15 = vrot.slane %v2471_v61, %v2424_v34 }
  0x23   : > { %2199 = vset.pattern.permute.xlu1 %v3105_v4 }
  0x24   : > { %908 = vperm.xlu1 %2199, %v890_v11   ;;  %v2496_v11 = vor.u32 %v2030_v50, %v2029_v49  ;;  %v385_v50 = vld [vmem:[%s2551_s24 + $0x18] sm:$0xff] }
  0x26   : > { %938 = vperm.xlu0 %2200, %v896_v18  }
  0x28   : > { %918 = vperm.xlu1 %2199, %v892_v13   ;;  %v2500_v13 = vor.u32 %v2034_v63, %v2033_v62 }
  0x2a   : > { %948 = vperm.xlu0 %2200, %v898_v23   ;;  %v605_v23 = vrot.slane %v2481_v3, %v2421_v33 }
  0x2c   : > { %923 = vperm.xlu1 %2199, %v893_v14   ;;  %v659_v14 = vrot.slane %v2471_v61, %v2418_v32 }
  0x2e   : > { %958 = vperm.xlu0 %2200, %v900_v31  }
  0x30   : > { %933 = vperm.xlu1 %2199, %v895_v17   ;;  %v535_v17 = vrot.slane %v2447_v48, %v2404_v27 }
  0x32   : > { %968 = vperm.xlu0 %2200, %v902_v58   ;;  %v386_v58 = vld [vmem:[%s2551_s24 + $0x20] sm:$0xff] }
  0x34   : > { %943 = vperm.xlu1 %2199, %v897_v22   ;;  %v601_v22 = vrot.slane %v2481_v3, %v2418_v32 }
  0x36   : > { %978 = vperm.xlu0 %2200, %v904_v43   ;;  %v384_v43 = vld [vmem:[%s2551_s24 + $0x10] sm:$0xff] }
  0x38   : > { %953 = vperm.xlu1 %2199, %v899_v30   ;;  %v593_v30 = vrot.slane %v2481_v3, %v2404_v27 }
  0x3a   : > { %1681 = vperm.xlu0 %2200, %v1678_v40  }
  0x3c   : > { %963 = vperm.xlu1 %2199, %v901_v57  }
  0x40   : > { %973 = vperm.xlu1 %2199, %v903_v5   ;;  %v382_v5 = vld [vmem:[%s2551_s24] sm:$0xff] }
  0x44   : > { %983 = vperm.xlu1 %2199, %v905_v44   ;;  %v387_v44 = vld [vmem:[%s2551_s24 + $0x28] sm:$0xff] }
  0x8a   : > { %v467_v16 = vpop.permute.xlu1 %466  ;;  %v393_v4 = vpop.permute.xlu0 %392 }
  0x8b   : > { %v2591_v39 = vmul.f32 %v473_v41, %v467_v16  ;;  %v506_v38 = vmul.f32 %v477_v42, %v467_v16  ;;  %v2604_v63 = vmul.f32 %v481_v45, %v467_v16  ;;  %v508_v41 = vmul.f32 %v485_v46, %v467_v16  ;;  %v383_v45 = vld [vmem:[%s2551_s24 + $0x8] sm:$0xff] }
  0x8c   : > { %v2612_v42 = vmul.f32 %v489_v47, %v467_v16  ;;  %v510_v62 = vmul.f32 %v493_v52, %v467_v16  ;;  %v511_v56 = vmul.f32 %v497_v53, %v467_v16  ;;  %v395_v37 = vadd.f32 %v393_v4, %v382_v5 }
  0x8d   : > { %v397_v57 = vadd.f32 %v393_v4, %v384_v43  ;;  %v398_v49 = vadd.f32 %v393_v4, %v385_v50  ;;  %v400_v18 = vadd.f32 %v393_v4, %v387_v44  ;;  %v401_v53 = vadd.f32 %v393_v4, %v388_v51 }
  0x8e   : > { %v409_v46 = vpop.permute.xlu0 %408  ;;  %v399_v43 = vadd.f32 %v393_v4, %v386_v58 }
  0x8f   : > { %v448_v47 = vmul.f32 %v419_v55, %v409_v46  ;;  %v449_v52 = vmul.f32 %v423_v59, %v409_v46  ;;  %v450_v16 = vmul.f32 %v427_v60, %v409_v46  ;;  %v525_v29 = vpop.permute.xlu1 %524  ;;  %v451_v50 = vmul.f32 %v431_v0, %v409_v46 }
  0x90   : > { %v452_v5 = vmul.f32 %v435_v1, %v409_v46  ;;  %v453_v55 = vmul.f32 %v439_v2, %v409_v46  ;;  %v396_v59 = vadd.f32 %v393_v4, %v383_v45  ;;  %v447_v60 = vmul.f32 %v415_v54, %v409_v46 }
  0x91   : > { %v457_v40 = vadd.f32 %v450_v16, %v398_v49  ;;  %v456_v51 = vadd.f32 %v449_v52, %v397_v57  ;;  %v565_v0 = vmul.f32 %v539_v6, %v525_v29  ;;  %v566_v1 = vmul.f32 %v543_v7, %v525_v29 }
  0x92   : > { %v459_v44 = vadd.f32 %v452_v5, %v400_v18  ;;  %v460_v31 = vadd.f32 %v453_v55, %v401_v53  ;;  %v2653_v4 = vmul.f32 %v547_v8, %v525_v29  ;;  %v455_v54 = vadd.f32 %v448_v47, %v396_v59 }
  0x93   : > { %v515_v25 = vadd.f32 %v508_v41, %v457_v40  ;;  %v583_v36 = vpop.permute.xlu0 %582  ;;  %v458_v2 = vadd.f32 %v451_v50, %v399_v43  ;;  %v568_v57 = vmul.f32 %v551_v9, %v525_v29  ;;  %v569_v7 = vmul.f32 %v555_v10, %v525_v29 }
  0x94   : > { %v517_v49 = vadd.f32 %v510_v62, %v459_v44  ;;  %v518_v18 = vadd.f32 %v511_v56, %v460_v31  ;;  %v2658_v6 = vpop.permute.xlu1 %640  ;;  %v624_v8 = vmul.f32 %v601_v22, %v583_v36  ;;  %v564_v62 = vmul.f32 %v535_v17, %v525_v29 }
  0x95   : > { %v573_v58 = vadd.f32 %v566_v1, %v515_v25  ;;  %v682_v9 = vmul.f32 %v659_v14, %v2658_v6  ;;  %v684_v31 = vmul.f32 %v667_v15, %v2658_v6  ;;  %v2681_v10 = vmul.f32 %v671_v20, %v2658_v6 }
  0x96   : > { %v623_v17 = vmul.f32 %v597_v21, %v583_v36  ;;  %v575_v22 = vadd.f32 %v568_v57, %v517_v49  ;;  %v626_v14 = vmul.f32 %v609_v24, %v583_v36  ;;  %v513_v25 = vadd.f32 %v506_v38, %v455_v54 }
  0x97   : > { %v622_v15 = vmul.f32 %v593_v30, %v583_v36  ;;  %v576_v56 = vadd.f32 %v569_v7, %v518_v18  ;;  %v625_v20 = vmul.f32 %v605_v23, %v583_v36  ;;  %v3107_v41 = vrot.slane %v2481_v3, %v2427_v35 }
  0x98   : > { %v454_v21 = vadd.f32 %v447_v60, %v395_v37  ;;  %v2698_v47 = vpop.permute.xlu0 %756  ;;  %v571_v52 = vadd.f32 %v564_v62, %v513_v25  ;;  %v3108_v24 = vrot.slane %v2471_v61, %v2404_v27  ;;  %v3109_v30 = vrot.slane %v2447_v48, %v2401_v26 }
  0x99   : > { %v627_v45 = vmul.f32 %v3107_v41, %v583_v36  ;;  %v699_v46 = vpop.permute.xlu1 %698  ;;  %v631_v53 = vadd.f32 %v624_v8, %v573_v58  ;;  %v3110_v50 = vrot.slane %v2481_v3, %v2401_v26  ;;  %v3111_v5 = vrot.slane %v2471_v61, %v2401_v26 }
  0x9a   : > { %v680_v38 = vmul.f32 %v3108_v24, %v2658_v6  ;;  %v563_v16 = vmul.f32 %v3109_v30, %v525_v29  ;;  %v512_v23 = vadd.f32 %v2591_v39, %v454_v21  ;;  %v3112_v59 = vrot.slane %v2496_v11, %v2418_v32 }
  0x9b   : > { %v621_v37 = vmul.f32 %v3110_v50, %v583_v36  ;;  %v679_v55 = vmul.f32 %v3111_v5, %v2658_v6  ;;  %v629_v60 = vadd.f32 %v622_v15, %v571_v52  ;;  %v3113_v48 = vrot.slane %v2496_v11, %v2404_v27 }
  0x9c   : > { %v740_v43 = vmul.f32 %v3112_v59, %v699_v46  ;;  %v689_v40 = vadd.f32 %v682_v9, %v631_v53  ;;  %v633_v39 = vadd.f32 %v626_v14, %v575_v22  ;;  %v570_v44 = vadd.f32 %v563_v16, %v512_v23 }
  0x9d   : > { %v738_v29 = vmul.f32 %v3113_v48, %v699_v46  ;;  %v3114_v3 = vrot.slane %v2498_v12, %v2418_v32  ;;  %v3115_v36 = vrot.slane %v2496_v11, %v2424_v34  ;;  %v514_v49 = vadd.f32 %v2604_v63, %v456_v51 }
  0x9e   : > { %v687_v18 = vadd.f32 %v680_v38, %v629_v60  ;;  %v3116_v57 = vrot.slane %v2498_v12, %v2404_v27  ;;  %v747_v58 = vadd.f32 %v740_v43, %v689_v40  ;;  %v691_v8 = vadd.f32 %v684_v31, %v633_v39  ;;  %v815_v62 = vpop.permute.xlu1 %814 }
  0x9f   : > { %v798_v1 = vmul.f32 %v3114_v3, %v2698_v47  ;;  %v742_v54 = vmul.f32 %v3115_v36, %v699_v46  ;;  %v628_v9 = vadd.f32 %v621_v37, %v570_v44  ;;  %v3117_v22 = vrot.slane %v2496_v11, %v2401_v26 }
  0xa0   : > { %v796_v7 = vmul.f32 %v3116_v57, %v2698_v47  ;;  %v3118_v25 = vrot.slane %v2498_v12, %v2424_v34  ;;  %v572_v63 = vadd.f32 %v565_v0, %v514_v49  ;;  %v745_v51 = vadd.f32 %v738_v29, %v687_v18 }
  0xa1   : > { %v737_v14 = vmul.f32 %v3117_v22, %v699_v46  ;;  %v3119_v41 = vrot.slane %v2500_v13, %v2404_v27  ;;  %v3120_v31 = vrot.slane %v2498_v12, %v2401_v26  ;;  %v3121_v24 = vrot.slane %v2471_v61, %v2407_v28 }
  0xa2   : > { %v800_v15 = vmul.f32 %v3118_v25, %v2698_v47  ;;  %v686_v30 = vadd.f32 %v679_v55, %v628_v9  ;;  %v805_v16 = vadd.f32 %v798_v1, %v747_v58  ;;  %v3122_v0 = vrot.slane %v2500_v13, %v2418_v32 }
  0xa3   : > { %v854_v21 = vmul.f32 %v3119_v41, %v815_v62  ;;  %v795_v52 = vmul.f32 %v3120_v31, %v2698_v47  ;;  %v681_v38 = vmul.f32 %v3121_v24, %v2658_v6  ;;  %v749_v23 = vadd.f32 %v742_v54, %v691_v8 }
  0xa4   : > { %v856_v53 = vmul.f32 %v3122_v0, %v815_v62  ;;  %v803_v50 = vadd.f32 %v796_v7, %v745_v51  ;;  %v630_v27 = vadd.f32 %v623_v17, %v572_v63  ;;  %v3123_v37 = vrot.slane %v2496_v11, %v2407_v28 }
  0xa5   : > { %v516_v59 = vadd.f32 %v2612_v42, %v458_v2  ;;  %v744_v43 = vadd.f32 %v737_v14, %v686_v30  ;;  %v3124_v60 = vrot.slane %v2500_v13, %v2401_v26  ;;  %v807_v55 = vadd.f32 %v800_v15, %v749_v23 }
  0xa6   : > { %v739_v5 = vmul.f32 %v3123_v37, %v699_v46  ;;  %v3125_v29 = vrot.slane %v2500_v13, %v2424_v34  ;;  %v861_v40 = vadd.f32 %v854_v21, %v803_v50  ;;  %v688_v39 = vadd.f32 %v681_v38, %v630_v27  ;;  %v2203_v50 = vld [vmem:[%s3099_s4 + $0x8] sm:$0xff]   ;;  %v2204_v27 = vld [vmem:[%s3099_s4 + $0x38] sm:$0xff]   ;;  %v2205_v37 = vld [vmem:[%s3099_s4 + $0x10] sm:$0xff]  }
  0xa7   : > { %v853_v48 = vmul.f32 %v3124_v60, %v815_v62  ;;  %v3126_v17 = vrot.slane %v2498_v12, %v2407_v28  ;;  %v574_v3 = vadd.f32 %v2653_v4, %v516_v59  ;;  %v802_v42 = vadd.f32 %v795_v52, %v744_v43  ;;  %v2800_v52 = vld [vmem:[%s3099_s4] sm:$0xff]   ;;  %v2206_v59 = vld [vmem:[%s3099_s4 + $0x18] sm:$0xff]   ;;  %v2208_v60 = vld [vmem:[%s3099_s4 + $0x28] sm:$0xff]  }
  0xa8   : > { %v858_v32 = vmul.f32 %v3125_v29, %v815_v62  ;;  %v863_v2 = vadd.f32 %v856_v53, %v805_v16  ;;  %v3127_v1 = vrot.slane %v2500_v13, %v2407_v28  ;;  %v3128_v34 = vrot.slane %v2471_v61, %v2421_v33  ;;  %v2207_v43 = vld [vmem:[%s3099_s4 + $0x20] sm:$0xff]   ;;  %v2902_v29 = vpop.permute.xlu0 %913 }
  0xa9   : > { %v797_v44 = vmul.f32 %v3126_v17, %v2698_v47  ;;  %v884_v49 = vpack.c.bf16 %v861_v40, %v861_v40  ;;  %v746_v18 = vadd.f32 %v739_v5, %v688_v39  ;;  %v632_v57 = vadd.f32 %v625_v20, %v574_v3 }
  0xaa   : > { %v855_v36 = vmul.f32 %v3127_v1, %v815_v62  ;;  %v683_v54 = vmul.f32 %v3128_v34, %v2658_v6  ;;  %v3129_v7 = vrot.slane %v2496_v11, %v2421_v33  ;;  %v860_v8 = vadd.f32 %v853_v48, %v802_v42  ;;  %v2898_v48 = vpop.permute.xlu1 %908 }
  0xab   : > { %v865_v4 = vadd.f32 %v858_v32, %v807_v55  ;;  %v634_v9 = vadd.f32 %v627_v45, %v576_v56  ;;  %v3130_v22 = vrot.slane %v2496_v11, %v2427_v35  ;;  %2043 = vmatprep.subr.msk.bf16.mxu0 %vm1051_vm0, %v884_v49  ;;  %2136 = vmatprep.subr.msk.bf16.mxu1 %vm1051_vm0, %v884_v49  ;;  %v3135_v0 = vmov 0  }
  0xac   : > { %v741_v58 = vmul.f32 %v3129_v7, %v699_v46  ;;  %v804_v61 = vadd.f32 %v797_v44, %v746_v18  ;;  %v690_v6 = vadd.f32 %v683_v54, %v632_v57  ;;  %v3131_v20 = vrot.slane %v2498_v12, %v2421_v33  ;;  %v2906_v40 = vpop.permute.xlu0 %928 }
  0xad   : > { %v743_v28 = vmul.f32 %v3130_v22, %v699_v46  ;;  %v883_v25 = vpack.c.bf16 %v860_v8, %v860_v8  ;;  %v692_v15 = vadd.f32 %v2681_v10, %v634_v9  ;;  %v3132_v56 = vrot.slane %v2498_v12, %v2427_v35  ;;  %v2805_v12 = vld [vmem:[%s3099_s4 + $0x30] sm:$0xff]  }
  0xae   : > { %v799_v14 = vmul.f32 %v3131_v20, %v2698_v47  ;;  %v886_v45 = vpack.c.bf16 %v863_v2, %v863_v2  ;;  %v862_v46 = vadd.f32 %v855_v36, %v804_v61  ;;  %v748_v63 = vadd.f32 %v741_v58, %v690_v6  ;;  %v2900_v55 = vpop.permute.xlu1 %918 }
  0xaf   : > { %v801_v11 = vmul.f32 %v3132_v56, %v2698_v47  ;;  %v3133_v51 = vrot.slane %v2500_v13, %v2421_v33  ;;  %v1053_v21 = vsel %vm1051_vm0, %v883_v25, 0  ;;  %v888_v31 = vpack.c.bf16 %v865_v4, %v865_v4 }
  0xb0   : > { %v750_v10 = vadd.f32 %v743_v28, %v692_v15  ;;  %v3134_v47 = vrot.slane %v2500_v13, %v2427_v35  ;;  %1074 = vmatpush1.bf16.msra.mxu0 %v1053_v21  ;;  %2137 = vmatpush1.bf16.msra.mxu1 %v1053_v21  ;;  %v885_v33 = vpack.c.bf16 %v862_v46, %v862_v46  ;;  %v2910_v17 = vpop.permute.xlu0 %938 }
  0xb1   : > { %v857_v41 = vmul.f32 %v3133_v51, %v815_v62  ;;  %v806_v38 = vadd.f32 %v799_v14, %v748_v63  ;;  %2052 = vmatprep.subr.msk.bf16.mxu1 %vm1051_vm0, %v886_v45  ;;  %2061 = vmatprep.subr.msk.bf16.mxu0 %vm1051_vm0, %v888_v31 }
  0xb2   : > { %v859_v24 = vmul.f32 %v3134_v47, %v815_v62  ;;  %v808_v30 = vadd.f32 %v801_v11, %v750_v10  ;;  %v1059_v35 = vsel %vm1051_vm0, %v885_v33, 0  ;;  %v2904_v32 = vpop.permute.xlu1 %923 }
  0xb3   : > { %v864_v16 = vadd.f32 %v857_v41, %v806_v38  ;;  %2044 = vmatmul.mubr.msk.bf16.vlgmr.msra.gmra.mrb[0].mxu0 %vm1026_vm1, %v2800_v52  ;;  %2050 = vmatmul.mubr.msk.bf16.vlgmr.msra.gmra.mrb[0].mxu1 %vm1026_vm1, %v2805_v12 }
  0xb4   : > { %v866_v13 = vadd.f32 %v859_v24, %v808_v30  ;;  %1187 = vmatpush1.bf16.msra.mxu1 %v1059_v35  ;;  %1115 = vmatprep.mubr.bf16.mxu0 %v3135_v0  ;;  %v2914_v3 = vpop.permute.xlu0 %948 }
  0xb5   : > { %v887_v62 = vpack.c.bf16 %v864_v16, %v864_v16  ;;  %1175 = vmatprep.mubr.bf16.mxu1 %v3135_v0 }
  0xb6   : > { %v889_v53 = vpack.c.bf16 %v866_v13, %v866_v13  ;;  %v2908_v39 = vpop.permute.xlu1 %933 }
  0xb7   : > { %v1065_v23 = vsel %vm1051_vm0, %v887_v62, 0 }
  0xb8   : > { %1300 = vmatpush1.bf16.msra.mxu0 %v1065_v23  ;;  %2138 = vmatprep.subr.msk.bf16.mxu1 %vm1051_vm0, %v889_v53  ;;  %v1071_v5 = vsel %vm1051_vm0, %v889_v53, 0  ;;  %v2918_v2 = vpop.permute.xlu0 %958 }
  0xba   : > { %v2912_v44 = vpop.permute.xlu1 %943 }
  0xbb   : > { %2045 = vmatmul.mubr.msk.bf16.gmra.mrb[4].mxu0 %vm1026_vm1, %v2203_v50  ;;  %2051 = vmatmul.mubr.msk.bf16.gmra.mrb[4].mxu1 %vm1026_vm1, %v2204_v27 }
  0xbc   : > { %1125 = vmatprep.mubr.bf16.mxu0 %v3135_v0  ;;  %1218 = vmatprep.mubr.bf16.mxu1 %v3135_v0  ;;  %v2922_v36 = vpop.permute.xlu0 %968 }
  0xbe   : > { %v2916_v42 = vpop.permute.xlu1 %953 }
  0xc0   : > { %v2934_v21 = vpop.permute.xlu0 %978 }
  0xc2   : > { %v2920_v1 = vpop.permute.xlu1 %963 }
  0xc3   : > { %2046 = vmatmul.mubr.msk.bf16.gmra.mrb[8].mxu0 %vm1026_vm1, %v2205_v37  ;;  %2053 = vmatmul.mubr.msk.bf16.vlgmr.msra.gmra.mrb[8].mxu1 %vm1026_vm1, %v2800_v52 }
  0xc4   : > { %2099 = vmatpush3.bf16.msra.mxu1 %v1071_v5  ;;  %1135 = vmatprep.mubr.bf16.mxu0 %v3135_v0 }
  0xc5   : > { %1228 = vmatprep.mubr.bf16.mxu1 %v3135_v0 }
  0xc6   : > { %v2924_v34 = vpop.permute.xlu1 %973 }
  0xcb   : > { %2047 = vmatmul.mubr.msk.bf16.gmra.mrb[12].mxu0 %vm1026_vm1, %v2206_v59  ;;  %2054 = vmatmul.mubr.msk.bf16.gmra.mrb[12].mxu1 %vm1026_vm1, %v2203_v50 }
  0xcc   : > { %1145 = vmatprep.mubr.bf16.mxu0 %v3135_v0  ;;  %1238 = vmatprep.mubr.bf16.mxu1 %v3135_v0 }
  0xd3   : > { %2048 = vmatmul.mubr.msk.bf16.gmra.mrb[16].mxu0 %vm1026_vm1, %v2207_v43  ;;  %2055 = vmatmul.mubr.msk.bf16.gmra.mrb[16].mxu1 %vm1026_vm1, %v2205_v37 }
  0xd4   : > { %1155 = vmatprep.mubr.bf16.mxu0 %v3135_v0  ;;  %1248 = vmatprep.mubr.bf16.mxu1 %v3135_v0 }
  0xdb   : > { %2049 = vmatmul.mubr.msk.bf16.gmra.mrb[20].mxu0 %vm1026_vm1, %v2208_v60  ;;  %2056 = vmatmul.mubr.msk.bf16.gmra.mrb[20].mxu1 %vm1026_vm1, %v2206_v59 }
  0xdc   : > { %1258 = vmatprep.mubr.bf16.mxu1 %v3135_v0  ;;  %1331 = vmatprep.mubr.bf16.mxu0 %v3135_v0 }
  0xe3   : > { %2057 = vmatmul.mubr.msk.bf16.gmra.mrb[24].mxu1 %vm1026_vm1, %v2207_v43  ;;  %2062 = vmatmul.mubr.msk.bf16.vlgmr.msra.gmra.mrb[24].mxu0 %vm1026_vm1, %v2800_v52 }
  0xe4   : > { %1268 = vmatprep.mubr.bf16.mxu1 %v3135_v0  ;;  %1341 = vmatprep.mubr.bf16.mxu0 %v3135_v0 }
  0xeb   : > { %2058 = vmatmul.mubr.msk.bf16.gmra.mrb[28].mxu1 %vm1026_vm1, %v2208_v60  ;;  %2063 = vmatmul.mubr.msk.bf16.gmra.mrb[28].mxu0 %vm1026_vm1, %v2203_v50 }
  0xec   : > { %1278 = vmatprep.mubr.bf16.mxu1 %v3135_v0  ;;  %1351 = vmatprep.mubr.bf16.mxu0 %v3135_v0 }
  0xf3   : > { %2059 = vmatmul.mubr.msk.bf16.gmra.mrb[32].mxu1 %vm1026_vm1, %v2805_v12  ;;  %2064 = vmatmul.mubr.msk.bf16.gmra.mrb[32].mxu0 %vm1026_vm1, %v2205_v37 }
  0xf4   : > { %1288 = vmatprep.mubr.bf16.mxu1 %v3135_v0  ;;  %1361 = vmatprep.mubr.bf16.mxu0 %v3135_v0 }
  0xfb   : > { %2060 = vmatmul.mubr.msk.bf16.gmra.mrb[36].mxu1 %vm1026_vm1, %v2204_v27  ;;  %2065 = vmatmul.mubr.msk.bf16.gmra.mrb[36].mxu0 %vm1026_vm1, %v2206_v59 }
  0xfc   : > { %1371 = vmatprep.mubr.bf16.mxu0 %v3135_v0  ;;  %2100 = vmatprep.mubr.msk.bf16.mxu1 %vm1026_vm1, %v2800_v52 }
 0x103   : > { %2066 = vmatmul.mubr.msk.bf16.gmra.mrb[40].mxu0 %vm1026_vm1, %v2207_v43  ;;  %2101 = vmatmul.mubr.msk.bf16.vlgmr.msra.gmra.mrb[40].mxu1 %vm1026_vm1, %v2203_v50 }
 0x104   : > { %1381 = vmatprep.mubr.bf16.mxu0 %v3135_v0  ;;  %2104 = vmatprep.mubr.msk.bf16.mxu1 %vm1026_vm1, %v2205_v37 }
 0x10b   : > { %2067 = vmatmul.mubr.msk.bf16.gmra.mrb[44].mxu0 %vm1026_vm1, %v2208_v60  ;;  %2105 = vmatmul.mubr.msk.bf16.gmra.mrb[44].mxu1 %vm1026_vm1, %v2206_v59 }
 0x10c   : > { %1391 = vmatprep.mubr.bf16.mxu0 %v3135_v0  ;;  %2108 = vmatprep.mubr.msk.bf16.mxu1 %vm1026_vm1, %v2207_v43 }
 0x113   : > { %2068 = vmatmul.mubr.msk.bf16.gmra.mrb[48].mxu0 %vm1026_vm1, %v2805_v12  ;;  %2109 = vmatmul.mubr.msk.bf16.gmra.mrb[48].mxu1 %vm1026_vm1, %v2208_v60 }
 0x114   : > { %1401 = vmatprep.mubr.bf16.mxu0 %v3135_v0  ;;  %2112 = vmatprep.mubr.msk.bf16.mxu1 %vm1026_vm1, %v2805_v12  ;;  %v2938_v12 = vpop.permute.xlu1 %983 }
 0x11b   : > { %2069 = vmatmul.mubr.msk.bf16.gmra.mrb[52].mxu0 %vm1026_vm1, %v2204_v27  ;;  %2113 = vmatmul.mubr.msk.bf16.gmra.mrb[52].mxu1 %vm1026_vm1, %v2204_v27 }
 0x11c   : > { %1720 = vmatprep.mubr.bf16.mxu1 %v3135_v0  ;;  %1761 = vmatprep.mubr.bf16.mxu0 %v3135_v0 }
 0x186   : > { %v1107_v54 = vpop.f32.mrb[0].mxu0  ;;  %v1167_v49 = vpop.f32.mrb[0].mxu1 }
 0x187   : > { %v1108_v18 = vadd.f32 %v1107_v54, %v2898_v48  ;;  %v1168_v57 = vadd.f32 %v1167_v49, %v2922_v36  ;;  %v1109_v7 = vpop.f32.mrb[1].mxu0  ;;  %v1169_v58 = vpop.f32.mrb[1].mxu1 }
 0x188   : > { %v1110_v8 = vadd.f32 %v1109_v7, %v2898_v48  ;;  %v1170_v4 = vadd.f32 %v1169_v58, %v2922_v36  ;;  %v1111_v9 = vpop.f32.mrb[2].mxu0  ;;  %v1171_v22 = vpop.f32.mrb[2].mxu1 }
 0x189   : > { %v1112_v28 = vadd.f32 %v1111_v9, %v2902_v29  ;;  %v1172_v61 = vadd.f32 %v1171_v22, %v2924_v34  ;;  %v1113_v6 = vpop.f32.mrb[3].mxu0  ;;  %v1173_v20 = vpop.f32.mrb[3].mxu1  ;;  %v1509_v15 = vmax.f32 %v1108_v18, 0.0  ;;  %v1593_v56 = vmax.f32 %v1168_v57, 0.0 }
 0x18a   : > { %v1114_v14 = vadd.f32 %v1113_v6, %v2902_v29  ;;  %v1174_v25 = vadd.f32 %v1173_v20, %v2924_v34  ;;  %v1510_v46 = vmax.f32 %v1110_v8, 0.0  ;;  %v1594_v63 = vmax.f32 %v1170_v4, 0.0 }
 0x18b   : > { %v1516_v11 = vmax.f32 %v1112_v28, 0.0  ;;  %v1600_v45 = vmax.f32 %v1172_v61, 0.0 }
 0x18c   : > { %v1517_v51 = vmax.f32 %v1114_v14, 0.0  ;;  %v1601_v41 = vmax.f32 %v1174_v25, 0.0 }
 0x18d   : > { %v1622_v31 = vpack.c.bf16 %v1516_v11, %v1509_v15  ;;  %v2936_v52 = vpack.c.bf16 %v1600_v45, %v1593_v56 }
 0x18e   : > { %v1623_v10 = vpack.c.bf16 %v1517_v51, %v1510_v46  ;;  %v2940_v47 = vpack.c.bf16 %v1601_v41, %v1594_v63  ;;  %v1117_v24 = vpop.f32.mrb[4].mxu0  ;;  %v1177_v33 = vpop.f32.mrb[4].mxu1 }
 0x18f   : > { %v1118_v38 = vadd.f32 %v1117_v24, %v2900_v55  ;;  %v1178_v30 = vadd.f32 %v1177_v33, %v2934_v21  ;;  %v1119_v16 = vpop.f32.mrb[5].mxu0  ;;  %v1179_v35 = vpop.f32.mrb[5].mxu1 }
 0x190   : > { %v1120_v13 = vadd.f32 %v1119_v16, %v2900_v55  ;;  %v1180_v62 = vadd.f32 %v1179_v35, %v2934_v21  ;;  %v1121_v53 = vpop.f32.mrb[6].mxu0  ;;  %v1181_v23 = vpop.f32.mrb[6].mxu1  ;;  %1688 = vmatprep.subr.bf16.mxu1 %v1623_v10 }
 0x191   : > { %v1122_v50 = vadd.f32 %v1121_v53, %v2904_v32  ;;  %v1182_v27 = vadd.f32 %v1181_v23, %v2938_v12  ;;  %v1123_v37 = vpop.f32.mrb[7].mxu0  ;;  %v1183_v5 = vpop.f32.mrb[7].mxu1  ;;  %1689 = vmatpush1.bf16.msra.mxu1 %v1622_v31  ;;  %v1523_v60 = vmax.f32 %v1118_v38, 0.0  ;;  %v1607_v54 = vmax.f32 %v1178_v30, 0.0 }
 0x192   : > { %v1124_v59 = vadd.f32 %v1123_v37, %v2904_v32  ;;  %v1184_v43 = vadd.f32 %v1183_v5, %v2938_v12  ;;  %v1524_v57 = vmax.f32 %v1120_v13, 0.0  ;;  %v1608_v7 = vmax.f32 %v1180_v62, 0.0 }
 0x193   : > { %v1530_v49 = vmax.f32 %v1122_v50, 0.0  ;;  %v1614_v18 = vmax.f32 %v1182_v27, 0.0 }
 0x194   : > { %v1531_v58 = vmax.f32 %v1124_v59, 0.0  ;;  %v1615_v8 = vmax.f32 %v1184_v43, 0.0 }
 0x195   : > { %v1629_v4 = vpack.c.bf16 %v1530_v49, %v1523_v60  ;;  %v2950_v9 = vpack.c.bf16 %v1614_v18, %v1607_v54 }
 0x196   : > { %v1630_v22 = vpack.c.bf16 %v1531_v58, %v1524_v57  ;;  %v2952_v28 = vpack.c.bf16 %v1615_v8, %v1608_v7  ;;  %v1127_v61 = vpop.f32.mrb[8].mxu0  ;;  %v1220_v6 = vpop.f32.mrb[8].mxu1 }
 0x197   : > { %v1128_v20 = vadd.f32 %v1127_v61, %v2906_v40  ;;  %v1221_v14 = vadd.f32 %v1220_v6, %v2898_v48  ;;  %v1129_v25 = vpop.f32.mrb[9].mxu0  ;;  %v1222_v15 = vpop.f32.mrb[9].mxu1 }
 0x198   : > { %v1130_v56 = vadd.f32 %v1129_v25, %v2906_v40  ;;  %v1223_v11 = vadd.f32 %v1222_v15, %v2898_v48  ;;  %v1131_v45 = vpop.f32.mrb[10].mxu0  ;;  %v1224_v46 = vpop.f32.mrb[10].mxu1  ;;  %1690 = vmatprep.subr.bf16.mxu1 %v1630_v22 }
 0x199   : > { %v1132_v63 = vadd.f32 %v1131_v45, %v2908_v39  ;;  %v1225_v51 = vadd.f32 %v1224_v46, %v2902_v29  ;;  %v1133_v41 = vpop.f32.mrb[11].mxu0  ;;  %v1226_v31 = vpop.f32.mrb[11].mxu1  ;;  %1691 = vmatpush1.bf16.msra.mxu1 %v1629_v4  ;;  %v1537_v33 = vmax.f32 %v1128_v20, 0.0  ;;  %v1511_v38 = vmax.f32 %v1221_v14, 0.0 }
 0x19a   : > { %v1134_v10 = vadd.f32 %v1133_v41, %v2908_v39  ;;  %v1227_v24 = vadd.f32 %v1226_v31, %v2902_v29  ;;  %v1538_v35 = vmax.f32 %v1130_v56, 0.0  ;;  %v1512_v13 = vmax.f32 %v1223_v11, 0.0 }
 0x19b   : > { %v1544_v30 = vmax.f32 %v1132_v63, 0.0  ;;  %v1518_v16 = vmax.f32 %v1225_v51, 0.0 }
 0x19c   : > { %v1545_v62 = vmax.f32 %v1134_v10, 0.0  ;;  %v1519_v53 = vmax.f32 %v1227_v24, 0.0 }
 0x19d   : > { %v1636_v23 = vpack.c.bf16 %v1544_v30, %v1537_v33  ;;  %v1624_v50 = vpack.c.bf16 %v1518_v16, %v1511_v38 }
 0x19e   : > { %v1637_v27 = vpack.c.bf16 %v1545_v62, %v1538_v35  ;;  %v1625_v37 = vpack.c.bf16 %v1519_v53, %v1512_v13  ;;  %v1137_v5 = vpop.f32.mrb[12].mxu0  ;;  %v1230_v59 = vpop.f32.mrb[12].mxu1 }
 0x19f   : > { %v1138_v43 = vadd.f32 %v1137_v5, %v2910_v17  ;;  %v1231_v60 = vadd.f32 %v1230_v59, %v2900_v55  ;;  %v1139_v54 = vpop.f32.mrb[13].mxu0  ;;  %v1232_v49 = vpop.f32.mrb[13].mxu1 }
 0x1a0   : > { %v1140_v18 = vadd.f32 %v1139_v54, %v2910_v17  ;;  %v1233_v57 = vadd.f32 %v1232_v49, %v2900_v55  ;;  %v1141_v7 = vpop.f32.mrb[14].mxu0  ;;  %v1234_v58 = vpop.f32.mrb[14].mxu1  ;;  %1692 = vmatprep.subr.bf16.mxu1 %v1637_v27  ;;  %1729 = vmatprep.subr.bf16.mxu0 %v1625_v37 }
 0x1a1   : > { %v1142_v8 = vadd.f32 %v1141_v7, %v2912_v44  ;;  %v1235_v4 = vadd.f32 %v1234_v58, %v2904_v32  ;;  %v1143_v22 = vpop.f32.mrb[15].mxu0  ;;  %v1236_v61 = vpop.f32.mrb[15].mxu1  ;;  %1693 = vmatpush1.bf16.msra.mxu1 %v1636_v23  ;;  %1730 = vmatpush1.bf16.msra.mxu0 %v1624_v50  ;;  %v1551_v14 = vmax.f32 %v1138_v43, 0.0  ;;  %v1525_v25 = vmax.f32 %v1231_v60, 0.0 }
 0x1a2   : > { %v1144_v6 = vadd.f32 %v1143_v22, %v2912_v44  ;;  %v1237_v20 = vadd.f32 %v1236_v61, %v2904_v32  ;;  %v1552_v11 = vmax.f32 %v1140_v18, 0.0  ;;  %v1526_v45 = vmax.f32 %v1233_v57, 0.0 }
 0x1a3   : > { %v1558_v15 = vmax.f32 %v1142_v8, 0.0  ;;  %v1532_v56 = vmax.f32 %v1235_v4, 0.0 }
 0x1a4   : > { %v1559_v46 = vmax.f32 %v1144_v6, 0.0  ;;  %v1533_v63 = vmax.f32 %v1237_v20, 0.0 }
 0x1a5   : > { %v1643_v51 = vpack.c.bf16 %v1558_v15, %v1551_v14  ;;  %v1631_v41 = vpack.c.bf16 %v1532_v56, %v1525_v25 }
 0x1a6   : > { %v1644_v31 = vpack.c.bf16 %v1559_v46, %v1552_v11  ;;  %v1632_v10 = vpack.c.bf16 %v1533_v63, %v1526_v45  ;;  %v1147_v24 = vpop.f32.mrb[16].mxu0  ;;  %v1240_v33 = vpop.f32.mrb[16].mxu1 }
 0x1a7   : > { %v1148_v38 = vadd.f32 %v1147_v24, %v2914_v3  ;;  %v1241_v30 = vadd.f32 %v1240_v33, %v2906_v40  ;;  %v1149_v16 = vpop.f32.mrb[17].mxu0  ;;  %v1242_v35 = vpop.f32.mrb[17].mxu1 }
 0x1a8   : > { %v1150_v13 = vadd.f32 %v1149_v16, %v2914_v3  ;;  %v1243_v62 = vadd.f32 %v1242_v35, %v2906_v40  ;;  %v1151_v53 = vpop.f32.mrb[18].mxu0  ;;  %v1244_v23 = vpop.f32.mrb[18].mxu1  ;;  %1694 = vmatprep.subr.bf16.mxu1 %v1644_v31  ;;  %1731 = vmatprep.subr.bf16.mxu0 %v1632_v10 }
 0x1a9   : > { %v1152_v50 = vadd.f32 %v1151_v53, %v2916_v42  ;;  %v1245_v27 = vadd.f32 %v1244_v23, %v2908_v39  ;;  %v1153_v37 = vpop.f32.mrb[19].mxu0  ;;  %v1246_v5 = vpop.f32.mrb[19].mxu1  ;;  %1695 = vmatpush1.bf16.msra.mxu1 %v1643_v51  ;;  %1732 = vmatpush1.bf16.msra.mxu0 %v1631_v41  ;;  %v1565_v60 = vmax.f32 %v1148_v38, 0.0  ;;  %v1539_v54 = vmax.f32 %v1241_v30, 0.0 }
 0x1aa   : > { %v1154_v59 = vadd.f32 %v1153_v37, %v2916_v42  ;;  %v1247_v43 = vadd.f32 %v1246_v5, %v2908_v39  ;;  %v1566_v57 = vmax.f32 %v1150_v13, 0.0  ;;  %v1540_v7 = vmax.f32 %v1243_v62, 0.0 }
 0x1ab   : > { %v1572_v49 = vmax.f32 %v1152_v50, 0.0  ;;  %v1546_v18 = vmax.f32 %v1245_v27, 0.0 }
 0x1ac   : > { %v1573_v58 = vmax.f32 %v1154_v59, 0.0  ;;  %v1547_v8 = vmax.f32 %v1247_v43, 0.0 }
 0x1ad   : > { %v1650_v4 = vpack.c.bf16 %v1572_v49, %v1565_v60  ;;  %v1638_v22 = vpack.c.bf16 %v1546_v18, %v1539_v54 }
 0x1ae   : > { %v1651_v61 = vpack.c.bf16 %v1573_v58, %v1566_v57  ;;  %v1639_v6 = vpack.c.bf16 %v1547_v8, %v1540_v7  ;;  %v1157_v20 = vpop.f32.mrb[20].mxu0  ;;  %v1250_v14 = vpop.f32.mrb[20].mxu1 }
 0x1af   : > { %v1158_v25 = vadd.f32 %v1157_v20, %v2918_v2  ;;  %v1251_v15 = vadd.f32 %v1250_v14, %v2910_v17  ;;  %v1159_v56 = vpop.f32.mrb[21].mxu0  ;;  %v1252_v11 = vpop.f32.mrb[21].mxu1 }
 0x1b0   : > { %v1160_v45 = vadd.f32 %v1159_v56, %v2918_v2  ;;  %v1253_v46 = vadd.f32 %v1252_v11, %v2910_v17  ;;  %v1161_v63 = vpop.f32.mrb[22].mxu0  ;;  %v1254_v51 = vpop.f32.mrb[22].mxu1  ;;  %1696 = vmatprep.subr.bf16.mxu1 %v1651_v61  ;;  %1733 = vmatprep.subr.bf16.mxu0 %v1639_v6 }
 0x1b1   : > { %v1162_v41 = vadd.f32 %v1161_v63, %v2920_v1  ;;  %v1255_v31 = vadd.f32 %v1254_v51, %v2912_v44  ;;  %v1163_v10 = vpop.f32.mrb[23].mxu0  ;;  %v1256_v24 = vpop.f32.mrb[23].mxu1  ;;  %1697 = vmatpush1.bf16.msra.mxu1 %v1650_v4  ;;  %1734 = vmatpush1.bf16.msra.mxu0 %v1638_v22  ;;  %v1579_v30 = vmax.f32 %v1158_v25, 0.0  ;;  %v1553_v16 = vmax.f32 %v1251_v15, 0.0 }
 0x1b2   : > { %v1164_v33 = vadd.f32 %v1163_v10, %v2920_v1  ;;  %v1257_v38 = vadd.f32 %v1256_v24, %v2912_v44  ;;  %v1580_v62 = vmax.f32 %v1160_v45, 0.0  ;;  %v1554_v53 = vmax.f32 %v1253_v46, 0.0 }
 0x1b3   : > { %v1586_v35 = vmax.f32 %v1162_v41, 0.0  ;;  %v1560_v13 = vmax.f32 %v1255_v31, 0.0 }
 0x1b4   : > { %v1587_v23 = vmax.f32 %v1164_v33, 0.0  ;;  %v1561_v50 = vmax.f32 %v1257_v38, 0.0 }
 0x1b5   : > { %v1657_v27 = vpack.c.bf16 %v1586_v35, %v1579_v30  ;;  %v1645_v37 = vpack.c.bf16 %v1560_v13, %v1553_v16 }
 0x1b6   : > { %v1658_v5 = vpack.c.bf16 %v1587_v23, %v1580_v62  ;;  %v1646_v59 = vpack.c.bf16 %v1561_v50, %v1554_v53  ;;  %v1260_v43 = vpop.f32.mrb[24].mxu1  ;;  %v1333_v60 = vpop.f32.mrb[24].mxu0 }
 0x1b7   : > { %v1261_v54 = vadd.f32 %v1260_v43, %v2914_v3  ;;  %v1334_v49 = vadd.f32 %v1333_v60, %v2898_v48  ;;  %v1262_v18 = vpop.f32.mrb[25].mxu1  ;;  %v1335_v57 = vpop.f32.mrb[25].mxu0 }
 0x1b8   : > { %v1263_v7 = vadd.f32 %v1262_v18, %v2914_v3  ;;  %v1336_v58 = vadd.f32 %v1335_v57, %v2898_v48  ;;  %v1264_v8 = vpop.f32.mrb[26].mxu1  ;;  %v1337_v4 = vpop.f32.mrb[26].mxu0  ;;  %1698 = vmatprep.subr.bf16.mxu1 %v1658_v5  ;;  %1735 = vmatprep.subr.bf16.mxu0 %v1646_v59 }
 0x1b9   : > { %v1265_v22 = vadd.f32 %v1264_v8, %v2916_v42  ;;  %v1338_v61 = vadd.f32 %v1337_v4, %v2902_v29  ;;  %v1266_v6 = vpop.f32.mrb[27].mxu1  ;;  %v1339_v20 = vpop.f32.mrb[27].mxu0  ;;  %1699 = vmatpush1.bf16.msra.mxu1 %v1657_v27  ;;  %1736 = vmatpush1.bf16.msra.mxu0 %v1645_v37  ;;  %v1567_v15 = vmax.f32 %v1261_v54, 0.0  ;;  %v1513_v56 = vmax.f32 %v1334_v49, 0.0 }
 0x1ba   : > { %v1267_v14 = vadd.f32 %v1266_v6, %v2916_v42  ;;  %v1340_v25 = vadd.f32 %v1339_v20, %v2902_v29  ;;  %1700 = vmatprep.subr.bf16.mxu1 %v2940_v47  ;;  %v1568_v46 = vmax.f32 %v1263_v7, 0.0  ;;  %v1514_v63 = vmax.f32 %v1336_v58, 0.0 }
 0x1bb   : > { %v1574_v11 = vmax.f32 %v1265_v22, 0.0  ;;  %v1520_v45 = vmax.f32 %v1338_v61, 0.0 }
 0x1bc   : > { %v1575_v51 = vmax.f32 %v1267_v14, 0.0  ;;  %v1521_v41 = vmax.f32 %v1340_v25, 0.0 }
 0x1bd   : > { %v1652_v31 = vpack.c.bf16 %v1574_v11, %v1567_v15  ;;  %v1626_v10 = vpack.c.bf16 %v1520_v45, %v1513_v56  ;;  %1701 = vmatpush1.bf16.msra.mxu1 %v2936_v52 }
 0x1be   : > { %v1653_v24 = vpack.c.bf16 %v1575_v51, %v1568_v46  ;;  %v1627_v33 = vpack.c.bf16 %v1521_v41, %v1514_v63  ;;  %v1270_v38 = vpop.f32.mrb[28].mxu1  ;;  %v1343_v30 = vpop.f32.mrb[28].mxu0  ;;  %1702 = vmatprep.subr.bf16.mxu1 %v2952_v28  ;;  %v3007_v28 = vld [vmem:[%s3101_s6] sm:$0x1] }
 0x1bf   : > { %v1271_v47 = vadd.f32 %v1270_v38, %v2918_v2  ;;  %v1344_v16 = vadd.f32 %v1343_v30, %v2900_v55  ;;  %v1272_v35 = vpop.f32.mrb[29].mxu1  ;;  %v1345_v13 = vpop.f32.mrb[29].mxu0 }
 0x1c0   : > { %v1273_v62 = vadd.f32 %v1272_v35, %v2918_v2  ;;  %v1346_v53 = vadd.f32 %v1345_v13, %v2900_v55  ;;  %v1274_v23 = vpop.f32.mrb[30].mxu1  ;;  %v1347_v50 = vpop.f32.mrb[30].mxu0  ;;  %1737 = vmatprep.subr.bf16.mxu0 %v1653_v24 }
 0x1c1   : > { %v1275_v52 = vadd.f32 %v1274_v23, %v2920_v1  ;;  %v1348_v27 = vadd.f32 %v1347_v50, %v2904_v32  ;;  %v1276_v37 = vpop.f32.mrb[31].mxu1  ;;  %v1349_v5 = vpop.f32.mrb[31].mxu0  ;;  %1703 = vmatpush1.bf16.msra.mxu1 %v2950_v9  ;;  %1738 = vmatpush1.bf16.msra.mxu0 %v1652_v31  ;;  %v1581_v60 = vmax.f32 %v1271_v47, 0.0  ;;  %v1527_v54 = vmax.f32 %v1344_v16, 0.0 }
 0x1c2   : > { %v1277_v59 = vadd.f32 %v1276_v37, %v2920_v1  ;;  %v1350_v43 = vadd.f32 %v1349_v5, %v2904_v32  ;;  %1770 = vmatprep.subr.bf16.mxu1 %v1627_v33  ;;  %v1582_v57 = vmax.f32 %v1273_v62, 0.0  ;;  %v1528_v7 = vmax.f32 %v1346_v53, 0.0 }
 0x1c3   : > { %v1588_v49 = vmax.f32 %v1275_v52, 0.0  ;;  %v1534_v18 = vmax.f32 %v1348_v27, 0.0 }
 0x1c4   : > { %v1589_v58 = vmax.f32 %v1277_v59, 0.0  ;;  %v1535_v8 = vmax.f32 %v1350_v43, 0.0  ;;  %1721 = vmatmul.mubr.bf16.vlgmr.msra.gmra.mrb[56].mxu1 %v3007_v28 }
 0x1c5   : > { %v1659_v9 = vpack.c.bf16 %v1588_v49, %v1581_v60  ;;  %v1633_v4 = vpack.c.bf16 %v1534_v18, %v1527_v54  ;;  %1771 = vmatpush1.bf16.msra.mxu1 %v1626_v10  ;;  %1802 = vmatprep.mubr.bf16.mxu1 %v3135_v0 }
 0x1c6   : > { %v1660_v22 = vpack.c.bf16 %v1589_v58, %v1582_v57  ;;  %v1634_v61 = vpack.c.bf16 %v1535_v8, %v1528_v7  ;;  %v1280_v6 = vpop.f32.mrb[32].mxu1  ;;  %v1353_v20 = vpop.f32.mrb[32].mxu0 }
 0x1c7   : > { %v1281_v14 = vadd.f32 %v1280_v6, %v2922_v36  ;;  %v1354_v25 = vadd.f32 %v1353_v20, %v2906_v40  ;;  %v1282_v15 = vpop.f32.mrb[33].mxu1  ;;  %v1355_v56 = vpop.f32.mrb[33].mxu0 }
 0x1c8   : > { %v1283_v11 = vadd.f32 %v1282_v15, %v2922_v36  ;;  %v1356_v45 = vadd.f32 %v1355_v56, %v2906_v40  ;;  %v1284_v46 = vpop.f32.mrb[34].mxu1  ;;  %v1357_v63 = vpop.f32.mrb[34].mxu0  ;;  %1739 = vmatprep.subr.bf16.mxu0 %v1660_v22  ;;  %1772 = vmatprep.subr.bf16.mxu1 %v1634_v61 }
 0x1c9   : > { %v1285_v0 = vadd.f32 %v1284_v46, %v2924_v34  ;;  %v1358_v51 = vadd.f32 %v1357_v63, %v2908_v39  ;;  %v1286_v41 = vpop.f32.mrb[35].mxu1  ;;  %v1359_v31 = vpop.f32.mrb[35].mxu0  ;;  %1740 = vmatpush1.bf16.msra.mxu0 %v1659_v9  ;;  %1773 = vmatpush1.bf16.msra.mxu1 %v1633_v4  ;;  %v1595_v33 = vmax.f32 %v1281_v14, 0.0  ;;  %v1541_v38 = vmax.f32 %v1354_v25, 0.0 }
 0x1ca   : > { %v1287_v10 = vadd.f32 %v1286_v41, %v2924_v34  ;;  %v1360_v24 = vadd.f32 %v1359_v31, %v2908_v39  ;;  %v1596_v16 = vmax.f32 %v1283_v11, 0.0  ;;  %v1542_v35 = vmax.f32 %v1356_v45, 0.0 }
 0x1cb   : > { %v1602_v30 = vmax.f32 %v1285_v0, 0.0  ;;  %v1548_v47 = vmax.f32 %v1358_v51, 0.0 }
 0x1cc   : > { %v1603_v13 = vmax.f32 %v1287_v10, 0.0  ;;  %v1549_v62 = vmax.f32 %v1360_v24, 0.0 }
 0x1cd   : > { %v1666_v53 = vpack.c.bf16 %v1602_v30, %v1595_v33  ;;  %v1640_v23 = vpack.c.bf16 %v1548_v47, %v1541_v38 }
 0x1ce   : > { %v1667_v50 = vpack.c.bf16 %v1603_v13, %v1596_v16  ;;  %v1641_v52 = vpack.c.bf16 %v1549_v62, %v1542_v35  ;;  %v1290_v27 = vpop.f32.mrb[36].mxu1  ;;  %v1363_v37 = vpop.f32.mrb[36].mxu0 }
 0x1cf   : > { %v1291_v5 = vadd.f32 %v1290_v27, %v2934_v21  ;;  %v1364_v59 = vadd.f32 %v1363_v37, %v2910_v17  ;;  %v1292_v43 = vpop.f32.mrb[37].mxu1  ;;  %v1365_v60 = vpop.f32.mrb[37].mxu0 }
 0x1d0   : > { %v1293_v54 = vadd.f32 %v1292_v43, %v2934_v21  ;;  %v1366_v49 = vadd.f32 %v1365_v60, %v2910_v17  ;;  %v1294_v18 = vpop.f32.mrb[38].mxu1  ;;  %v1367_v57 = vpop.f32.mrb[38].mxu0  ;;  %1741 = vmatprep.subr.bf16.mxu0 %v1667_v50  ;;  %1774 = vmatprep.subr.bf16.mxu1 %v1641_v52  ;;  %v2257_v50 = vmov 0.0  }
 0x1d1   : > { %v1295_v7 = vadd.f32 %v1294_v18, %v2938_v12  ;;  %v1368_v58 = vadd.f32 %v1367_v57, %v2912_v44  ;;  %v1296_v8 = vpop.f32.mrb[39].mxu1  ;;  %v1369_v9 = vpop.f32.mrb[39].mxu0  ;;  %1742 = vmatpush1.bf16.msra.mxu0 %v1666_v53  ;;  %1775 = vmatpush1.bf16.msra.mxu1 %v1640_v23  ;;  %v1609_v61 = vmax.f32 %v1291_v5, 0.0  ;;  %v1555_v6 = vmax.f32 %v1364_v59, 0.0 }
 0x1d2   : > { %v1297_v4 = vadd.f32 %v1296_v8, %v2938_v12  ;;  %v1370_v22 = vadd.f32 %v1369_v9, %v2912_v44  ;;  %v1610_v25 = vmax.f32 %v1293_v54, 0.0  ;;  %v1556_v15 = vmax.f32 %v1366_v49, 0.0 }
 0x1d3   : > { %v1616_v20 = vmax.f32 %v1295_v7, 0.0  ;;  %v1562_v14 = vmax.f32 %v1368_v58, 0.0 }
 0x1d4   : > { %v1617_v56 = vmax.f32 %v1297_v4, 0.0  ;;  %v1563_v11 = vmax.f32 %v1370_v22, 0.0 }
 0x1d5   : > { %v1673_v45 = vpack.c.bf16 %v1616_v20, %v1609_v61  ;;  %v1647_v46 = vpack.c.bf16 %v1562_v14, %v1555_v6 }
 0x1d6   : > { %v1674_v63 = vpack.c.bf16 %v1617_v56, %v1610_v25  ;;  %v1648_v0 = vpack.c.bf16 %v1563_v11, %v1556_v15  ;;  %v1373_v51 = vpop.f32.mrb[40].mxu0  ;;  %v2102_v41 = vpop.f32.mrb[40].mxu1 }
 0x1d7   : > { %v1374_v31 = vadd.f32 %v1373_v51, %v2914_v3  ;;  %v1455_v10 = vadd.f32 %v2102_v41, %v2900_v55  ;;  %v1375_v24 = vpop.f32.mrb[41].mxu0  ;;  %v1446_v33 = vpop.f32.mrb[41].mxu1 }
 0x1d8   : > { %v1376_v38 = vadd.f32 %v1375_v24, %v2914_v3  ;;  %v1447_v30 = vadd.f32 %v1446_v33, %v2898_v48  ;;  %v1377_v47 = vpop.f32.mrb[42].mxu0  ;;  %v2103_v16 = vpop.f32.mrb[42].mxu1  ;;  %1743 = vmatprep.subr.bf16.mxu0 %v1674_v63  ;;  %1776 = vmatprep.subr.bf16.mxu1 %v1648_v0 }
 0x1d9   : > { %v1378_v35 = vadd.f32 %v1377_v47, %v2916_v42  ;;  %v1458_v13 = vadd.f32 %v2103_v16, %v2904_v32  ;;  %v1379_v62 = vpop.f32.mrb[43].mxu0  ;;  %v1449_v53 = vpop.f32.mrb[43].mxu1  ;;  %1744 = vmatpush1.bf16.msra.mxu0 %v1673_v45  ;;  %1777 = vmatpush1.bf16.msra.mxu1 %v1647_v46  ;;  %v1569_v48 = vmax.f32 %v1374_v31, 0.0  ;;  %v1529_v52 = vmax.f32 %v1455_v10, 0.0 }
 0x1da   : > { %v1380_v55 = vadd.f32 %v1379_v62, %v2916_v42  ;;  %v1450_v23 = vadd.f32 %v1449_v53, %v2902_v29  ;;  %2116 = vmatprep.subr.bf16.mxu0 %v2257_v50  ;;  %v1570_v5 = vmax.f32 %v1376_v38, 0.0  ;;  %v1515_v59 = vmax.f32 %v1447_v30, 0.0 }
 0x1db   : > { %v1576_v27 = vmax.f32 %v1378_v35, 0.0  ;;  %v1536_v37 = vmax.f32 %v1458_v13, 0.0 }
 0x1dc   : > { %v1577_v43 = vmax.f32 %v1380_v55, 0.0  ;;  %v1522_v60 = vmax.f32 %v1450_v23, 0.0  ;;  %1762 = vmatmul.mubr.bf16.vlgmr.msra.gmra.mrb[56].mxu0 %v3007_v28 }
 0x1dd   : > { %v1654_v32 = vpack.c.bf16 %v1576_v27, %v1569_v48  ;;  %v1635_v54 = vpack.c.bf16 %v1536_v37, %v1529_v52  ;;  %2132 = vmatprep.mubr.msk.bf16.mxu0 %vm2258_vm2, %v2257_v50 }
 0x1de   : > { %v1655_v49 = vpack.c.bf16 %v1577_v43, %v1570_v5  ;;  %v1628_v29 = vpack.c.bf16 %v1522_v60, %v1515_v59  ;;  %v1383_v18 = vpop.f32.mrb[44].mxu0  ;;  %v2106_v57 = vpop.f32.mrb[44].mxu1 }
 0x1df   : > { %v1384_v7 = vadd.f32 %v1383_v18, %v2918_v2  ;;  %v1471_v58 = vadd.f32 %v2106_v57, %v2910_v17  ;;  %v1385_v8 = vpop.f32.mrb[45].mxu0  ;;  %v1462_v9 = vpop.f32.mrb[45].mxu1 }
 0x1e0   : > { %v1386_v4 = vadd.f32 %v1385_v8, %v2918_v2  ;;  %v1463_v22 = vadd.f32 %v1462_v9, %v2906_v40  ;;  %v1387_v61 = vpop.f32.mrb[46].mxu0  ;;  %v2107_v6 = vpop.f32.mrb[46].mxu1  ;;  %1778 = vmatprep.subr.bf16.mxu1 %v1655_v49  ;;  %2117 = vmatpush3.bf16.msra.mxu0 %v1628_v29 }
 0x1e1   : > { %v1388_v20 = vadd.f32 %v1387_v61, %v2920_v1  ;;  %v1474_v14 = vadd.f32 %v2107_v6, %v2912_v44  ;;  %v1389_v25 = vpop.f32.mrb[47].mxu0  ;;  %v1465_v15 = vpop.f32.mrb[47].mxu1  ;;  %1779 = vmatpush1.bf16.msra.mxu1 %v1654_v32  ;;  %2118 = vmatprep.subr.bf16.mxu0 %v2257_v50  ;;  %v1583_v11 = vmax.f32 %v1384_v7, 0.0  ;;  %v1557_v45 = vmax.f32 %v1471_v58, 0.0 }
 0x1e2   : > { %v1390_v17 = vadd.f32 %v1389_v25, %v2920_v1  ;;  %v1466_v56 = vadd.f32 %v1465_v15, %v2908_v39  ;;  %v1584_v63 = vmax.f32 %v1386_v4, 0.0  ;;  %v1543_v0 = vmax.f32 %v1463_v22, 0.0 }
 0x1e3   : > { %v1590_v40 = vmax.f32 %v1388_v20, 0.0  ;;  %v1564_v46 = vmax.f32 %v1474_v14, 0.0 }
 0x1e4   : > { %v1591_v51 = vmax.f32 %v1390_v17, 0.0  ;;  %v1550_v41 = vmax.f32 %v1466_v56, 0.0  ;;  %2119 = vmatpush3.bf16.msra.mxu0 %v1635_v54 }
 0x1e5   : > { %v1661_v31 = vpack.c.bf16 %v1590_v40, %v1583_v11  ;;  %v1649_v44 = vpack.c.bf16 %v1564_v46, %v1557_v45  ;;  %2120 = vmatprep.subr.bf16.mxu0 %v2257_v50 }
 0x1e6   : > { %v1662_v10 = vpack.c.bf16 %v1591_v51, %v1584_v63  ;;  %v1642_v24 = vpack.c.bf16 %v1550_v41, %v1543_v0  ;;  %v1393_v33 = vpop.f32.mrb[48].mxu0  ;;  %v2110_v38 = vpop.f32.mrb[48].mxu1 }
 0x1e7   : > { %v1394_v30 = vadd.f32 %v1393_v33, %v2922_v36  ;;  %v1487_v39 = vadd.f32 %v2110_v38, %v2918_v2  ;;  %v1395_v47 = vpop.f32.mrb[49].mxu0  ;;  %v1478_v16 = vpop.f32.mrb[49].mxu1 }
 0x1e8   : > { %v1396_v35 = vadd.f32 %v1395_v47, %v2922_v36  ;;  %v1479_v13 = vadd.f32 %v1478_v16, %v2914_v3  ;;  %v1397_v62 = vpop.f32.mrb[50].mxu0  ;;  %v2111_v53 = vpop.f32.mrb[50].mxu1  ;;  %1780 = vmatprep.subr.bf16.mxu1 %v1662_v10  ;;  %2121 = vmatpush3.bf16.msra.mxu0 %v1642_v24  ;;  %v2259_v16 = vmov 1966171168  }
 0x1e9   : > { %v1398_v55 = vadd.f32 %v1397_v62, %v2924_v34  ;;  %v1490_v23 = vadd.f32 %v2111_v53, %v2920_v1  ;;  %v1399_v48 = vpop.f32.mrb[51].mxu0  ;;  %v1481_v52 = vpop.f32.mrb[51].mxu1  ;;  %1781 = vmatpush1.bf16.msra.mxu1 %v1661_v31  ;;  %2122 = vmatprep.subr.bf16.mxu0 %v2257_v50  ;;  %v1597_v37 = vmax.f32 %v1394_v30, 0.0  ;;  %v1585_v5 = vmax.f32 %v1487_v39, 0.0 }
 0x1ea   : > { %v1400_v2 = vadd.f32 %v1399_v48, %v2924_v34  ;;  %v1482_v27 = vadd.f32 %v1481_v52, %v2916_v42  ;;  %v1598_v43 = vmax.f32 %v1396_v35, 0.0  ;;  %v1571_v60 = vmax.f32 %v1479_v13, 0.0 }
 0x1eb   : > { %v1604_v3 = vmax.f32 %v1398_v55, 0.0  ;;  %v1592_v59 = vmax.f32 %v1490_v23, 0.0  ;;  %v1862_v35 = vunpack.c.l.s4 %v2259_v16 }
 0x1ec   : > { %v1605_v32 = vmax.f32 %v1400_v2, 0.0  ;;  %v1578_v54 = vmax.f32 %v1482_v27, 0.0  ;;  %2123 = vmatpush3.bf16.msra.mxu0 %v1649_v44 }
 0x1ed   : > { %v1668_v49 = vpack.c.bf16 %v1604_v3, %v1597_v37  ;;  %v1663_v1 = vpack.c.bf16 %v1592_v59, %v1585_v5  ;;  %2124 = vmatprep.subr.bf16.mxu0 %v2257_v50  ;;  %v1863_v13 = vunpack.c.0.s8 %v1862_v35 }
 0x1ee   : > { %v1669_v29 = vpack.c.bf16 %v1605_v32, %v1598_v43  ;;  %v1656_v18 = vpack.c.bf16 %v1578_v54, %v1571_v60  ;;  %v1403_v57 = vpop.f32.mrb[52].mxu0  ;;  %v2114_v7 = vpop.f32.mrb[52].mxu1 }
 0x1ef   : > { %v1404_v58 = vadd.f32 %v1403_v57, %v2934_v21  ;;  %v1503_v42 = vadd.f32 %v2114_v7, %v2934_v21  ;;  %v1405_v8 = vpop.f32.mrb[53].mxu0  ;;  %v1494_v9 = vpop.f32.mrb[53].mxu1  ;;  %v1866_v55 = vsub.s32 %v1863_v13, %v2388_v19 }
 0x1f0   : > { %v1406_v4 = vadd.f32 %v1405_v8, %v2934_v21  ;;  %v1495_v22 = vadd.f32 %v1494_v9, %v2922_v36  ;;  %v1407_v61 = vpop.f32.mrb[54].mxu0  ;;  %v2115_v6 = vpop.f32.mrb[54].mxu1  ;;  %1782 = vmatprep.subr.bf16.mxu1 %v1669_v29  ;;  %2125 = vmatpush3.bf16.msra.mxu0 %v1656_v18  ;;  %v3136_v8 = vlaneseq }
 0x1f1   : > { %v1408_v20 = vadd.f32 %v1407_v61, %v2938_v12  ;;  %v1506_v14 = vadd.f32 %v2115_v6, %v2938_v12  ;;  %v1409_v25 = vpop.f32.mrb[55].mxu0  ;;  %v1497_v15 = vpop.f32.mrb[55].mxu1  ;;  %1783 = vmatpush1.bf16.msra.mxu1 %v1668_v49  ;;  %2126 = vmatprep.subr.bf16.mxu0 %v2257_v50  ;;  %v1611_v21 = vmax.f32 %v1404_v58, 0.0  ;;  %v1613_v11 = vmax.f32 %v1503_v42, 0.0 }
 0x1f2   : > { %v1410_v17 = vadd.f32 %v1409_v25, %v2938_v12  ;;  %v1498_v56 = vadd.f32 %v1497_v15, %v2924_v34  ;;  %v1612_v40 = vmax.f32 %v1406_v4, 0.0  ;;  %v1599_v46 = vmax.f32 %v1495_v22, 0.0  ;;  %v1682_v34 = vpop.permute.xlu0 %1681 }
 0x1f3   : > { %v1618_v36 = vmax.f32 %v1408_v20, 0.0  ;;  %v1620_v45 = vmax.f32 %v1506_v14, 0.0  ;;  %v1687_v12 = vrot.slane %v1682_v34, %v2401_v26  ;;  %vm1909_vm3 = vcmp.lt.s32.totalorder %v3136_v8, 896 }
 0x1f4   : > { %v1619_v63 = vmax.f32 %v1410_v17, 0.0  ;;  %v1606_v0 = vmax.f32 %v1498_v56, 0.0  ;;  %2127 = vmatpush3.bf16.msra.mxu0 %v1663_v1 }
 0x1f5   : > { %v1675_v51 = vpack.c.bf16 %v1618_v36, %v1611_v21  ;;  %v1677_v41 = vpack.c.bf16 %v1620_v45, %v1613_v11  ;;  %2128 = vmatprep.subr.bf16.mxu0 %v2257_v50 }
 0x1f6   : > { %v1676_v31 = vpack.c.bf16 %v1619_v63, %v1612_v40  ;;  %v1670_v44 = vpack.c.bf16 %v1606_v0, %v1599_v46 }
 0x1f8   : > { %1784 = vmatprep.subr.bf16.mxu1 %v1676_v31  ;;  %2129 = vmatpush3.bf16.msra.mxu0 %v1670_v44 }
 0x1f9   : > { %1785 = vmatpush1.bf16.msra.mxu1 %v1675_v51  ;;  %2130 = vmatprep.subr.bf16.mxu0 %v2257_v50 }
 0x1fc   : > { %1803 = vmatmul.mubr.bf16.vlgmr.msra.gmra.mrb[60].mxu1 %v3007_v28  ;;  %2131 = vmatpush3.bf16.msra.mxu0 %v1677_v41 }
 0x1ff   : > { %2133 = vmatmul.mubr.bf16.vlgmr.msra.gmra.mrb[60].mxu0 %v3007_v28 }
 0x297   : > { %v1722_v10 = vpop.f32.mrb[56].mxu1 }
 0x298   : > { %v1723_v24 = vadd.f32 %v1722_v10, %v1687_v12  ;;  %v1724_v33 = vpop.f32.mrb[57].mxu1 }
 0x299   : > { %v1725_v38 = vadd.f32 %v1724_v33, %v1687_v12  ;;  %v1726_v30 = vpop.f32.mrb[58].mxu1 }
 0x29a   : > { %v1727_v39 = vpop.f32.mrb[59].mxu1 }
 0x29b   : > { %v1858_v47 = vcombine.low %v1723_v24, %v1725_v38 }
 0x29d   : > { %v1867_v26 = vrot.slane %v1858_v47, %v1866_v55 }
 0x2af   : > { %v1763_v62 = vpop.f32.mrb[56].mxu0 }
 0x2b0   : > { %v1764_v50 = vadd.f32 %v1763_v62, %v1687_v12  ;;  %v1765_v53 = vpop.f32.mrb[57].mxu0 }
 0x2b1   : > { %v1766_v23 = vadd.f32 %v1765_v53, %v1687_v12  ;;  %v1767_v28 = vpop.f32.mrb[58].mxu0 }
 0x2b2   : > { %v1768_v48 = vpop.f32.mrb[59].mxu0 }
 0x2b3   : > { %v1859_v52 = vcombine.low %v1764_v50, %v1766_v23 }
 0x2b5   : > { %v1874_v2 = vrot.slane %v1859_v52, %v1866_v55 }
 0x2b7   : > { %v1889_v27 = vcombine.low %v1867_v26, %v1874_v2 }
 0x2b9   : > { %v1897_v58 = vrot.slane %v1889_v27, %v1866_v55 }
 0x2cf   : > { %v1804_v37 = vpop.f32.mrb[60].mxu1 }
 0x2d0   : > { %v1805_v5 = vadd.f32 %v1804_v37, %v1687_v12  ;;  %v1806_v3 = vpop.f32.mrb[61].mxu1 }
 0x2d1   : > { %v1807_v59 = vadd.f32 %v1806_v3, %v1687_v12  ;;  %v1808_v43 = vpop.f32.mrb[62].mxu1 }
 0x2d2   : > { %v1809_v60 = vpop.f32.mrb[63].mxu1  ;;  %v1845_v32 = vpop.f32.mrb[60].mxu0 }
 0x2d3   : > { %v1860_v54 = vcombine.low %v1805_v5, %v1807_v59  ;;  %v1846_v49 = vadd.f32 %v1845_v32, %v1687_v12  ;;  %v2134_v1 = vpop.f32.mrb[61].mxu0 }
 0x2d4   : > { %v1848_v29 = vpop.f32.mrb[62].mxu0 }
 0x2d5   : > { %v1881_v19 = vrot.slane %v1860_v54, %v1866_v55  ;;  %v1888_v18 = vrot.slane %v1846_v49, %v1866_v55  ;;  %v2135_v57 = vpop.f32.mrb[63].mxu0 }
 0x2d7   : > { %v1890_v7 = vcombine.low %v1881_v19, %v1888_v18 }
 0x2d9   : > { %v1904_v42 = vrot.slane %v1890_v7, %v1866_v55 }
 0x2db   : > { %v1905_v9 = vcombine.low %v1897_v58, %v1904_v42 }
 0x2dd   : > { %1911 = vst.msk [vmem:[%s379_s28] sm:$0x7f] %vm1909_vm3, %v1905_v9 }
 0x2de PF: > { %s20_s11 = sadd.s32 1, %s2247_s11   ;;  %s3137_s29 = smov %s2239_s9 }
 0x2df   : > { %p17_p7 = scmp.ge.s32.totalorder %s20_s11, 10   ;;  %s3138_s30 = smov %s2243_s10 }
 0x2e0   : > { %s3139_s9 = smov %s3142_s7  ;;  %s3140_s10 = smov %s3146_s12 }
 0x2e1   :  { %19 = sbr.rel (!%p17_p7) target bundleno = 3 (0x3), region = 92 }

</bundles_post_ra>
